<compile_context>
chip_gen: v7x
topology: tpu7x:2x2x1
jax: 0.10.0
libtpu: 0.0.40
codegen_flags: <defaults>
</compile_context>

<pallas_src>
import numpy as np
import jax
import jax.numpy as jnp
from jax import lax
from jax.experimental import pallas as pl
from jax.experimental.pallas import tpu as pltpu


def _round_up(x, m):
    return ((x + m - 1) // m) * m


# ---------------------------------------------------------------------------
# Fused Pallas kernel: MLP (layer 0 only) -> N-layer LSTM -> FC head
# ---------------------------------------------------------------------------
def _recurrent_kernel(obs_ref, w1_ref, b1_ref, w2_ref, b2_ref, w3_ref, b3_ref,
                      wih_ref, whh_ref, b_ref, h0_ref, c0_ref, wf_ref, bf_ref,
                      hid_ref, cell_ref, logits_ref, seq_buf, gx_buf):
    # One grid step == one LSTM layer.  The layer-to-layer activation sequence
    # lives in the persistent VMEM scratch `seq_buf` (written in place).
    layer = pl.program_id(0)
    nlayers = pl.num_programs(0)
    LB, Hp = seq_buf.shape            # LB = L * Bp
    G = gx_buf.shape[-1]              # 4 * Hp (gate stripes, 128-lane aligned)
    Bp = h0_ref.shape[1]
    L = LB // Bp
    unroll = True if L <= 16 else 4   # modest unroll; avoids vreg spills

    # ---- Layer 0: fused MLP feature extractor fills seq_buf (no HBM trip).
    @pl.when(layer == 0)
    def _():
        x = obs_ref[...]
        h = jnp.maximum(
            jnp.dot(x.astype(w1_ref.dtype), w1_ref[...],
                    preferred_element_type=jnp.float32) + b1_ref[...], 0.0)
        h = jnp.maximum(
            jnp.dot(h.astype(w2_ref.dtype), w2_ref[...],
                    preferred_element_type=jnp.float32) + b2_ref[...], 0.0)
        seq_buf[...] = (jnp.dot(h.astype(w3_ref.dtype), w3_ref[...],
                                preferred_element_type=jnp.float32)
                        + b3_ref[...])

    wih = wih_ref[0]                  # (Hp, 4Hp), gate order i|f|g|o in stripes
    whh = whh_ref[0]                  # (Hp, 4Hp)

    # ---- Hoisted input projection: ONE big matmul over all timesteps.
    # (L*Bp, Hp) x (Hp, 4Hp) + bias -> gx_buf.  Off the serial critical path.
    gx_buf[...] = (jnp.dot(seq_buf[...].astype(wih.dtype), wih,
                           preferred_element_type=jnp.float32) + b_ref[0])

    is_not_last = layer < nlayers - 1

    # ---- Serial recurrence: one (Bp,Hp)x(Hp,4Hp) matmul + gate math per step.
    def step(t, carry):
        h_prev, c_prev = carry
        row = pl.multiple_of(t * Bp, Bp)          # Bp is a multiple of 8
        gates = (gx_buf[pl.ds(row, Bp), :]
                 + jnp.dot(h_prev.astype(whh.dtype), whh,
                           preferred_element_type=jnp.float32))
        # 128-lane-aligned stripe slices -> free vreg extracts.
        i = jax.nn.sigmoid(gates[:, 0 * Hp:1 * Hp])
        f = jax.nn.sigmoid(gates[:, 1 * Hp:2 * Hp])
        g = jnp.tanh(gates[:, 2 * Hp:3 * Hp])
        o = jax.nn.sigmoid(gates[:, 3 * Hp:4 * Hp])
        c_new = f * c_prev + i * g
        h_new = o * jnp.tanh(c_new)

        # Next layer's input sequence; skipped on the last layer (never read).
        @pl.when(is_not_last)
        def _():
            seq_buf[pl.ds(row, Bp), :] = h_new

        return h_new, c_new

    h_fin, c_fin = lax.fori_loop(0, L, step, (h0_ref[0], c0_ref[0]),
                                 unroll=unroll)

    hid_ref[0] = h_fin
    cell_ref[0] = c_fin

    # Fused FC head: logits from the last layer's final hidden state.
    @pl.when(layer == nlayers - 1)
    def _():
        logits_ref[...] = (jnp.dot(h_fin.astype(wf_ref.dtype), wf_ref[...],
                                   preferred_element_type=jnp.float32)
                           + bf_ref[...])


# ---------------------------------------------------------------------------
# pallas_call wrapper
# ---------------------------------------------------------------------------
def _fused_forward(obs_lbd, kp, h0, c0, Bp, compute_dtype):
    LB, D = obs_lbd.shape
    N, Hp, G = kp["wih_cat"].shape
    Ap = kp["wft"].shape[1]

    cdt = compute_dtype
    w1 = kp["w1t"].astype(cdt)
    w2 = kp["w2t"].astype(cdt)
    w3 = kp["w3t"].astype(cdt)
    wih = kp["wih_cat"].astype(cdt)
    whh = kp["whh_cat"].astype(cdt)
    wf = kp["wft"].astype(cdt)
    b1, b2, b3 = kp["b1r"], kp["b2r"], kp["b3r"]
    bcat, bf = kp["b_cat"], kp["bfr"]

    # Explicit VMEM budget from the actual resident buffers, clamped to the
    # device's physical VMEM (v7x = 64 MiB, v5e/v6e = 128 MiB).
    iw = jnp.dtype(cdt).itemsize
    est = (LB * Hp * 4 + LB * G * 4                                  # scratch
           + 2 * LB * D * 4                                          # obs block
           + 2 * ((D * 128 + 128 * 128 + 128 * Hp) * iw + (256 + Hp) * 4)
           + 2 * (2 * Hp * G * iw + G * 4)                           # layer W's
           + 2 * 4 * Bp * Hp * 4                                     # h/c blocks
           + Hp * Ap * iw + Ap * 4 + Bp * Ap * 4)                    # FC head
    try:
        cap = int(pltpu.get_tpu_info().vmem_capacity_bytes)
    except Exception:
        cap = 64 << 20                                               # v7x floor
    vmem_limit = int(min(max(est + (4 << 20), 16 << 20), cap))

    grid_spec = pltpu.PrefetchScalarGridSpec(
        num_scalar_prefetch=0,
        grid=(N,),
        in_specs=[
            pl.BlockSpec((LB, D), lambda l: (0, 0)),          # obs (grid-inv.)
            pl.BlockSpec(w1.shape, lambda l: (0, 0)),
            pl.BlockSpec(b1.shape, lambda l: (0, 0)),
            pl.BlockSpec(w2.shape, lambda l: (0, 0)),
            pl.BlockSpec(b2.shape, lambda l: (0, 0)),
            pl.BlockSpec(w3.shape, lambda l: (0, 0)),
            pl.BlockSpec(b3.shape, lambda l: (0, 0)),
            pl.BlockSpec((1, Hp, G), lambda l: (l, 0, 0)),    # W_ih (fused)
            pl.BlockSpec((1, Hp, G), lambda l: (l, 0, 0)),    # W_hh (fused)
            pl.BlockSpec((1, 1, G), lambda l: (l, 0, 0)),     # b_ih + b_hh
            pl.BlockSpec((1, Bp, Hp), lambda l: (l, 0, 0)),   # h0
            pl.BlockSpec((1, Bp, Hp), lambda l: (l, 0, 0)),   # c0
            pl.BlockSpec((Hp, Ap), lambda l: (0, 0)),         # fc2 weight
            pl.BlockSpec((1, Ap), lambda l: (0, 0)),          # fc2 bias
        ],
        out_specs=[
            pl.BlockSpec((1, Bp, Hp), lambda l: (l, 0, 0)),   # hidden
            pl.BlockSpec((1, Bp, Hp), lambda l: (l, 0, 0)),   # cell
            pl.BlockSpec((Bp, Ap), lambda l: (0, 0)),         # logits (resident)
        ],
        scratch_shapes=[
            pltpu.VMEM((LB, Hp), jnp.float32),    # layer activation sequence
            pltpu.VMEM((LB, G), jnp.float32),     # precomputed x-gates + bias
        ],
    )
    return pl.pallas_call(
        _recurrent_kernel,
        out_shape=(jax.ShapeDtypeStruct((N, Bp, Hp), jnp.float32),
                   jax.ShapeDtypeStruct((N, Bp, Hp), jnp.float32),
                   jax.ShapeDtypeStruct((Bp, Ap), jnp.float32)),
        grid_spec=grid_spec,
        compiler_params=pltpu.CompilerParams(
            dimension_semantics=("arbitrary",),   # seq_buf carried across layers
            vmem_limit_bytes=vmem_limit),
    )(obs_lbd, w1, b1, w2, b2, w3, b3, wih, whh, bcat, h0, c0, wf, bf)


def recurrent_forward(obs, params, state=None, compute_dtype=jnp.float32):
    """Pallas equivalent of Recurrent.forward: obs -> (logits, new_state).

    compute_dtype=jnp.bfloat16 runs the matmuls in bf16 (recommended on
    v6e/v7x); gate elementwise math / carries always stay f32.
    """
    obs = jnp.asarray(obs, jnp.float32)
    if obs.ndim == 2:                          # eval mode: [bsz, dim]
        obs = obs[:, None, :]
    B, L, D = obs.shape
    kp = params["kernel"]
    H = params["w3"].shape[0]                  # true hidden size
    A = params["wf"].shape[0]                  # true action size
    Hp = kp["w3t"].shape[1]                    # lane-padded hidden
    N = kp["wih_cat"].shape[0]
    Bp = max(8, _round_up(B, 8))               # sublane-aligned batch

    # Time-major, batch-padded flattening: (L*Bp, D).  Only the small obs
    # tensor is transposed / padded; H-sized activations never leave VMEM.
    obs_lbd = (jnp.zeros((L, Bp, D), jnp.float32)
               .at[:, :B, :].set(jnp.transpose(obs, (1, 0, 2)))
               .reshape(L * Bp, D))

    if state is None:
        h0 = jnp.zeros((N, Bp, Hp), jnp.float32)
        c0 = jnp.zeros((N, Bp, Hp), jnp.float32)
    else:
        # state dict stores (B, num_layers, H), like the torch module
        h0 = (jnp.zeros((N, Bp, Hp), jnp.float32)
              .at[:, :B, :H].set(jnp.transpose(state["hidden"], (1, 0, 2))))
        c0 = (jnp.zeros((N, Bp, Hp), jnp.float32)
              .at[:, :B, :H].set(jnp.transpose(state["cell"], (1, 0, 2))))

    hidden, cell, logits = _fused_forward(obs_lbd, kp, h0, c0, Bp, compute_dtype)
    new_state = {"hidden": jnp.transpose(hidden[:, :B, :H], (1, 0, 2)),
                 "cell": jnp.transpose(cell[:, :B, :H], (1, 0, 2))}
    return logits[:B, :A], new_state


# ---------------------------------------------------------------------------
# Deterministic parameter init (PyTorch-style uniform) + kernel layouts
# ---------------------------------------------------------------------------
def init_params(key, state_dim, action_dim, hidden, layer_num):
    ks = jax.random.split(key, 12)

    def u(k, shape, bound):
        return jax.random.uniform(k, shape, jnp.float32, -bound, bound)

    p = {}
    p["w1"] = u(ks[0], (128, state_dim), 1 / np.sqrt(state_dim))
    p["b1"] = u(ks[1], (128,), 1 / np.sqrt(state_dim))
    p["w2"] = u(ks[2], (128, 128), 1 / np.sqrt(128))
    p["b2"] = u(ks[3], (128,), 1 / np.sqrt(128))
    p["w3"] = u(ks[4], (hidden, 128), 1 / np.sqrt(128))
    p["b3"] = u(ks[5], (hidden,), 1 / np.sqrt(128))
    bL = 1 / np.sqrt(hidden)
    p["w_ih"] = u(ks[6], (layer_num, 4 * hidden, hidden), bL)
    p["w_hh"] = u(ks[7], (layer_num, 4 * hidden, hidden), bL)
    p["b_ih"] = u(ks[8], (layer_num, 4 * hidden), bL)
    p["b_hh"] = u(ks[9], (layer_num, 4 * hidden), bL)
    p["wf"] = u(ks[10], (action_dim, hidden), bL)
    p["bf"] = u(ks[11], (action_dim,), bL)

    H, N, A = hidden, layer_num, action_dim
    Hp = _round_up(H, 128)     # each gate gets a full 128-lane-aligned stripe
    Ap = _round_up(A, 128)     # lane-dense logits output

    def pad_gates(w):          # w: (N, 4H, H) torch layout -> (N, Hp, 4*Hp)
        wt = jnp.transpose(w, (0, 2, 1)).reshape(N, H, 4, H)
        out = jnp.zeros((N, Hp, 4, Hp), jnp.float32)
        return out.at[:, :H, :, :H].set(wt).reshape(N, Hp, 4 * Hp)

    b_sum = (p["b_ih"] + p["b_hh"]).reshape(N, 4, H)
    b_pad = (jnp.zeros((N, 4, Hp), jnp.float32)
             .at[:, :, :H].set(b_sum).reshape(N, 1, 4 * Hp))

    p["kernel"] = {
        "w1t": p["w1"].T, "b1r": p["b1"].reshape(1, -1),
        "w2t": p["w2"].T, "b2r": p["b2"].reshape(1, -1),
        "w3t": jnp.zeros((128, Hp), jnp.float32).at[:, :H].set(p["w3"].T),
        "b3r": jnp.zeros((1, Hp), jnp.float32).at[:, :H].set(p["b3"][None, :]),
        # Fused-gate, lane-padded layout: gate k lives in lanes [k*Hp, k*Hp+H).
        "wih_cat": pad_gates(p["w_ih"]),
        "whh_cat": pad_gates(p["w_hh"]),
        "b_cat": b_pad,
        "wft": jnp.zeros((Hp, Ap), jnp.float32).at[:H, :A].set(p["wf"].T),
        "bfr": jnp.zeros((1, Ap), jnp.float32).at[:, :A].set(p["bf"][None, :]),
    }
    return p


# ---------------------------------------------------------------------------
# Pure-JAX reference (mirrors the PyTorch module)
# ---------------------------------------------------------------------------
def ref_forward(obs, p, state=None):
    obs = jnp.asarray(obs, jnp.float32)
    if obs.ndim == 2:
        obs = obs[:, None, :]
    x = jnp.maximum(obs @ p["w1"].T + p["b1"], 0.0)
    x = jnp.maximum(x @ p["w2"].T + p["b2"], 0.0)
    x = x @ p["w3"].T + p["b3"]                 # (B, L, H)
    B, L, H = x.shape
    N = p["w_ih"].shape[0]
    if state is None:
        h0 = jnp.zeros((N, B, H)); c0 = jnp.zeros((N, B, H))
    else:
        h0 = jnp.transpose(state["hidden"], (1, 0, 2))
        c0 = jnp.transpose(state["cell"], (1, 0, 2))
    layer_in = x
    hs, cs = [], []
    for l in range(N):
        h, c = h0[l], c0[l]
        outs = []
        for t in range(L):
            g = (layer_in[:, t] @ p["w_ih"][l].T + p["b_ih"][l]
                 + h @ p["w_hh"][l].T + p["b_hh"][l])
            i = jax.nn.sigmoid(g[:, :H])
            f = jax.nn.sigmoid(g[:, H:2 * H])
            gg = jnp.tanh(g[:, 2 * H:3 * H])
            o = jax.nn.sigmoid(g[:, 3 * H:])
            c = f * c + i * gg
            h = o * jnp.tanh(c)
            outs.append(h)
        layer_in = jnp.stack(outs, axis=1)
        hs.append(h); cs.append(c)
    hidden = jnp.stack(hs); cell = jnp.stack(cs)
    logits = layer_in[:, -1] @ p["wf"].T + p["bf"]
    return logits, {"hidden": jnp.transpose(hidden, (1, 0, 2)),
                    "cell": jnp.transpose(cell, (1, 0, 2))}


if __name__ == "__main__":
    B, L, D, H, N, A = 2, 8, 4, 32, 2, 3   # batch, seq, state, hidden, layers, actions
    key = jax.random.PRNGKey(0)
    p_key, obs_key = jax.random.split(key)
    params = init_params(p_key, D, A, H, N)
    obs = jax.random.normal(obs_key, (B, L, D), jnp.float32)

    # training-mode call (3-D obs, no carried state), f32 matmuls
    logits, state = recurrent_forward(obs, params, state=None)
    jax.block_until_ready((logits, state))

    ref_logits, ref_state = ref_forward(obs, params, state=None)
    np.testing.assert_allclose(np.asarray(logits), np.asarray(ref_logits),
                               atol=2e-3, rtol=2e-3)
    np.testing.assert_allclose(np.asarray(state["hidden"]),
                               np.asarray(ref_state["hidden"]),
                               atol=2e-3, rtol=2e-3)
    np.testing.assert_allclose(np.asarray(state["cell"]),
                               np.asarray(ref_state["cell"]),
                               atol=2e-3, rtol=2e-3)

    # eval-mode call (2-D obs) feeding the recurrent state back in
    logits2, _ = recurrent_forward(obs[:, -1], params, state=state)
    jax.block_until_ready(logits2)
    ref_logits2, _ = ref_forward(obs[:, -1], params, state=ref_state)
    np.testing.assert_allclose(np.asarray(logits2), np.asarray(ref_logits2),
                               atol=2e-3, rtol=2e-3)

    # bf16-matmul path (recommended on v6e/v7x); loose tolerance sanity check
    logits_bf, state_bf = recurrent_forward(obs, params, state=None,
                                            compute_dtype=jnp.bfloat16)
    jax.block_until_ready((logits_bf, state_bf))
    np.testing.assert_allclose(np.asarray(logits_bf), np.asarray(ref_logits),
                               atol=1e-1, rtol=1e-1)

    print("KERNEL_OK")
</pallas_src>

<mosaic_0001>
module attributes {stable_mosaic.version = 11 : i64} {
  func.func @_recurrent_kernel(%arg0: i32, %arg1: memref<64x4xf32, #tpu.memory_space<vmem>>, %arg2: memref<4x128xf32, #tpu.memory_space<vmem>>, %arg3: memref<1x128xf32, #tpu.memory_space<vmem>>, %arg4: memref<128x128xf32, #tpu.memory_space<vmem>>, %arg5: memref<1x128xf32, #tpu.memory_space<vmem>>, %arg6: memref<128x128xf32, #tpu.memory_space<vmem>>, %arg7: memref<1x128xf32, #tpu.memory_space<vmem>>, %arg8: memref<1x128x512xf32, #tpu.memory_space<vmem>>, %arg9: memref<1x128x512xf32, #tpu.memory_space<vmem>>, %arg10: memref<1x1x512xf32, #tpu.memory_space<vmem>>, %arg11: memref<1x8x128xf32, #tpu.memory_space<vmem>>, %arg12: memref<1x8x128xf32, #tpu.memory_space<vmem>>, %arg13: memref<128x128xf32, #tpu.memory_space<vmem>>, %arg14: memref<1x128xf32, #tpu.memory_space<vmem>>, %arg15: memref<1x8x128xf32, #tpu.memory_space<vmem>>, %arg16: memref<1x8x128xf32, #tpu.memory_space<vmem>>, %arg17: memref<8x128xf32, #tpu.memory_space<vmem>>, %arg18: memref<64x128xf32, #tpu.memory_space<vmem>>, %arg19: memref<64x512xf32, #tpu.memory_space<vmem>>) attributes {dimension_semantics = [#tpu.dimension_semantics<arbitrary>], iteration_bounds = array<i64: 2>, scalar_prefetch = 0 : i64, scratch_operands = 2 : i64, tpu.core_type = #tpu.core_type<tc>, window_params = [{pipeline_mode = #tpu.pipeline_mode<synchronous>, transform_indices = @transform_0, window_bounds = array<i64: 64, 4>}, {pipeline_mode = #tpu.pipeline_mode<synchronous>, transform_indices = @transform_1, window_bounds = array<i64: 4, 128>}, {pipeline_mode = #tpu.pipeline_mode<synchronous>, transform_indices = @transform_2, window_bounds = array<i64: 1, 128>}, {pipeline_mode = #tpu.pipeline_mode<synchronous>, transform_indices = @transform_3, window_bounds = array<i64: 128, 128>}, {pipeline_mode = #tpu.pipeline_mode<synchronous>, transform_indices = @transform_4, window_bounds = array<i64: 1, 128>}, {pipeline_mode = #tpu.pipeline_mode<synchronous>, transform_indices = @transform_5, window_bounds = array<i64: 128, 128>}, {pipeline_mode = #tpu.pipeline_mode<synchronous>, transform_indices = @transform_6, window_bounds = array<i64: 1, 128>}, {transform_indices = @transform_7, window_bounds = array<i64: 1, 128, 512>}, {transform_indices = @transform_8, window_bounds = array<i64: 1, 128, 512>}, {transform_indices = @transform_9, window_bounds = array<i64: 1, 1, 512>}, {transform_indices = @transform_10, window_bounds = array<i64: 1, 8, 128>}, {transform_indices = @transform_11, window_bounds = array<i64: 1, 8, 128>}, {pipeline_mode = #tpu.pipeline_mode<synchronous>, transform_indices = @transform_12, window_bounds = array<i64: 128, 128>}, {pipeline_mode = #tpu.pipeline_mode<synchronous>, transform_indices = @transform_13, window_bounds = array<i64: 1, 128>}, {transform_indices = @transform_14, window_bounds = array<i64: 1, 8, 128>}, {transform_indices = @transform_15, window_bounds = array<i64: 1, 8, 128>}, {pipeline_mode = #tpu.pipeline_mode<synchronous>, transform_indices = @transform_16, window_bounds = array<i64: 8, 128>}]} {
    %c0_i32 = arith.constant 0 : i32
    %0 = arith.cmpi eq, %arg0, %c0_i32 : i32
    %1 = arith.extui %0 : i1 to i32
    %c0_i32_0 = arith.constant 0 : i32
    %2 = arith.cmpi ne, %1, %c0_i32_0 : i32
    scf.if %2 {
      %c0_85 = arith.constant 0 : index
      %c0_86 = arith.constant 0 : index
      %292 = vector.load %arg1[%c0_85, %c0_86] : memref<64x4xf32, #tpu.memory_space<vmem>>, vector<64x4xf32>
      %c0_87 = arith.constant 0 : index
      %c0_88 = arith.constant 0 : index
      %293 = vector.load %arg2[%c0_87, %c0_88] : memref<4x128xf32, #tpu.memory_space<vmem>>, vector<4x128xf32>
      %cst_89 = arith.constant dense<0.000000e+00> : vector<64x128xf32>
      %294 = tpu.matmul %292, %293, %cst_89 {dimension_numbers = #tpu.dot_dimension_numbers<[1], [0], [0], [1], [0, 0, 1, 1], [], []>} : vector<64x4xf32>, vector<4x128xf32>, vector<64x128xf32> -> vector<64x128xf32>
      %c0_90 = arith.constant 0 : index
      %c0_91 = arith.constant 0 : index
      %295 = vector.load %arg3[%c0_90, %c0_91] : memref<1x128xf32, #tpu.memory_space<vmem>>, vector<1x128xf32>
      %296 = vector.broadcast %295 : vector<1x128xf32> to vector<64x128xf32>
      %297 = arith.addf %294, %296 : vector<64x128xf32>
      %cst_92 = arith.constant 0.000000e+00 : f32
      %298 = vector.broadcast %cst_92 : f32 to vector<64x128xf32>
      %299 = arith.maximumf %297, %298 : vector<64x128xf32>
      %c0_93 = arith.constant 0 : index
      %c0_94 = arith.constant 0 : index
      %300 = vector.load %arg4[%c0_93, %c0_94] : memref<128x128xf32, #tpu.memory_space<vmem>>, vector<128x128xf32>
      %cst_95 = arith.constant dense<0.000000e+00> : vector<64x128xf32>
      %301 = tpu.matmul %299, %300, %cst_95 {dimension_numbers = #tpu.dot_dimension_numbers<[1], [0], [0], [1], [0, 0, 1, 1], [], []>} : vector<64x128xf32>, vector<128x128xf32>, vector<64x128xf32> -> vector<64x128xf32>
      %c0_96 = arith.constant 0 : index
      %c0_97 = arith.constant 0 : index
      %302 = vector.load %arg5[%c0_96, %c0_97] : memref<1x128xf32, #tpu.memory_space<vmem>>, vector<1x128xf32>
      %303 = vector.broadcast %302 : vector<1x128xf32> to vector<64x128xf32>
      %304 = arith.addf %301, %303 : vector<64x128xf32>
      %cst_98 = arith.constant 0.000000e+00 : f32
      %305 = vector.broadcast %cst_98 : f32 to vector<64x128xf32>
      %306 = arith.maximumf %304, %305 : vector<64x128xf32>
      %c0_99 = arith.constant 0 : index
      %c0_100 = arith.constant 0 : index
      %307 = vector.load %arg6[%c0_99, %c0_100] : memref<128x128xf32, #tpu.memory_space<vmem>>, vector<128x128xf32>
      %cst_101 = arith.constant dense<0.000000e+00> : vector<64x128xf32>
      %308 = tpu.matmul %306, %307, %cst_101 {dimension_numbers = #tpu.dot_dimension_numbers<[1], [0], [0], [1], [0, 0, 1, 1], [], []>} : vector<64x128xf32>, vector<128x128xf32>, vector<64x128xf32> -> vector<64x128xf32>
      %c0_102 = arith.constant 0 : index
      %c0_103 = arith.constant 0 : index
      %309 = vector.load %arg7[%c0_102, %c0_103] : memref<1x128xf32, #tpu.memory_space<vmem>>, vector<1x128xf32>
      %310 = vector.broadcast %309 : vector<1x128xf32> to vector<64x128xf32>
      %311 = arith.addf %308, %310 : vector<64x128xf32>
      %c0_104 = arith.constant 0 : index
      %c0_105 = arith.constant 0 : index
      %312 = vector.load %arg18[%c0_104, %c0_105] : memref<64x128xf32, #tpu.memory_space<vmem>>, vector<64x128xf32>
      tpu.vector_store %arg18[%c0_104, %c0_105], %311 {strides = array<i32>} : memref<64x128xf32, #tpu.memory_space<vmem>>, vector<64x128xf32>,
    } else {
    }
    %c0 = arith.constant 0 : index
    %c0_1 = arith.constant 0 : index
    %c0_2 = arith.constant 0 : index
    %3 = vector.load %arg8[%c0, %c0_1, %c0_2] : memref<1x128x512xf32, #tpu.memory_space<vmem>>, vector<1x128x512xf32>
    %4 = vector.shape_cast %3 : vector<1x128x512xf32> to vector<128x512xf32>
    %c0_3 = arith.constant 0 : index
    %c0_4 = arith.constant 0 : index
    %c0_5 = arith.constant 0 : index
    %5 = vector.load %arg9[%c0_3, %c0_4, %c0_5] : memref<1x128x512xf32, #tpu.memory_space<vmem>>, vector<1x128x512xf32>
    %6 = vector.shape_cast %5 : vector<1x128x512xf32> to vector<128x512xf32>
    %c0_6 = arith.constant 0 : index
    %c0_7 = arith.constant 0 : index
    %7 = vector.load %arg18[%c0_6, %c0_7] : memref<64x128xf32, #tpu.memory_space<vmem>>, vector<64x128xf32>
    %cst = arith.constant dense<0.000000e+00> : vector<64x512xf32>
    %8 = tpu.matmul %7, %4, %cst {dimension_numbers = #tpu.dot_dimension_numbers<[1], [0], [0], [1], [0, 0, 1, 1], [], []>} : vector<64x128xf32>, vector<128x512xf32>, vector<64x512xf32> -> vector<64x512xf32>
    %c0_8 = arith.constant 0 : index
    %c0_9 = arith.constant 0 : index
    %c0_10 = arith.constant 0 : index
    %9 = vector.load %arg10[%c0_8, %c0_9, %c0_10] : memref<1x1x512xf32, #tpu.memory_space<vmem>>, vector<1x1x512xf32>
    %10 = vector.shape_cast %9 : vector<1x1x512xf32> to vector<1x512xf32>
    %11 = vector.broadcast %10 : vector<1x512xf32> to vector<64x512xf32>
    %12 = arith.addf %8, %11 : vector<64x512xf32>
    %c0_11 = arith.constant 0 : index
    %c0_12 = arith.constant 0 : index
    %13 = vector.load %arg19[%c0_11, %c0_12] : memref<64x512xf32, #tpu.memory_space<vmem>>, vector<64x512xf32>
    tpu.vector_store %arg19[%c0_11, %c0_12], %12 {strides = array<i32>} : memref<64x512xf32, #tpu.memory_space<vmem>>, vector<64x512xf32>,
    %c1_i32 = arith.constant 1 : i32
    %14 = arith.cmpi slt, %arg0, %c1_i32 : i32
    %c0_13 = arith.constant 0 : index
    %c0_14 = arith.constant 0 : index
    %c0_15 = arith.constant 0 : index
    %15 = vector.load %arg11[%c0_13, %c0_14, %c0_15] : memref<1x8x128xf32, #tpu.memory_space<vmem>>, vector<1x8x128xf32>
    %16 = vector.shape_cast %15 : vector<1x8x128xf32> to vector<8x128xf32>
    %c0_16 = arith.constant 0 : index
    %c0_17 = arith.constant 0 : index
    %c0_18 = arith.constant 0 : index
    %17 = vector.load %arg12[%c0_16, %c0_17, %c0_18] : memref<1x8x128xf32, #tpu.memory_space<vmem>>, vector<1x8x128xf32>
    %18 = vector.shape_cast %17 : vector<1x8x128xf32> to vector<8x128xf32>
    %c0_i32_19 = arith.constant 0 : i32
    %c8_i32 = arith.constant 8 : i32
    %19 = arith.muli %c0_i32_19, %c8_i32 : i32
    %20 = tpu.assume_multiple %19, 8 : i32
    %21 = arith.index_cast %20 : i32 to index
    %c0_20 = arith.constant 0 : index
    %22 = vector.load %arg19[%21, %c0_20] : memref<64x512xf32, #tpu.memory_space<vmem>>, vector<8x512xf32>
    %cst_21 = arith.constant dense<0.000000e+00> : vector<8x512xf32>
    %23 = tpu.matmul %16, %6, %cst_21 {dimension_numbers = #tpu.dot_dimension_numbers<[1], [0], [0], [1], [0, 0, 1, 1], [], []>} : vector<8x128xf32>, vector<128x512xf32>, vector<8x512xf32> -> vector<8x512xf32>
    %24 = arith.addf %22, %23 : vector<8x512xf32>
    %25 = vector.extract_strided_slice %24 {offsets = [0, 0], sizes = [8, 128], strides = [1, 1]} : vector<8x512xf32> to vector<8x128xf32>
    %26 = arith.negf %25 : vector<8x128xf32>
    %27 = math.exp %26 : vector<8x128xf32>
    %cst_22 = arith.constant 1.000000e+00 : f32
    %28 = vector.broadcast %cst_22 : f32 to vector<8x128xf32>
    %29 = arith.addf %28, %27 : vector<8x128xf32>
    %30 = arith.divf %28, %29 : vector<8x128xf32>
    %31 = vector.extract_strided_slice %24 {offsets = [0, 128], sizes = [8, 128], strides = [1, 1]} : vector<8x512xf32> to vector<8x128xf32>
    %32 = arith.negf %31 : vector<8x128xf32>
    %33 = math.exp %32 : vector<8x128xf32>
    %cst_23 = arith.constant 1.000000e+00 : f32
    %34 = vector.broadcast %cst_23 : f32 to vector<8x128xf32>
    %35 = arith.addf %34, %33 : vector<8x128xf32>
    %36 = arith.divf %34, %35 : vector<8x128xf32>
    %37 = vector.extract_strided_slice %24 {offsets = [0, 256], sizes = [8, 128], strides = [1, 1]} : vector<8x512xf32> to vector<8x128xf32>
    %38 = math.tanh %37 : vector<8x128xf32>
    %39 = vector.extract_strided_slice %24 {offsets = [0, 384], sizes = [8, 128], strides = [1, 1]} : vector<8x512xf32> to vector<8x128xf32>
    %40 = arith.negf %39 : vector<8x128xf32>
    %41 = math.exp %40 : vector<8x128xf32>
    %cst_24 = arith.constant 1.000000e+00 : f32
    %42 = vector.broadcast %cst_24 : f32 to vector<8x128xf32>
    %43 = arith.addf %42, %41 : vector<8x128xf32>
    %44 = arith.divf %42, %43 : vector<8x128xf32>
    %45 = arith.mulf %36, %18 : vector<8x128xf32>
    %46 = arith.mulf %30, %38 : vector<8x128xf32>
    %47 = arith.addf %45, %46 : vector<8x128xf32>
    %48 = math.tanh %47 : vector<8x128xf32>
    %49 = arith.mulf %44, %48 : vector<8x128xf32>
    %50 = arith.extui %14 : i1 to i32
    %c0_i32_25 = arith.constant 0 : i32
    %51 = arith.cmpi ne, %50, %c0_i32_25 : i32
    scf.if %51 {
      %292 = arith.index_cast %20 : i32 to index
      %c0_85 = arith.constant 0 : index
      %293 = vector.load %arg18[%292, %c0_85] : memref<64x128xf32, #tpu.memory_space<vmem>>, vector<8x128xf32>
      tpu.vector_store %arg18[%292, %c0_85], %49 {strides = array<i32>} : memref<64x128xf32, #tpu.memory_space<vmem>>, vector<8x128xf32>,
    } else {
    }
    %c1_i32_26 = arith.constant 1 : i32
    %c8_i32_27 = arith.constant 8 : i32
    %52 = arith.muli %c1_i32_26, %c8_i32_27 : i32
    %53 = tpu.assume_multiple %52, 8 : i32
    %54 = arith.index_cast %53 : i32 to index
    %c0_28 = arith.constant 0 : index
    %55 = vector.load %arg19[%54, %c0_28] : memref<64x512xf32, #tpu.memory_space<vmem>>, vector<8x512xf32>
    %cst_29 = arith.constant dense<0.000000e+00> : vector<8x512xf32>
    %56 = tpu.matmul %49, %6, %cst_29 {dimension_numbers = #tpu.dot_dimension_numbers<[1], [0], [0], [1], [0, 0, 1, 1], [], []>} : vector<8x128xf32>, vector<128x512xf32>, vector<8x512xf32> -> vector<8x512xf32>
    %57 = arith.addf %55, %56 : vector<8x512xf32>
    %58 = vector.extract_strided_slice %57 {offsets = [0, 0], sizes = [8, 128], strides = [1, 1]} : vector<8x512xf32> to vector<8x128xf32>
    %59 = arith.negf %58 : vector<8x128xf32>
    %60 = math.exp %59 : vector<8x128xf32>
    %cst_30 = arith.constant 1.000000e+00 : f32
    %61 = vector.broadcast %cst_30 : f32 to vector<8x128xf32>
    %62 = arith.addf %61, %60 : vector<8x128xf32>
    %63 = arith.divf %61, %62 : vector<8x128xf32>
    %64 = vector.extract_strided_slice %57 {offsets = [0, 128], sizes = [8, 128], strides = [1, 1]} : vector<8x512xf32> to vector<8x128xf32>
    %65 = arith.negf %64 : vector<8x128xf32>
    %66 = math.exp %65 : vector<8x128xf32>
    %cst_31 = arith.constant 1.000000e+00 : f32
    %67 = vector.broadcast %cst_31 : f32 to vector<8x128xf32>
    %68 = arith.addf %67, %66 : vector<8x128xf32>
    %69 = arith.divf %67, %68 : vector<8x128xf32>
    %70 = vector.extract_strided_slice %57 {offsets = [0, 256], sizes = [8, 128], strides = [1, 1]} : vector<8x512xf32> to vector<8x128xf32>
    %71 = math.tanh %70 : vector<8x128xf32>
    %72 = vector.extract_strided_slice %57 {offsets = [0, 384], sizes = [8, 128], strides = [1, 1]} : vector<8x512xf32> to vector<8x128xf32>
    %73 = arith.negf %72 : vector<8x128xf32>
    %74 = math.exp %73 : vector<8x128xf32>
    %cst_32 = arith.constant 1.000000e+00 : f32
    %75 = vector.broadcast %cst_32 : f32 to vector<8x128xf32>
    %76 = arith.addf %75, %74 : vector<8x128xf32>
    %77 = arith.divf %75, %76 : vector<8x128xf32>
    %78 = arith.mulf %69, %47 : vector<8x128xf32>
    %79 = arith.mulf %63, %71 : vector<8x128xf32>
    %80 = arith.addf %78, %79 : vector<8x128xf32>
    %81 = math.tanh %80 : vector<8x128xf32>
    %82 = arith.mulf %77, %81 : vector<8x128xf32>
    %83 = arith.extui %14 : i1 to i32
    %c0_i32_33 = arith.constant 0 : i32
    %84 = arith.cmpi ne, %83, %c0_i32_33 : i32
    scf.if %84 {
      %292 = arith.index_cast %53 : i32 to index
      %c0_85 = arith.constant 0 : index
      %293 = vector.load %arg18[%292, %c0_85] : memref<64x128xf32, #tpu.memory_space<vmem>>, vector<8x128xf32>
      tpu.vector_store %arg18[%292, %c0_85], %82 {strides = array<i32>} : memref<64x128xf32, #tpu.memory_space<vmem>>, vector<8x128xf32>,
    } else {
    }
    %c2_i32 = arith.constant 2 : i32
    %c8_i32_34 = arith.constant 8 : i32
    %85 = arith.muli %c2_i32, %c8_i32_34 : i32
    %86 = tpu.assume_multiple %85, 8 : i32
    %87 = arith.index_cast %86 : i32 to index
    %c0_35 = arith.constant 0 : index
    %88 = vector.load %arg19[%87, %c0_35] : memref<64x512xf32, #tpu.memory_space<vmem>>, vector<8x512xf32>
    %cst_36 = arith.constant dense<0.000000e+00> : vector<8x512xf32>
    %89 = tpu.matmul %82, %6, %cst_36 {dimension_numbers = #tpu.dot_dimension_numbers<[1], [0], [0], [1], [0, 0, 1, 1], [], []>} : vector<8x128xf32>, vector<128x512xf32>, vector<8x512xf32> -> vector<8x512xf32>
    %90 = arith.addf %88, %89 : vector<8x512xf32>
    %91 = vector.extract_strided_slice %90 {offsets = [0, 0], sizes = [8, 128], strides = [1, 1]} : vector<8x512xf32> to vector<8x128xf32>
    %92 = arith.negf %91 : vector<8x128xf32>
    %93 = math.exp %92 : vector<8x128xf32>
    %cst_37 = arith.constant 1.000000e+00 : f32
    %94 = vector.broadcast %cst_37 : f32 to vector<8x128xf32>
    %95 = arith.addf %94, %93 : vector<8x128xf32>
    %96 = arith.divf %94, %95 : vector<8x128xf32>
    %97 = vector.extract_strided_slice %90 {offsets = [0, 128], sizes = [8, 128], strides = [1, 1]} : vector<8x512xf32> to vector<8x128xf32>
    %98 = arith.negf %97 : vector<8x128xf32>
    %99 = math.exp %98 : vector<8x128xf32>
    %cst_38 = arith.constant 1.000000e+00 : f32
    %100 = vector.broadcast %cst_38 : f32 to vector<8x128xf32>
    %101 = arith.addf %100, %99 : vector<8x128xf32>
    %102 = arith.divf %100, %101 : vector<8x128xf32>
    %103 = vector.extract_strided_slice %90 {offsets = [0, 256], sizes = [8, 128], strides = [1, 1]} : vector<8x512xf32> to vector<8x128xf32>
    %104 = math.tanh %103 : vector<8x128xf32>
    %105 = vector.extract_strided_slice %90 {offsets = [0, 384], sizes = [8, 128], strides = [1, 1]} : vector<8x512xf32> to vector<8x128xf32>
    %106 = arith.negf %105 : vector<8x128xf32>
    %107 = math.exp %106 : vector<8x128xf32>
    %cst_39 = arith.constant 1.000000e+00 : f32
    %108 = vector.broadcast %cst_39 : f32 to vector<8x128xf32>
    %109 = arith.addf %108, %107 : vector<8x128xf32>
    %110 = arith.divf %108, %109 : vector<8x128xf32>
    %111 = arith.mulf %102, %80 : vector<8x128xf32>
    %112 = arith.mulf %96, %104 : vector<8x128xf32>
    %113 = arith.addf %111, %112 : vector<8x128xf32>
    %114 = math.tanh %113 : vector<8x128xf32>
    %115 = arith.mulf %110, %114 : vector<8x128xf32>
    %116 = arith.extui %14 : i1 to i32
    %c0_i32_40 = arith.constant 0 : i32
    %117 = arith.cmpi ne, %116, %c0_i32_40 : i32
    scf.if %117 {
      %292 = arith.index_cast %86 : i32 to index
      %c0_85 = arith.constant 0 : index
      %293 = vector.load %arg18[%292, %c0_85] : memref<64x128xf32, #tpu.memory_space<vmem>>, vector<8x128xf32>
      tpu.vector_store %arg18[%292, %c0_85], %115 {strides = array<i32>} : memref<64x128xf32, #tpu.memory_space<vmem>>, vector<8x128xf32>,
    } else {
    }
    %c3_i32 = arith.constant 3 : i32
    %c8_i32_41 = arith.constant 8 : i32
    %118 = arith.muli %c3_i32, %c8_i32_41 : i32
    %119 = tpu.assume_multiple %118, 8 : i32
    %120 = arith.index_cast %119 : i32 to index
    %c0_42 = arith.constant 0 : index
    %121 = vector.load %arg19[%120, %c0_42] : memref<64x512xf32, #tpu.memory_space<vmem>>, vector<8x512xf32>
    %cst_43 = arith.constant dense<0.000000e+00> : vector<8x512xf32>
    %122 = tpu.matmul %115, %6, %cst_43 {dimension_numbers = #tpu.dot_dimension_numbers<[1], [0], [0], [1], [0, 0, 1, 1], [], []>} : vector<8x128xf32>, vector<128x512xf32>, vector<8x512xf32> -> vector<8x512xf32>
    %123 = arith.addf %121, %122 : vector<8x512xf32>
    %124 = vector.extract_strided_slice %123 {offsets = [0, 0], sizes = [8, 128], strides = [1, 1]} : vector<8x512xf32> to vector<8x128xf32>
    %125 = arith.negf %124 : vector<8x128xf32>
    %126 = math.exp %125 : vector<8x128xf32>
    %cst_44 = arith.constant 1.000000e+00 : f32
    %127 = vector.broadcast %cst_44 : f32 to vector<8x128xf32>
    %128 = arith.addf %127, %126 : vector<8x128xf32>
    %129 = arith.divf %127, %128 : vector<8x128xf32>
    %130 = vector.extract_strided_slice %123 {offsets = [0, 128], sizes = [8, 128], strides = [1, 1]} : vector<8x512xf32> to vector<8x128xf32>
    %131 = arith.negf %130 : vector<8x128xf32>
    %132 = math.exp %131 : vector<8x128xf32>
    %cst_45 = arith.constant 1.000000e+00 : f32
    %133 = vector.broadcast %cst_45 : f32 to vector<8x128xf32>
    %134 = arith.addf %133, %132 : vector<8x128xf32>
    %135 = arith.divf %133, %134 : vector<8x128xf32>
    %136 = vector.extract_strided_slice %123 {offsets = [0, 256], sizes = [8, 128], strides = [1, 1]} : vector<8x512xf32> to vector<8x128xf32>
    %137 = math.tanh %136 : vector<8x128xf32>
    %138 = vector.extract_strided_slice %123 {offsets = [0, 384], sizes = [8, 128], strides = [1, 1]} : vector<8x512xf32> to vector<8x128xf32>
    %139 = arith.negf %138 : vector<8x128xf32>
    %140 = math.exp %139 : vector<8x128xf32>
    %cst_46 = arith.constant 1.000000e+00 : f32
    %141 = vector.broadcast %cst_46 : f32 to vector<8x128xf32>
    %142 = arith.addf %141, %140 : vector<8x128xf32>
    %143 = arith.divf %141, %142 : vector<8x128xf32>
    %144 = arith.mulf %135, %113 : vector<8x128xf32>
    %145 = arith.mulf %129, %137 : vector<8x128xf32>
    %146 = arith.addf %144, %145 : vector<8x128xf32>
    %147 = math.tanh %146 : vector<8x128xf32>
    %148 = arith.mulf %143, %147 : vector<8x128xf32>
    %149 = arith.extui %14 : i1 to i32
    %c0_i32_47 = arith.constant 0 : i32
    %150 = arith.cmpi ne, %149, %c0_i32_47 : i32
    scf.if %150 {
      %292 = arith.index_cast %119 : i32 to index
      %c0_85 = arith.constant 0 : index
      %293 = vector.load %arg18[%292, %c0_85] : memref<64x128xf32, #tpu.memory_space<vmem>>, vector<8x128xf32>
      tpu.vector_store %arg18[%292, %c0_85], %148 {strides = array<i32>} : memref<64x128xf32, #tpu.memory_space<vmem>>, vector<8x128xf32>,
    } else {
    }
    %c4_i32 = arith.constant 4 : i32
    %c8_i32_48 = arith.constant 8 : i32
    %151 = arith.muli %c4_i32, %c8_i32_48 : i32
    %152 = tpu.assume_multiple %151, 8 : i32
    %153 = arith.index_cast %152 : i32 to index
    %c0_49 = arith.constant 0 : index
    %154 = vector.load %arg19[%153, %c0_49] : memref<64x512xf32, #tpu.memory_space<vmem>>, vector<8x512xf32>
    %cst_50 = arith.constant dense<0.000000e+00> : vector<8x512xf32>
    %155 = tpu.matmul %148, %6, %cst_50 {dimension_numbers = #tpu.dot_dimension_numbers<[1], [0], [0], [1], [0, 0, 1, 1], [], []>} : vector<8x128xf32>, vector<128x512xf32>, vector<8x512xf32> -> vector<8x512xf32>
    %156 = arith.addf %154, %155 : vector<8x512xf32>
    %157 = vector.extract_strided_slice %156 {offsets = [0, 0], sizes = [8, 128], strides = [1, 1]} : vector<8x512xf32> to vector<8x128xf32>
    %158 = arith.negf %157 : vector<8x128xf32>
    %159 = math.exp %158 : vector<8x128xf32>
    %cst_51 = arith.constant 1.000000e+00 : f32
    %160 = vector.broadcast %cst_51 : f32 to vector<8x128xf32>
    %161 = arith.addf %160, %159 : vector<8x128xf32>
    %162 = arith.divf %160, %161 : vector<8x128xf32>
    %163 = vector.extract_strided_slice %156 {offsets = [0, 128], sizes = [8, 128], strides = [1, 1]} : vector<8x512xf32> to vector<8x128xf32>
    %164 = arith.negf %163 : vector<8x128xf32>
    %165 = math.exp %164 : vector<8x128xf32>
    %cst_52 = arith.constant 1.000000e+00 : f32
    %166 = vector.broadcast %cst_52 : f32 to vector<8x128xf32>
    %167 = arith.addf %166, %165 : vector<8x128xf32>
    %168 = arith.divf %166, %167 : vector<8x128xf32>
    %169 = vector.extract_strided_slice %156 {offsets = [0, 256], sizes = [8, 128], strides = [1, 1]} : vector<8x512xf32> to vector<8x128xf32>
    %170 = math.tanh %169 : vector<8x128xf32>
    %171 = vector.extract_strided_slice %156 {offsets = [0, 384], sizes = [8, 128], strides = [1, 1]} : vector<8x512xf32> to vector<8x128xf32>
    %172 = arith.negf %171 : vector<8x128xf32>
    %173 = math.exp %172 : vector<8x128xf32>
    %cst_53 = arith.constant 1.000000e+00 : f32
    %174 = vector.broadcast %cst_53 : f32 to vector<8x128xf32>
    %175 = arith.addf %174, %173 : vector<8x128xf32>
    %176 = arith.divf %174, %175 : vector<8x128xf32>
    %177 = arith.mulf %168, %146 : vector<8x128xf32>
    %178 = arith.mulf %162, %170 : vector<8x128xf32>
    %179 = arith.addf %177, %178 : vector<8x128xf32>
    %180 = math.tanh %179 : vector<8x128xf32>
    %181 = arith.mulf %176, %180 : vector<8x128xf32>
    %182 = arith.extui %14 : i1 to i32
    %c0_i32_54 = arith.constant 0 : i32
    %183 = arith.cmpi ne, %182, %c0_i32_54 : i32
    scf.if %183 {
      %292 = arith.index_cast %152 : i32 to index
      %c0_85 = arith.constant 0 : index
      %293 = vector.load %arg18[%292, %c0_85] : memref<64x128xf32, #tpu.memory_space<vmem>>, vector<8x128xf32>
      tpu.vector_store %arg18[%292, %c0_85], %181 {strides = array<i32>} : memref<64x128xf32, #tpu.memory_space<vmem>>, vector<8x128xf32>,
    } else {
    }
    %c5_i32 = arith.constant 5 : i32
    %c8_i32_55 = arith.constant 8 : i32
    %184 = arith.muli %c5_i32, %c8_i32_55 : i32
    %185 = tpu.assume_multiple %184, 8 : i32
    %186 = arith.index_cast %185 : i32 to index
    %c0_56 = arith.constant 0 : index
    %187 = vector.load %arg19[%186, %c0_56] : memref<64x512xf32, #tpu.memory_space<vmem>>, vector<8x512xf32>
    %cst_57 = arith.constant dense<0.000000e+00> : vector<8x512xf32>
    %188 = tpu.matmul %181, %6, %cst_57 {dimension_numbers = #tpu.dot_dimension_numbers<[1], [0], [0], [1], [0, 0, 1, 1], [], []>} : vector<8x128xf32>, vector<128x512xf32>, vector<8x512xf32> -> vector<8x512xf32>
    %189 = arith.addf %187, %188 : vector<8x512xf32>
    %190 = vector.extract_strided_slice %189 {offsets = [0, 0], sizes = [8, 128], strides = [1, 1]} : vector<8x512xf32> to vector<8x128xf32>
    %191 = arith.negf %190 : vector<8x128xf32>
    %192 = math.exp %191 : vector<8x128xf32>
    %cst_58 = arith.constant 1.000000e+00 : f32
    %193 = vector.broadcast %cst_58 : f32 to vector<8x128xf32>
    %194 = arith.addf %193, %192 : vector<8x128xf32>
    %195 = arith.divf %193, %194 : vector<8x128xf32>
    %196 = vector.extract_strided_slice %189 {offsets = [0, 128], sizes = [8, 128], strides = [1, 1]} : vector<8x512xf32> to vector<8x128xf32>
    %197 = arith.negf %196 : vector<8x128xf32>
    %198 = math.exp %197 : vector<8x128xf32>
    %cst_59 = arith.constant 1.000000e+00 : f32
    %199 = vector.broadcast %cst_59 : f32 to vector<8x128xf32>
    %200 = arith.addf %199, %198 : vector<8x128xf32>
    %201 = arith.divf %199, %200 : vector<8x128xf32>
    %202 = vector.extract_strided_slice %189 {offsets = [0, 256], sizes = [8, 128], strides = [1, 1]} : vector<8x512xf32> to vector<8x128xf32>
    %203 = math.tanh %202 : vector<8x128xf32>
    %204 = vector.extract_strided_slice %189 {offsets = [0, 384], sizes = [8, 128], strides = [1, 1]} : vector<8x512xf32> to vector<8x128xf32>
    %205 = arith.negf %204 : vector<8x128xf32>
    %206 = math.exp %205 : vector<8x128xf32>
    %cst_60 = arith.constant 1.000000e+00 : f32
    %207 = vector.broadcast %cst_60 : f32 to vector<8x128xf32>
    %208 = arith.addf %207, %206 : vector<8x128xf32>
    %209 = arith.divf %207, %208 : vector<8x128xf32>
    %210 = arith.mulf %201, %179 : vector<8x128xf32>
    %211 = arith.mulf %195, %203 : vector<8x128xf32>
    %212 = arith.addf %210, %211 : vector<8x128xf32>
    %213 = math.tanh %212 : vector<8x128xf32>
    %214 = arith.mulf %209, %213 : vector<8x128xf32>
    %215 = arith.extui %14 : i1 to i32
    %c0_i32_61 = arith.constant 0 : i32
    %216 = arith.cmpi ne, %215, %c0_i32_61 : i32
    scf.if %216 {
      %292 = arith.index_cast %185 : i32 to index
      %c0_85 = arith.constant 0 : index
      %293 = vector.load %arg18[%292, %c0_85] : memref<64x128xf32, #tpu.memory_space<vmem>>, vector<8x128xf32>
      tpu.vector_store %arg18[%292, %c0_85], %214 {strides = array<i32>} : memref<64x128xf32, #tpu.memory_space<vmem>>, vector<8x128xf32>,
    } else {
    }
    %c6_i32 = arith.constant 6 : i32
    %c8_i32_62 = arith.constant 8 : i32
    %217 = arith.muli %c6_i32, %c8_i32_62 : i32
    %218 = tpu.assume_multiple %217, 8 : i32
    %219 = arith.index_cast %218 : i32 to index
    %c0_63 = arith.constant 0 : index
    %220 = vector.load %arg19[%219, %c0_63] : memref<64x512xf32, #tpu.memory_space<vmem>>, vector<8x512xf32>
    %cst_64 = arith.constant dense<0.000000e+00> : vector<8x512xf32>
    %221 = tpu.matmul %214, %6, %cst_64 {dimension_numbers = #tpu.dot_dimension_numbers<[1], [0], [0], [1], [0, 0, 1, 1], [], []>} : vector<8x128xf32>, vector<128x512xf32>, vector<8x512xf32> -> vector<8x512xf32>
    %222 = arith.addf %220, %221 : vector<8x512xf32>
    %223 = vector.extract_strided_slice %222 {offsets = [0, 0], sizes = [8, 128], strides = [1, 1]} : vector<8x512xf32> to vector<8x128xf32>
    %224 = arith.negf %223 : vector<8x128xf32>
    %225 = math.exp %224 : vector<8x128xf32>
    %cst_65 = arith.constant 1.000000e+00 : f32
    %226 = vector.broadcast %cst_65 : f32 to vector<8x128xf32>
    %227 = arith.addf %226, %225 : vector<8x128xf32>
    %228 = arith.divf %226, %227 : vector<8x128xf32>
    %229 = vector.extract_strided_slice %222 {offsets = [0, 128], sizes = [8, 128], strides = [1, 1]} : vector<8x512xf32> to vector<8x128xf32>
    %230 = arith.negf %229 : vector<8x128xf32>
    %231 = math.exp %230 : vector<8x128xf32>
    %cst_66 = arith.constant 1.000000e+00 : f32
    %232 = vector.broadcast %cst_66 : f32 to vector<8x128xf32>
    %233 = arith.addf %232, %231 : vector<8x128xf32>
    %234 = arith.divf %232, %233 : vector<8x128xf32>
    %235 = vector.extract_strided_slice %222 {offsets = [0, 256], sizes = [8, 128], strides = [1, 1]} : vector<8x512xf32> to vector<8x128xf32>
    %236 = math.tanh %235 : vector<8x128xf32>
    %237 = vector.extract_strided_slice %222 {offsets = [0, 384], sizes = [8, 128], strides = [1, 1]} : vector<8x512xf32> to vector<8x128xf32>
    %238 = arith.negf %237 : vector<8x128xf32>
    %239 = math.exp %238 : vector<8x128xf32>
    %cst_67 = arith.constant 1.000000e+00 : f32
    %240 = vector.broadcast %cst_67 : f32 to vector<8x128xf32>
    %241 = arith.addf %240, %239 : vector<8x128xf32>
    %242 = arith.divf %240, %241 : vector<8x128xf32>
    %243 = arith.mulf %234, %212 : vector<8x128xf32>
    %244 = arith.mulf %228, %236 : vector<8x128xf32>
    %245 = arith.addf %243, %244 : vector<8x128xf32>
    %246 = math.tanh %245 : vector<8x128xf32>
    %247 = arith.mulf %242, %246 : vector<8x128xf32>
    %248 = arith.extui %14 : i1 to i32
    %c0_i32_68 = arith.constant 0 : i32
    %249 = arith.cmpi ne, %248, %c0_i32_68 : i32
    scf.if %249 {
      %292 = arith.index_cast %218 : i32 to index
      %c0_85 = arith.constant 0 : index
      %293 = vector.load %arg18[%292, %c0_85] : memref<64x128xf32, #tpu.memory_space<vmem>>, vector<8x128xf32>
      tpu.vector_store %arg18[%292, %c0_85], %247 {strides = array<i32>} : memref<64x128xf32, #tpu.memory_space<vmem>>, vector<8x128xf32>,
    } else {
    }
    %c7_i32 = arith.constant 7 : i32
    %c8_i32_69 = arith.constant 8 : i32
    %250 = arith.muli %c7_i32, %c8_i32_69 : i32
    %251 = tpu.assume_multiple %250, 8 : i32
    %252 = arith.index_cast %251 : i32 to index
    %c0_70 = arith.constant 0 : index
    %253 = vector.load %arg19[%252, %c0_70] : memref<64x512xf32, #tpu.memory_space<vmem>>, vector<8x512xf32>
    %cst_71 = arith.constant dense<0.000000e+00> : vector<8x512xf32>
    %254 = tpu.matmul %247, %6, %cst_71 {dimension_numbers = #tpu.dot_dimension_numbers<[1], [0], [0], [1], [0, 0, 1, 1], [], []>} : vector<8x128xf32>, vector<128x512xf32>, vector<8x512xf32> -> vector<8x512xf32>
    %255 = arith.addf %253, %254 : vector<8x512xf32>
    %256 = vector.extract_strided_slice %255 {offsets = [0, 0], sizes = [8, 128], strides = [1, 1]} : vector<8x512xf32> to vector<8x128xf32>
    %257 = arith.negf %256 : vector<8x128xf32>
    %258 = math.exp %257 : vector<8x128xf32>
    %cst_72 = arith.constant 1.000000e+00 : f32
    %259 = vector.broadcast %cst_72 : f32 to vector<8x128xf32>
    %260 = arith.addf %259, %258 : vector<8x128xf32>
    %261 = arith.divf %259, %260 : vector<8x128xf32>
    %262 = vector.extract_strided_slice %255 {offsets = [0, 128], sizes = [8, 128], strides = [1, 1]} : vector<8x512xf32> to vector<8x128xf32>
    %263 = arith.negf %262 : vector<8x128xf32>
    %264 = math.exp %263 : vector<8x128xf32>
    %cst_73 = arith.constant 1.000000e+00 : f32
    %265 = vector.broadcast %cst_73 : f32 to vector<8x128xf32>
    %266 = arith.addf %265, %264 : vector<8x128xf32>
    %267 = arith.divf %265, %266 : vector<8x128xf32>
    %268 = vector.extract_strided_slice %255 {offsets = [0, 256], sizes = [8, 128], strides = [1, 1]} : vector<8x512xf32> to vector<8x128xf32>
    %269 = math.tanh %268 : vector<8x128xf32>
    %270 = vector.extract_strided_slice %255 {offsets = [0, 384], sizes = [8, 128], strides = [1, 1]} : vector<8x512xf32> to vector<8x128xf32>
    %271 = arith.negf %270 : vector<8x128xf32>
    %272 = math.exp %271 : vector<8x128xf32>
    %cst_74 = arith.constant 1.000000e+00 : f32
    %273 = vector.broadcast %cst_74 : f32 to vector<8x128xf32>
    %274 = arith.addf %273, %272 : vector<8x128xf32>
    %275 = arith.divf %273, %274 : vector<8x128xf32>
    %276 = arith.mulf %267, %245 : vector<8x128xf32>
    %277 = arith.mulf %261, %269 : vector<8x128xf32>
    %278 = arith.addf %276, %277 : vector<8x128xf32>
    %279 = math.tanh %278 : vector<8x128xf32>
    %280 = arith.mulf %275, %279 : vector<8x128xf32>
    %281 = arith.extui %14 : i1 to i32
    %c0_i32_75 = arith.constant 0 : i32
    %282 = arith.cmpi ne, %281, %c0_i32_75 : i32
    scf.if %282 {
      %292 = arith.index_cast %251 : i32 to index
      %c0_85 = arith.constant 0 : index
      %293 = vector.load %arg18[%292, %c0_85] : memref<64x128xf32, #tpu.memory_space<vmem>>, vector<8x128xf32>
      tpu.vector_store %arg18[%292, %c0_85], %280 {strides = array<i32>} : memref<64x128xf32, #tpu.memory_space<vmem>>, vector<8x128xf32>,
    } else {
    }
    %c8_i32_76 = arith.constant 8 : i32
    %c0_77 = arith.constant 0 : index
    %c0_78 = arith.constant 0 : index
    %c0_79 = arith.constant 0 : index
    %283 = vector.load %arg15[%c0_77, %c0_78, %c0_79] : memref<1x8x128xf32, #tpu.memory_space<vmem>>, vector<1x8x128xf32>
    %284 = vector.shape_cast %283 : vector<1x8x128xf32> to vector<8x128xf32>
    %285 = vector.shape_cast %280 : vector<8x128xf32> to vector<1x8x128xf32>
    tpu.vector_store %arg15[%c0_77, %c0_78, %c0_79], %285 {strides = array<i32>} : memref<1x8x128xf32, #tpu.memory_space<vmem>>, vector<1x8x128xf32>,
    %c0_80 = arith.constant 0 : index
    %c0_81 = arith.constant 0 : index
    %c0_82 = arith.constant 0 : index
    %286 = vector.load %arg16[%c0_80, %c0_81, %c0_82] : memref<1x8x128xf32, #tpu.memory_space<vmem>>, vector<1x8x128xf32>
    %287 = vector.shape_cast %286 : vector<1x8x128xf32> to vector<8x128xf32>
    %288 = vector.shape_cast %278 : vector<8x128xf32> to vector<1x8x128xf32>
    tpu.vector_store %arg16[%c0_80, %c0_81, %c0_82], %288 {strides = array<i32>} : memref<1x8x128xf32, #tpu.memory_space<vmem>>, vector<1x8x128xf32>,
    %c1_i32_83 = arith.constant 1 : i32
    %289 = arith.cmpi eq, %arg0, %c1_i32_83 : i32
    %290 = arith.extui %289 : i1 to i32
    %c0_i32_84 = arith.constant 0 : i32
    %291 = arith.cmpi ne, %290, %c0_i32_84 : i32
    scf.if %291 {
      %c0_85 = arith.constant 0 : index
      %c0_86 = arith.constant 0 : index
      %292 = vector.load %arg13[%c0_85, %c0_86] : memref<128x128xf32, #tpu.memory_space<vmem>>, vector<128x128xf32>
      %cst_87 = arith.constant dense<0.000000e+00> : vector<8x128xf32>
      %293 = tpu.matmul %280, %292, %cst_87 {dimension_numbers = #tpu.dot_dimension_numbers<[1], [0], [0], [1], [0, 0, 1, 1], [], []>} : vector<8x128xf32>, vector<128x128xf32>, vector<8x128xf32> -> vector<8x128xf32>
      %c0_88 = arith.constant 0 : index
      %c0_89 = arith.constant 0 : index
      %294 = vector.load %arg14[%c0_88, %c0_89] : memref<1x128xf32, #tpu.memory_space<vmem>>, vector<1x128xf32>
      %295 = vector.broadcast %294 : vector<1x128xf32> to vector<8x128xf32>
      %296 = arith.addf %293, %295 : vector<8x128xf32>
      %c0_90 = arith.constant 0 : index
      %c0_91 = arith.constant 0 : index
      %297 = vector.load %arg17[%c0_90, %c0_91] : memref<8x128xf32, #tpu.memory_space<vmem>>, vector<8x128xf32>
      tpu.vector_store %arg17[%c0_90, %c0_91], %296 {strides = array<i32>} : memref<8x128xf32, #tpu.memory_space<vmem>>, vector<8x128xf32>,
    } else {
    }
    return
  }
  func.func @transform_0(%arg0: i32) -> (i32, i32) {
    %c0_i32 = arith.constant 0 : i32
    %c0_i32_0 = arith.constant 0 : i32
    %c0_i32_1 = arith.constant 0 : i32
    return %c0_i32, %c0_i32_0 : i32, i32
  }
  func.func @transform_1(%arg0: i32) -> (i32, i32) {
    %c0_i32 = arith.constant 0 : i32
    %c0_i32_0 = arith.constant 0 : i32
    %c0_i32_1 = arith.constant 0 : i32
    return %c0_i32, %c0_i32_0 : i32, i32
  }
  func.func @transform_2(%arg0: i32) -> (i32, i32) {
    %c0_i32 = arith.constant 0 : i32
    %c0_i32_0 = arith.constant 0 : i32
    %c0_i32_1 = arith.constant 0 : i32
    return %c0_i32, %c0_i32_0 : i32, i32
  }
  func.func @transform_3(%arg0: i32) -> (i32, i32) {
    %c0_i32 = arith.constant 0 : i32
    %c0_i32_0 = arith.constant 0 : i32
    %c0_i32_1 = arith.constant 0 : i32
    return %c0_i32, %c0_i32_0 : i32, i32
  }
  func.func @transform_4(%arg0: i32) -> (i32, i32) {
    %c0_i32 = arith.constant 0 : i32
    %c0_i32_0 = arith.constant 0 : i32
    %c0_i32_1 = arith.constant 0 : i32
    return %c0_i32, %c0_i32_0 : i32, i32
  }
  func.func @transform_5(%arg0: i32) -> (i32, i32) {
    %c0_i32 = arith.constant 0 : i32
    %c0_i32_0 = arith.constant 0 : i32
    %c0_i32_1 = arith.constant 0 : i32
    return %c0_i32, %c0_i32_0 : i32, i32
  }
  func.func @transform_6(%arg0: i32) -> (i32, i32) {
    %c0_i32 = arith.constant 0 : i32
    %c0_i32_0 = arith.constant 0 : i32
    %c0_i32_1 = arith.constant 0 : i32
    return %c0_i32, %c0_i32_0 : i32, i32
  }
  func.func @transform_7(%arg0: i32) -> (i32, i32, i32) {
    %c0_i32 = arith.constant 0 : i32
    %c0_i32_0 = arith.constant 0 : i32
    %c0_i32_1 = arith.constant 0 : i32
    return %arg0, %c0_i32, %c0_i32_0 : i32, i32, i32
  }
  func.func @transform_8(%arg0: i32) -> (i32, i32, i32) {
    %c0_i32 = arith.constant 0 : i32
    %c0_i32_0 = arith.constant 0 : i32
    %c0_i32_1 = arith.constant 0 : i32
    return %arg0, %c0_i32, %c0_i32_0 : i32, i32, i32
  }
  func.func @transform_9(%arg0: i32) -> (i32, i32, i32) {
    %c0_i32 = arith.constant 0 : i32
    %c0_i32_0 = arith.constant 0 : i32
    %c0_i32_1 = arith.constant 0 : i32
    return %arg0, %c0_i32, %c0_i32_0 : i32, i32, i32
  }
  func.func @transform_10(%arg0: i32) -> (i32, i32, i32) {
    %c0_i32 = arith.constant 0 : i32
    %c0_i32_0 = arith.constant 0 : i32
    %c0_i32_1 = arith.constant 0 : i32
    return %arg0, %c0_i32, %c0_i32_0 : i32, i32, i32
  }
  func.func @transform_11(%arg0: i32) -> (i32, i32, i32) {
    %c0_i32 = arith.constant 0 : i32
    %c0_i32_0 = arith.constant 0 : i32
    %c0_i32_1 = arith.constant 0 : i32
    return %arg0, %c0_i32, %c0_i32_0 : i32, i32, i32
  }
  func.func @transform_12(%arg0: i32) -> (i32, i32) {
    %c0_i32 = arith.constant 0 : i32
    %c0_i32_0 = arith.constant 0 : i32
    %c0_i32_1 = arith.constant 0 : i32
    return %c0_i32, %c0_i32_0 : i32, i32
  }
  func.func @transform_13(%arg0: i32) -> (i32, i32) {
    %c0_i32 = arith.constant 0 : i32
    %c0_i32_0 = arith.constant 0 : i32
    %c0_i32_1 = arith.constant 0 : i32
    return %c0_i32, %c0_i32_0 : i32, i32
  }
  func.func @transform_14(%arg0: i32) -> (i32, i32, i32) {
    %c0_i32 = arith.constant 0 : i32
    %c0_i32_0 = arith.constant 0 : i32
    %c0_i32_1 = arith.constant 0 : i32
    return %arg0, %c0_i32, %c0_i32_0 : i32, i32, i32
  }
  func.func @transform_15(%arg0: i32) -> (i32, i32, i32) {
    %c0_i32 = arith.constant 0 : i32
    %c0_i32_0 = arith.constant 0 : i32
    %c0_i32_1 = arith.constant 0 : i32
    return %arg0, %c0_i32, %c0_i32_0 : i32, i32, i32
  }
  func.func @transform_16(%arg0: i32) -> (i32, i32) {
    %c0_i32 = arith.constant 0 : i32
    %c0_i32_0 = arith.constant 0 : i32
    %c0_i32_1 = arith.constant 0 : i32
    return %c0_i32, %c0_i32_0 : i32, i32
  }
}

</mosaic_0001>

<bundles_post_ra>
// kernel: tpu_custom_call.1
= control target key start
LH: loop header
LB: loop body
LE: loop exit
PB: predicated region body
PF: predicated region fallthrough
CT: control target
= control target key end

     0   :  { %s6019_s0 = inlined_call_operand.vmem [shape: f32[64,4], index: 0, kind: input, shape index: {}]   ;;  %s6020_s1 = inlined_call_operand.vmem [shape: f32[4,128], index: 1, kind: input, shape index: {}]   ;;  %s6021_s2 = inlined_call_operand.vmem [shape: f32[1,128], index: 2, kind: input, shape index: {}]   ;;  %s6022_s3 = inlined_call_operand.hbm [shape: f32[128,128], index: 3, kind: input, shape index: {}]   ;;  %s6023_s4 = inlined_call_operand.vmem [shape: f32[1,128], index: 4, kind: input, shape index: {}]   ;;  %s6024_s5 = inlined_call_operand.hbm [shape: f32[128,128], index: 5, kind: input, shape index: {}]   ;;  %s6025_s6 = inlined_call_operand.vmem [shape: f32[1,128], index: 6, kind: input, shape index: {}]   ;;  %s6026_s7 = inlined_call_operand.hbm [shape: f32[2,128,512], index: 7, kind: input, shape index: {}]   ;;  %s6027_s8 = inlined_call_operand.hbm [shape: f32[2,128,512], index: 8, kind: input, shape index: {}]   ;;  %s6028_s9 = inlined_call_operand.vmem [shape: f32[2,1,512], index: 9, kind: input, shape index: {}]   ;;  %s6029_s10 = inlined_call_operand.vmem [shape: f32[2,8,128], index: 10, kind: input, shape index: {}]   ;;  %s6030_s11 = inlined_call_operand.vmem [shape: f32[2,8,128], index: 11, kind: input, shape index: {}]   ;;  %s6031_s12 = inlined_call_operand.hbm [shape: f32[128,128], index: 12, kind: input, shape index: {}]   ;;  %s6032_s13 = inlined_call_operand.vmem [shape: f32[1,128], index: 13, kind: input, shape index: {}]   ;;  %s6033_s14 = inlined_call_operand.hbm [shape: f32[2,8,128], index: 14, kind: output, shape index: {0}]   ;;  %s6034_s15 = inlined_call_operand.hbm [shape: f32[2,8,128], index: 15, kind: output, shape index: {1}]   ;;  %s6035_s16 = inlined_call_operand.hbm [shape: f32[8,128], index: 16, kind: output, shape index: {2}]  }
   0x1   :  { %6059 = sst [smem:[#allocation29_spill]] %s6019_s0 }
   0x2   :  { %6060 = sst [smem:[#allocation30_spill]] %s6020_s1 }
   0x3   :  { %6061 = sst [smem:[#allocation31_spill]] %s6021_s2 }
   0x4   :  { %6062 = sst [smem:[#allocation32_spill]] %s6022_s3 }
   0x5   :  { %6063 = sst [smem:[#allocation33_spill]] %s6023_s4 }
   0x6   :  { %6064 = sst [smem:[#allocation34_spill]] %s6024_s5 }
   0x7   :  { %6065 = sst [smem:[#allocation35_spill]] %s6025_s6 }
   0x8   :  { %6066 = sst [smem:[#allocation36_spill]] %s6026_s7 }
   0x9   :  { %6067 = sst [smem:[#allocation37_spill]] %s6030_s11 }
   0xa   :  { %6068 = sst [smem:[#allocation38_spill]] %s6032_s13 }
   0xb   :  { %6069 = sst [smem:[#allocation39_spill]] %s6033_s14 }
   0xc   :  { %6070 = sst [smem:[#allocation40_spill]] %s6034_s15 }
   0xd   :  { %6071 = sst [smem:[#allocation41_spill]] %s6035_s16 }
   0xe   :  { %22 = vsyncpa [#allocation5], 0 }
   0xf   :  { %23 = vsyncpa [#allocation8], 0 }
  0x10   :  { %24 = vsyncpa [#allocation6], 0 }
  0x11   :  { %26 = vsyncpa [#allocation6 + $0x1], 0 }
  0x12   :  { %27 = vsyncpa [#allocation14], 0 }
  0x13   :  { %29 = vsyncpa [#allocation14 + $0x1], 0  ;;  %s5031_s21 = smov 0   ;;  %s5033_s22 = smov 0  }
  0x14   :  { %s5035_s23 = smov 0   ;;  %s5037_s24 = smov 0  }
  0x15 LB: > { %6072 = sst [smem:[#allocation23_spill]] %s4916_s21  ;;  %s5052_s25 = sadd.s32 4294967295, %s4928_s24   ;;  %s4928_s24 = sphi %s5037_s24, %s6128_s24   ;;  %s4924_s23 = sphi %s5035_s23, %s6130_s23   ;;  %s4920_s22 = sphi %s5033_s22, %s6132_s22   ;;  %s4916_s21 = sphi %s5031_s21, %s6131_s21  }
  0x16   : > { %6073 = sst [smem:[#allocation24_spill]] %s4924_s23  ;;  %s6037_s26 = sadd.s32 4294967294, %s4928_s24  }
  0x17   : > { %s5056_s27 = sadd.s32 1, %s4928_s24   ;;  %s189_s28 = sadd.s32 1, %s4924_s23 }
  0x18   : > { %6074 = sst [smem:[#allocation25_spill]] %s5056_s27  ;;  %s186_s29 = ssub.s32 %s4928_s24, %s5056_s27 }
  0x19   : > { %p196_p0 = scmp.ne.s32.totalorder %s4924_s23, %s4920_s22  ;;  %p187_p1 = scmp.eq.s32.totalorder %s186_s29, 0 }
  0x1a   : > { %p197_p2 = scmp.eq.s32.totalorder %s4928_s24, 0  ;;  %p202_p3 = scmp.ne.s32.totalorder %s4920_s22, %s4916_s21 }
  0x1b   : > { %p6048_p4 = scmp.eq.s32.totalorder %s5052_s25, 0  ;;  %p6047_p7 = scmp.eq.s32.totalorder %s5052_s25, 1 }
  0x1c   : > { %s5068_s30 = scalar_select %p187_p1, %s4924_s23, %s189_s28  }
  0x1d   : > { %p5070_p5 = por %p197_p2, %p196_p0  ;;  %p5076_p6 = por %p6048_p4, %p202_p3 }
  0x1e   : > { %6075 = sst [smem:[#allocation26_spill]] %s5068_s30  ;;  %p378_p8 = scmp.eq.s32.totalorder %s6037_s26, 1 }
  0x1f   : > { %s6076_s0 = scalar_select %p5070_p5, 1, 0 }
  0x20   : > { %s6077_s17 = scalar_select %p5076_p6, 1, 0 }
  0x21   : > { %p3332_p9 = scmp.ge.s32.totalorder %s4928_s24, 1  ;;  %p432_p10 = scmp.lt.s32.totalorder %s4928_s24, 3 }
  0x22   : > { %p5087_p11 = por %p6047_p7, %p196_p0  ;;  %p5091_p12 = por %p378_p8, %p202_p3 }
  0x23   : > { %p5095_p13 = pnand %p3332_p9, %p432_p10  ;;  %s4930_s28 = smov [#allocation4]  }
  0x24   : > { %s6078_s18 = scalar_select %p5087_p11, 1, 0 }
  0x25   : > { %s6080_s19 = scalar_select %p5091_p12, 1, 0 }
  0x26   : > { %6079 = sst [smem:[#allocation27_spill]] %s6078_s18  ;;  %p4438_p2 = pneg %p5095_p13 }
  0x27   : > { %6081 = sst [smem:[#allocation28_spill]] %s6080_s19  ;;  %s453_s29 = sshll.u32 %s4930_s28, 4  ;;  %s454_s29 = int_to_ptr.vmem [resolvable:$true] %s453_s29 }
  0x28   : > { %s6082_s20 = scalar_select %p5095_p13, 1, 0 }
  0x29   : > { %p5104_p0 = pnand %p4438_p2, %p6048_p4  ;;  %s4931_s30 = smov [#allocation7]  }
  0x2a   : > { %s469_s27 = sshll.u32 %s4931_s30, 4  ;;  %s6084_s3 = sld [smem:[#allocation32_spill]]  ;;  %s470_s27 = int_to_ptr.vmem [resolvable:$true] %s469_s27 }
  0x2b   : > { %s6083_s26 = scalar_select %p5104_p0, 1, 0 }
  0x2c   : > { %p5118_p10 = pneg %p5104_p0 }
  0x30   : > { %s4644_s16 = scalar_lea.hbm %s6084_s3, 2048 }
  0x31   : > { %p4645_p9 = scmp.ne.s32.totalorder %s6084_s3, %s4644_s16  ;;  %p4651_p7 = scmp.lt.u32.totalorder %s4644_s16, %s6084_s3 }
  0x33   : > { %p4647_p2 = pnand %p5118_p10, %p4645_p9 }
  0x35   : > { %p4648_p3 = pneg %p4647_p2 }
  0x37   : > { %p4653_p1 = pnand %p4651_p7, %p4648_p3 }
  0x39   : > { %4656 = shalt.err (!%p4653_p1)
}
  0x3a   : > { %s4657_s21 = scalar_lea.vmem %s454_s29, 2048  ;;  %p4665_p11 = scmp.lt.s32.totalorder %s454_s29, %s454_s29 }
  0x3b   : > { %p4658_p4 = scmp.ne.s32.totalorder %s454_s29, %s4657_s21  ;;  %p4666_p6 = scmp.lt.s32.totalorder %s4657_s21, %s4657_s21 }
  0x3d   : > { %p4660_p8 = pnand %p4658_p4, %p5118_p10  ;;  %p4667_p13 = por %p4666_p6, %p4665_p11 }
  0x3f   : > { %p4661_p12 = pneg %p4660_p8 }
  0x41   : > { %p4668_p5 = pnand %p4667_p13, %p4661_p12 }
  0x43   : > { %4671 = shalt.err (!%p4668_p5)
}
  0x44   : > { %s6053_s14 = smov 128   ;;  %s6054_s13 = smov 8  }
  0x45   : > { %4441 = dma.hbm_to_vmem [thread:$0]  (!%p5104_p0), %s6084_s3, 2048, %s454_s29, [#allocation5], %s6053_s14, %s6053_s14, %s6054_s13  }
  0x46   : > { %p6086_p4 = scmp.ne.s32.totalorder %s6076_s0, 0  ;;  %p6087_p7 = scmp.lt.s32.totalorder %s4928_s24, 2 }
  0x47   : > { %s6089_s5 = sld [smem:[#allocation34_spill]] }
  0x48   : > { %p5141_p1 = pnand %p6087_p7, %p6086_p4 }
  0x4a   : > { %s6088_s30 = scalar_select %p5141_p1, 1, 0 }
  0x4d   : > { %s4672_s21 = scalar_lea.hbm %s6089_s5, 2048 }
  0x4e   : > { %p4673_p5 = scmp.ne.s32.totalorder %s6089_s5, %s4672_s21  ;;  %p4679_p12 = scmp.lt.u32.totalorder %s4672_s21, %s6089_s5 }
  0x50   : > { %p4675_p6 = pnand %p4673_p5, %p5118_p10 }
  0x52   : > { %p4676_p11 = pneg %p4675_p6 }
  0x54   : > { %p4681_p13 = pnand %p4679_p12, %p4676_p11 }
  0x56   : > { %4684 = shalt.err (!%p4681_p13)
}
  0x57   : > { %s4685_s0 = scalar_lea.vmem %s470_s27, 2048  ;;  %p4693_p2 = scmp.lt.s32.totalorder %s470_s27, %s470_s27 }
  0x58   : > { %p4686_p3 = scmp.ne.s32.totalorder %s470_s27, %s4685_s0  ;;  %p4694_p4 = scmp.lt.s32.totalorder %s4685_s0, %s4685_s0 }
  0x5a   : > { %p4688_p8 = pnand %p4686_p3, %p5118_p10  ;;  %p4695_p7 = por %p4694_p4, %p4693_p2 }
  0x5c   : > { %p4689_p9 = pneg %p4688_p8 }
  0x5e   : > { %p4696_p1 = pnand %p4695_p7, %p4689_p9 }
  0x60   : > { %4699 = shalt.err (!%p4696_p1)
}
  0x61   : > { %4444 = dma.hbm_to_vmem [thread:$0]  (!%p5104_p0), %s6089_s5, 2048, %s470_s27, [#allocation8], %s6053_s14, %s6053_s14, %s6054_s13  }
  0x62   : > { %s502_s16 = sand.u32 1, %s4928_s24   ;;  %s504_s18 = sand.u32 1, %s4924_s23  }
  0x63   : > { %s5168_s19 = sshll.u32 %s504_s18, 9  ;;  %s6055_s21 = sshll.u32 %s4928_s24, 13 }
  0x64   : > { %s6090_s7 = sld [smem:[#allocation36_spill]]  ;;  %s506_s4 = scalar_lea.vmem [#allocation9], %s5168_s19 }
  0x65   : > { %s513_s6 = sshll.u32 %s506_s4, 4  ;;  %s5181_s27 = scalar_lea.sflag [#allocation5], %s502_s16  ;;  %s5179_s6 = int_to_ptr.vmem [resolvable:$true] %s513_s6 }
  0x66   : > { %p6091_p5 = scmp.ne.s32.totalorder %s6088_s30, 0 }
  0x68   : > { %p6058_p6 = pneg %p6091_p5 }
  0x6a   : > { %s5176_s0 = scalar_lea.hbm %s6090_s7, %s6055_s21  ;;  %s4705_s14 = scalar_lea.hbm %s6090_s7, 16384 }
  0x6b   : > { %s4700_s18 = scalar_lea.hbm %s5176_s0, 8192  ;;  %p4706_p13 = scmp.lt.u32.totalorder %s5176_s0, %s6090_s7 }
  0x6c   : > { %p4701_p1 = scmp.ne.s32.totalorder %s5176_s0, %s4700_s18  ;;  %p4707_p3 = scmp.lt.u32.totalorder %s4705_s14, %s4700_s18 }
  0x6d   : > { %p4709_p9 = scmp.lt.u32.totalorder %s4700_s18, %s5176_s0 }
  0x6e   : > { %p4703_p11 = pnand %p6058_p6, %p4701_p1  ;;  %p4708_p8 = por %p4707_p3, %p4706_p13 }
  0x70   : > { %p4704_p12 = pneg %p4703_p11  ;;  %p4710_p2 = por %p4709_p9, %p4708_p8 }
  0x72   : > { %p4711_p4 = pnand %p4710_p2, %p4704_p12 }
  0x74   : > { %4714 = shalt.err (!%p4711_p4)
}
  0x75   : > { %s4715_s16 = scalar_lea.vmem %s5179_s6, 8192  ;;  %s4934_s4 = smov [#allocation9]  }
  0x76   : > { %p4716_p7 = scmp.ne.s32.totalorder %s5179_s6, %s4715_s16  ;;  %s4720_s15 = sshll.u32 %s4934_s4, 4  ;;  %s4721_s15 = int_to_ptr.vmem [resolvable:$false] %s4720_s15 }
  0x77   : > { %s4722_s13 = scalar_lea.vmem %s4721_s15, 16384  ;;  %p4723_p0 = scmp.lt.s32.totalorder %s5179_s6, %s4721_s15 }
  0x78   : > { %p4718_p1 = pnand %p4716_p7, %p6058_p6  ;;  %p4724_p13 = scmp.lt.s32.totalorder %s4722_s13, %s4715_s16 }
  0x7a   : > { %p4719_p11 = pneg %p4718_p1  ;;  %p4725_p3 = por %p4724_p13, %p4723_p0 }
  0x7c   : > { %p4726_p8 = pnand %p4725_p3, %p4719_p11 }
  0x7e   : > { %4729 = shalt.err (!%p4726_p8)
}
  0x7f   : > { %s4935_s14 = smov 512   ;;  %s4936_s21 = smov 32  }
  0x80   : > { %4451 = dma.hbm_to_vmem [thread:$0]  (!%p6091_p5), %s5176_s0, 8192, %s5179_s6, %s5181_s27, %s4935_s14, %s4935_s14, %s4936_s21  }
  0x81   : > { %s4937_s18 = smov [#allocation11]   ;;  %s6092_s16 = sshll.u32 %s4928_s24, 13 }
  0x82   : > { %s485_s29 = sshll.u32 %s4937_s18, 4  ;;  %s5217_s13 = scalar_lea.hbm %s6027_s8, %s6092_s16  ;;  %s486_s29 = int_to_ptr.vmem [resolvable:$true] %s485_s29 }
  0x83   : > { %s527_s3 = scalar_lea.vmem [#allocation10], %s5168_s19  ;;  %s4730_s2 = scalar_lea.hbm %s6031_s12, 2048 }
  0x84   : > { %s534_s5 = sshll.u32 %s527_s3, 4  ;;  %p4731_p0 = scmp.ne.s32.totalorder %s6031_s12, %s4730_s2  ;;  %s5241_s5 = int_to_ptr.vmem [resolvable:$true] %s534_s5 }
  0x85   : > { %p4737_p2 = scmp.lt.u32.totalorder %s4730_s2, %s6031_s12 }
  0x86   : > { %p4733_p12 = pnand %p4731_p0, %p5118_p10 }
  0x88   : > { %p4734_p9 = pneg %p4733_p12 }
  0x8a   : > { %p4739_p4 = pnand %p4737_p2, %p4734_p9 }
  0x8c   : > { %4742 = shalt.err (!%p4739_p4)
}
  0x8d   : > { %s4743_s18 = scalar_lea.vmem %s486_s29, 2048  ;;  %p4751_p13 = scmp.lt.s32.totalorder %s486_s29, %s486_s29 }
  0x8e   : > { %p4744_p7 = scmp.ne.s32.totalorder %s486_s29, %s4743_s18  ;;  %p4752_p3 = scmp.lt.s32.totalorder %s4743_s18, %s4743_s18 }
  0x90   : > { %p4746_p1 = pnand %p4744_p7, %p5118_p10  ;;  %p4753_p8 = por %p4752_p3, %p4751_p13 }
  0x92   : > { %p4747_p11 = pneg %p4746_p1 }
  0x94   : > { %p4754_p6 = pnand %p4753_p8, %p4747_p11 }
  0x96   : > { %4757 = shalt.err (!%p4754_p6)
}
  0x97   : > { %p6093_p0 = scmp.ne.s32.totalorder %s6083_s26, 0  ;;  %s6094_s1 = smov 8  }
  0x98   : > { %s6095_s3 = smov 128   ;;  %s4758_s11 = scalar_lea.hbm %s5217_s13, 8192 }
  0x99   : > { %4447 = dma.hbm_to_vmem [thread:$0]  (!%p6093_p0), %s6031_s12, 2048, %s486_s29, [#allocation8], %s6095_s3, %s6095_s3, %s6094_s1  }
  0x9a   : > { %p4759_p10 = scmp.ne.s32.totalorder %s5217_s13, %s4758_s11  ;;  %p6096_p6 = pneg %p6091_p5 }
  0x9b   : > { %s4763_s28 = scalar_lea.hbm %s6027_s8, 16384  ;;  %p4764_p2 = scmp.lt.u32.totalorder %s5217_s13, %s6027_s8 }
  0x9c   : > { %p4761_p12 = pnand %p4759_p10, %p6096_p6  ;;  %p4765_p4 = scmp.lt.u32.totalorder %s4763_s28, %s4758_s11 }
  0x9d   : > { %p4767_p1 = scmp.lt.u32.totalorder %s4758_s11, %s5217_s13 }
  0x9e   : > { %p4762_p9 = pneg %p4761_p12  ;;  %p4766_p7 = por %p4765_p4, %p4764_p2 }
  0xa0   : > { %p4768_p11 = por %p4767_p1, %p4766_p7 }
  0xa2   : > { %p4769_p13 = pnand %p4768_p11, %p4762_p9 }
  0xa4   : > { %4772 = shalt.err (!%p4769_p13)
}
  0xa5   : > { %s4773_s29 = scalar_lea.vmem %s5241_s5, 8192  ;;  %p6097_p8 = pmov %p6096_p6 }
  0xa6   : > { %p4774_p3 = scmp.ne.s32.totalorder %s5241_s5, %s4773_s29  ;;  %s4938_s4 = smov [#allocation10]  }
  0xa7   : > { %s4778_s15 = sshll.u32 %s4938_s4, 4  ;;  %s4779_s15 = int_to_ptr.vmem [resolvable:$false] %s4778_s15 }
  0xa8   : > { %p4776_p0 = pnand %p4774_p3, %p6097_p8  ;;  %s4780_s0 = scalar_lea.vmem %s4779_s15, 16384 }
  0xa9   : > { %p4781_p6 = scmp.lt.s32.totalorder %s5241_s5, %s4779_s15  ;;  %p4782_p12 = scmp.lt.s32.totalorder %s4780_s0, %s4773_s29 }
  0xaa   : > { %p4777_p10 = pneg %p4776_p0 }
  0xab   : > { %p4783_p2 = por %p4782_p12, %p4781_p6 }
  0xad   : > { %p4784_p4 = pnand %p4783_p2, %p4777_p10 }
  0xaf   : > { %4787 = shalt.err (!%p4784_p4)
}
  0xb0   : > { %4454 = dma.hbm_to_vmem [thread:$0]  (!%p6091_p5), %s5217_s13, 8192, %s5241_s5, %s5181_s27, %s4935_s14, %s4935_s14, %s4936_s21  }
  0xb1   : > { %p6098_p9 = scmp.ne.s32.totalorder %s6082_s20, 0 }
  0xb2   : > { %p6099_p7 = scmp.eq.s32.totalorder (!%p6098_p9), %s5052_s25, 0 }
  0xb3   : > { %567 = sbr.rel (%p6098_p9) target bundleno = 3577 (0xdf9), region = 76 }
  0xba   : > { %4887 = dma.done.wait (%p6099_p7), [#allocation5], 2048   ;;  %p6100_p1 = pmov %p6099_p7 }
  0xbc   : > { %4889 = vsyncadd (%p6100_p1), [#allocation5], 4294965248  ;;  %p6101_p11 = pmov %p6100_p1 }
  0xbd   : > { %p6102_p13 = pmov %p6100_p1 }
  0xbe   : > { %4891 = dma.done.wait (%p6101_p11), [#allocation8], 2048  }
  0xbf   : > { %4893 = vsyncadd (%p6102_p13), [#allocation8], 4294965248  ;;  %s577_s5 = sand.u32 1, %s5052_s25   ;;  %s5282_s30 = sand.u32 1, %s4920_s22  }
  0xc0   : > { %s3346_s20 = sshll.u32 %s5282_s30, 9  ;;  %s578_s27 = scalar_lea.sflag [#allocation5], %s577_s5 }
  0xc1   : > { %s5287_s14 = scalar_lea.vmem [#allocation9], %s3346_s20  ;;  %p6103_p5 = scmp.ne.s32.totalorder %s6077_s17, 0 }
  0xc3   : > { %4895 = dma.done.wait (%p6103_p5), %s578_s27, 16384  }
  0xc4   : > { %4897 = vsyncadd (%p6103_p5), %s578_s27, 4294950912  ;;  %s5293_s21 = scalar_lea.vmem [#allocation10], %s3346_s20  ;;  %p6104_p3 = pmov %p6100_p1 }
  0xc5   : > { %p6105_p8 = pmov %p6100_p1 }
  0xc6   : > { %4899 = dma.done.wait (%p6104_p3), [#allocation8], 2048  }
  0xc7   : > { %4901 = vsyncadd (%p6105_p8), [#allocation8], 4294965248  ;;  %s3349_s13 = sshll.u32 %s5282_s30, 3  ;;  %p665_p0 = scmp.lt.s32.totalorder %s5052_s25, 1 }
  0xc8   : > { %s6106_s19 = sld [smem:[#allocation37_spill]]  ;;  %s5317_s29 = scalar_lea.vmem [#allocation12], %s3349_s13 }
  0xc9   : > { %s666_s6 = scalar_select %p665_p0, %s5052_s25, 1 }
  0xca   : > { %s5319_s4 = scalar_lea.vmem [#allocation13], %s3349_s13  ;;  %p6107_p10 = scmp.ne.s32.totalorder %s5052_s25, 0 }
  0xcb   : > { %s3351_s18 = sshll.u32 %s666_s6, 2  ;;  %s3352_s1 = sshll.u32 %s666_s6, 3  ;;  %vm722_vm0 = vcmask (!%p6107_p10), 1043456   ;;  %vm697_vm1 = vcmask (!%p6107_p10), 31744   ;;  %v839_v4 = vld [vmem:[#allocation4] sm:$0xff] (!%p6107_p10)  ;;  %v840_v5 = vld [vmem:[#allocation4 + $0x8] sm:$0xff] (!%p6107_p10) }
  0xcc   : > { %s5305_s17 = scalar_lea.vmem %s6028_s9, %s3351_s18  ;;  %s5310_s23 = scalar_lea.vmem %s6029_s10, %s3352_s1  ;;  %v841_v6 = vld [vmem:[#allocation4 + $0x10] sm:$0xff] (!%p6107_p10)  ;;  %v3622_v8 = vpack.c.bf16 (!%p6107_p10), %v840_v5, %v839_v4  ;;  %v842_v9 = vld [vmem:[#allocation4 + $0x18] sm:$0xff] (!%p6107_p10)  ;;  %v843_v12 = vld [vmem:[#allocation4 + $0x20] sm:$0xff] (!%p6107_p10) }
  0xcd   : > { %680 = sbr.rel (%p6107_p10) target bundleno = 878 (0x36e), region = 100  ;;  %s6108_s20 = sld [smem:[#allocation30_spill]] (!%p6107_p10)  ;;  %v3626_v11 = vpack.c.bf16 (!%p6107_p10), %v842_v9, %v841_v6  ;;  %v844_v13 = vld [vmem:[#allocation4 + $0x28] sm:$0xff] (!%p6107_p10)  ;;  %v845_v17 = vld [vmem:[#allocation4 + $0x30] sm:$0xff] (!%p6107_p10)  ;;  %v846_v18 = vld [vmem:[#allocation4 + $0x38] sm:$0xff] (!%p6107_p10) }
  0xce   : > { %s5315_s16 = scalar_lea.vmem %s6106_s19, %s3352_s1  ;;  %s6109_s18 = sld [smem:[#allocation29_spill]] (!%p6107_p10)  ;;  %3623 = vmatprep.subr.bf16.mxu1 (!%p6107_p10), %v3622_v8  ;;  %v3630_v15 = vpack.c.bf16 (!%p6107_p10), %v844_v13, %v843_v12  ;;  %v3634_v20 = vpack.c.bf16 (!%p6107_p10), %v846_v18, %v845_v17  ;;  %v847_v21 = vld [vmem:[#allocation4 + $0x40] sm:$0xff] (!%p6107_p10)  ;;  %v848_v22 = vld [vmem:[#allocation4 + $0x48] sm:$0xff] (!%p6107_p10)  ;;  %v849_v24 = vld [vmem:[#allocation4 + $0x50] sm:$0xff] (!%p6107_p10) }
  0xcf   : > { %3625 = vmatpush3.bf16.msra.mxu1 (!%p6107_p10), %v3622_v8  ;;  %v3638_v23 = vpack.c.bf16 (!%p6107_p10), %v848_v22, %v847_v21  ;;  %v850_v25 = vld [vmem:[#allocation4 + $0x58] sm:$0xff] (!%p6107_p10)  ;;  %v851_v27 = vld [vmem:[#allocation4 + $0x60] sm:$0xff] (!%p6107_p10)  ;;  %v852_v28 = vld [vmem:[#allocation4 + $0x68] sm:$0xff] (!%p6107_p10)  ;;  %s6110_s13 = sld [smem:[#allocation31_spill]] (!%p6107_p10)  ;;  %s6111_s11 = sld [smem:[#allocation33_spill]] (!%p6107_p10) }
  0xd0   : > { %3627 = vmatprep.subr.bf16.mxu1 (!%p6107_p10), %v3626_v11  ;;  %v3642_v26 = vpack.c.bf16 (!%p6107_p10), %v850_v25, %v849_v24  ;;  %v3646_v29 = vpack.c.bf16 (!%p6107_p10), %v852_v28, %v851_v27  ;;  %v853_v30 = vld [vmem:[#allocation4 + $0x70] sm:$0xff] (!%p6107_p10)  ;;  %v854_v31 = vld [vmem:[#allocation4 + $0x78] sm:$0xff] (!%p6107_p10)  ;;  %v975_v33 = vld [vmem:[#allocation7] sm:$0xff] (!%p6107_p10)  ;;  %s6112_s19 = sld [smem:[#allocation35_spill]] (!%p6107_p10) }
  0xd1   : > { %v3650_v32 = vpack.c.bf16 (!%p6107_p10), %v854_v31, %v853_v30  ;;  %v976_v34 = vld [vmem:[#allocation7 + $0x8] sm:$0xff] (!%p6107_p10)  ;;  %v977_v35 = vld [vmem:[#allocation7 + $0x10] sm:$0xff] (!%p6107_p10)  ;;  %v978_v37 = vld [vmem:[#allocation7 + $0x18] sm:$0xff] (!%p6107_p10) }
  0xd2   : > { %v3654_v36 = vpack.c.bf16 (!%p6107_p10), %v976_v34, %v975_v33  ;;  %v3658_v38 = vpack.c.bf16 (!%p6107_p10), %v978_v37, %v977_v35  ;;  %v979_v39 = vld [vmem:[#allocation7 + $0x20] sm:$0xff] (!%p6107_p10)  ;;  %v980_v40 = vld [vmem:[#allocation7 + $0x28] sm:$0xff] (!%p6107_p10)  ;;  %v981_v42 = vld [vmem:[#allocation7 + $0x30] sm:$0xff] (!%p6107_p10) }
  0xd3   : > { %v689_v0 = vld [vmem:[%s6108_s20] sm:$0xf] (!%p6107_p10)  ;;  %3629 = vmatpush3.bf16.msra.mxu1 (!%p6107_p10), %v3626_v11  ;;  %v3662_v41 = vpack.c.bf16 (!%p6107_p10), %v980_v40, %v979_v39  ;;  %v982_v43 = vld [vmem:[#allocation7 + $0x38] sm:$0xff] (!%p6107_p10)  ;;  %v984_v46 = vld [vmem:[#allocation7 + $0x48] sm:$0xff] (!%p6107_p10) }
  0xd4   : > { %v681_v1 = vld [vmem:[%s6109_s18] sm:$0xff]  ;;  %v682_v2 = vld [vmem:[%s6109_s18 + $0x8] sm:$0xff]  ;;  %3485 = vmatprep.subr.msk.mxu0 %vm722_vm0, %v689_v0  ;;  %v683_v3 = vld [vmem:[%s6109_s18 + $0x10] sm:$0xff]  ;;  %3631 = vmatprep.subr.bf16.mxu1 %v3630_v15  ;;  %v3666_v44 = vpack.c.bf16 %v982_v43, %v981_v42 }
  0xd5   : > { %3487 = vmatprep.mubr.msk.f32.mxu0 %vm697_vm1, %v681_v1  ;;  %3486 = vmatpush3.msk.msra.mxu0 %vm722_vm0, %v689_v0  ;;  %v684_v7 = vld [vmem:[%s6109_s18 + $0x18] sm:$0xff]  ;;  %v685_v10 = vld [vmem:[%s6109_s18 + $0x20] sm:$0xff]  ;;  %v686_v14 = vld [vmem:[%s6109_s18 + $0x28] sm:$0xff] }
  0xd6   : > { %3488 = vmatmul.mubr.msk.f32.vlgmr.msra.gmra.mrb[0].mxu0 %vm697_vm1, %v682_v2  ;;  %v687_v16 = vld [vmem:[%s6109_s18 + $0x30] sm:$0xff]  ;;  %v688_v19 = vld [vmem:[%s6109_s18 + $0x38] sm:$0xff]  ;;  %3655 = vmatprep.subr.bf16.mxu0 %v3654_v36  ;;  %v983_v45 = vld [vmem:[#allocation7 + $0x40] sm:$0xff] }
  0xd7   : > { %3490 = vmatprep.mubr.msk.f32.mxu0 %vm697_vm1, %v683_v3  ;;  %3633 = vmatpush3.bf16.msra.mxu1 %v3630_v15  ;;  %v3670_v47 = vpack.c.bf16 %v984_v46, %v983_v45  ;;  %v985_v48 = vld [vmem:[#allocation7 + $0x50] sm:$0xff]  ;;  %v986_v49 = vld [vmem:[#allocation7 + $0x58] sm:$0xff]  ;;  %v987_v51 = vld [vmem:[#allocation7 + $0x60] sm:$0xff] }
  0xd8   : > { %3635 = vmatprep.subr.bf16.mxu1 %v3634_v20  ;;  %3657 = vmatpush3.bf16.msra.mxu0 %v3654_v36  ;;  %v3674_v50 = vpack.c.bf16 %v986_v49, %v985_v48  ;;  %v988_v52 = vld [vmem:[#allocation7 + $0x68] sm:$0xff]  ;;  %v3355_v54 = vld [vmem:[%s6110_s13] ss:$0 sm:$0xff]  ;;  %v989_v15 = vld [vmem:[#allocation7 + $0x70] sm:$0xff] }
  0xd9   : > { %3659 = vmatprep.subr.bf16.mxu0 %v3658_v38  ;;  %v3678_v53 = vpack.c.bf16 %v988_v52, %v987_v51  ;;  %v3365_v18 = vld [vmem:[%s6111_s11] ss:$0 sm:$0xff] }
  0xda   : > { %3491 = vmatmul.mubr.msk.f32.gmra.mrb[2].mxu0 %vm697_vm1, %v684_v7  ;;  %v3366_v43 = vld [vmem:[%s6112_s19] ss:$0 sm:$0xff] }
  0xdb   : > { %3493 = vmatprep.mubr.msk.f32.mxu0 %vm697_vm1, %v685_v10  ;;  %3637 = vmatpush3.bf16.msra.mxu1 %v3634_v20 }
  0xdc   : > { %3639 = vmatprep.subr.bf16.mxu1 %v3638_v23  ;;  %3661 = vmatpush3.bf16.msra.mxu0 %v3658_v38 }
  0xdd   : > { %3663 = vmatprep.subr.bf16.mxu0 %v3662_v41 }
  0xde   : > { %3494 = vmatmul.mubr.msk.f32.gmra.mrb[4].mxu0 %vm697_vm1, %v686_v14 }
  0xdf   : > { %3496 = vmatprep.mubr.msk.f32.mxu0 %vm697_vm1, %v687_v16  ;;  %3641 = vmatpush3.bf16.msra.mxu1 %v3638_v23  ;;  %v990_v16 = vld [vmem:[#allocation7 + $0x78] sm:$0xff] }
  0xe0   : > { %3643 = vmatprep.subr.bf16.mxu1 %v3642_v26  ;;  %3665 = vmatpush3.bf16.msra.mxu0 %v3662_v41  ;;  %v3682_v17 = vpack.c.bf16 %v990_v16, %v989_v15 }
  0xe1   : > { %3667 = vmatprep.subr.bf16.mxu0 %v3666_v44 }
  0xe2   : > { %3497 = vmatmul.mubr.msk.f32.gmra.mrb[6].mxu0 %vm697_vm1, %v688_v19 }
  0xe3   : > { %3645 = vmatpush3.bf16.msra.mxu1 %v3642_v26 }
  0xe4   : > { %3647 = vmatprep.subr.bf16.mxu1 %v3646_v29  ;;  %3669 = vmatpush3.bf16.msra.mxu0 %v3666_v44 }
  0xe5   : > { %3671 = vmatprep.subr.bf16.mxu0 %v3670_v47 }
  0xe7   : > { %3649 = vmatpush3.bf16.msra.mxu1 %v3646_v29 }
  0xe8   : > { %3651 = vmatprep.subr.bf16.mxu1 %v3650_v32  ;;  %3673 = vmatpush3.bf16.msra.mxu0 %v3670_v47 }
  0xe9   : > { %3675 = vmatprep.subr.bf16.mxu0 %v3674_v50 }
  0xeb   : > { %3653 = vmatpush3.bf16.msra.mxu1 %v3650_v32 }
  0xec   : > { %3677 = vmatpush3.bf16.msra.mxu0 %v3674_v50 }
  0xed   : > { %3679 = vmatprep.subr.bf16.mxu0 %v3678_v53 }
  0xf0   : > { %3681 = vmatpush3.bf16.msra.mxu0 %v3678_v53 }
  0xf1   : > { %3683 = vmatprep.subr.bf16.mxu0 %v3682_v17 }
  0xf4   : > { %3685 = vmatpush3.bf16.msra.mxu0 %v3682_v17 }
 0x1a9   : > { %v3489_v55 = vpop.f32.mrb[0].mxu0 }
 0x1aa   : > { %v798_v56 = vadd.f32 %v3489_v55, %v3355_v54  ;;  %v792_v57 = vpop.f32.mrb[1].mxu0 }
 0x1ab   : > { %v793_v58 = vadd.f32 %v3355_v54, %v792_v57 }
 0x1ac   : > { %v832_v61 = vmax.f32 %v798_v56, 0.0 }
 0x1ad   : > { %v3492_v59 = vpop.f32.mrb[2].mxu0  ;;  %v831_v60 = vmax.f32 %v793_v58, 0.0 }
 0x1ae   : > { %v808_v62 = vadd.f32 %v3492_v59, %v3355_v54  ;;  %v802_v63 = vpop.f32.mrb[3].mxu0 }
 0x1af   : > { %v803_v0 = vadd.f32 %v3355_v54, %v802_v63  ;;  %3531 = vmatprep.mubr.f32.mxu1 %v831_v60 }
 0x1b0   : > { %3532 = vmatmul.mubr.f32.vlgmr.msra.gmra.mrb[0].mxu1 %v832_v61  ;;  %v834_v3 = vmax.f32 %v808_v62, 0.0 }
 0x1b1   : > { %v833_v1 = vmax.f32 %v803_v0, 0.0  ;;  %v3495_v2 = vpop.f32.mrb[4].mxu0 }
 0x1b2   : > { %v818_v4 = vadd.f32 %v3495_v2, %v3355_v54  ;;  %v812_v5 = vpop.f32.mrb[5].mxu0 }
 0x1b3   : > { %v813_v6 = vadd.f32 %v3355_v54, %v812_v5  ;;  %3534 = vmatprep.mubr.f32.mxu1 %v833_v1 }
 0x1b4   : > { %3535 = vmatmul.mubr.f32.gmra.mrb[2].mxu1 %v834_v3  ;;  %v836_v9 = vmax.f32 %v818_v4, 0.0 }
 0x1b5   : > { %v835_v7 = vmax.f32 %v813_v6, 0.0  ;;  %v3498_v8 = vpop.f32.mrb[6].mxu0 }
 0x1b6   : > { %v828_v10 = vadd.f32 %v3498_v8, %v3355_v54  ;;  %v822_v11 = vpop.f32.mrb[7].mxu0 }
 0x1b7   : > { %v823_v12 = vadd.f32 %v3355_v54, %v822_v11  ;;  %3537 = vmatprep.mubr.f32.mxu1 %v835_v7 }
 0x1b8   : > { %3538 = vmatmul.mubr.f32.gmra.mrb[4].mxu1 %v836_v9  ;;  %v838_v14 = vmax.f32 %v828_v10, 0.0 }
 0x1b9   : > { %v837_v13 = vmax.f32 %v823_v12, 0.0 }
 0x1bb   : > { %3540 = vmatprep.mubr.f32.mxu1 %v837_v13 }
 0x1bc   : > { %3541 = vmatmul.mubr.f32.gmra.mrb[6].mxu1 %v838_v14 }
 0x283   : > { %v3533_v19 = vpop.f32.mrb[0].mxu1 }
 0x284   : > { %v934_v20 = vadd.f32 %v3533_v19, %v3365_v18  ;;  %v928_v21 = vpop.f32.mrb[1].mxu1 }
 0x285   : > { %v929_v22 = vadd.f32 %v3365_v18, %v928_v21 }
 0x286   : > { %v968_v25 = vmax.f32 %v934_v20, 0.0 }
 0x287   : > { %v967_v23 = vmax.f32 %v929_v22, 0.0  ;;  %v3536_v24 = vpop.f32.mrb[2].mxu1 }
 0x288   : > { %v944_v26 = vadd.f32 %v3536_v24, %v3365_v18  ;;  %v938_v27 = vpop.f32.mrb[3].mxu1 }
 0x289   : > { %v939_v28 = vadd.f32 %v3365_v18, %v938_v27  ;;  %3575 = vmatprep.mubr.f32.mxu0 %v967_v23 }
 0x28a   : > { %3576 = vmatmul.mubr.f32.vlgmr.msra.gmra.mrb[8].mxu0 %v968_v25  ;;  %v970_v31 = vmax.f32 %v944_v26, 0.0 }
 0x28b   : > { %v969_v29 = vmax.f32 %v939_v28, 0.0  ;;  %v3539_v30 = vpop.f32.mrb[4].mxu1 }
 0x28c   : > { %v954_v32 = vadd.f32 %v3539_v30, %v3365_v18  ;;  %v948_v33 = vpop.f32.mrb[5].mxu1 }
 0x28d   : > { %v949_v34 = vadd.f32 %v3365_v18, %v948_v33  ;;  %3578 = vmatprep.mubr.f32.mxu0 %v969_v29 }
 0x28e   : > { %3579 = vmatmul.mubr.f32.gmra.mrb[10].mxu0 %v970_v31  ;;  %v972_v37 = vmax.f32 %v954_v32, 0.0 }
 0x28f   : > { %v971_v35 = vmax.f32 %v949_v34, 0.0  ;;  %v3542_v36 = vpop.f32.mrb[6].mxu1 }
 0x290   : > { %v964_v38 = vadd.f32 %v3542_v36, %v3365_v18  ;;  %v958_v39 = vpop.f32.mrb[7].mxu1 }
 0x291   : > { %v959_v40 = vadd.f32 %v3365_v18, %v958_v39  ;;  %3581 = vmatprep.mubr.f32.mxu0 %v971_v35 }
 0x292   : > { %3582 = vmatmul.mubr.f32.gmra.mrb[12].mxu0 %v972_v37  ;;  %v974_v42 = vmax.f32 %v964_v38, 0.0 }
 0x293   : > { %v973_v41 = vmax.f32 %v959_v40, 0.0 }
 0x295   : > { %3584 = vmatprep.mubr.f32.mxu0 %v973_v41 }
 0x296   : > { %3585 = vmatmul.mubr.f32.gmra.mrb[14].mxu0 %v974_v42 }
 0x35d   : > { %v3577_v44 = vpop.f32.mrb[8].mxu0 }
 0x35e   : > { %v1070_v45 = vadd.f32 %v3577_v44, %v3366_v43  ;;  %v1064_v46 = vpop.f32.mrb[9].mxu0 }
 0x35f   : > { %v1065_v47 = vadd.f32 %v3366_v43, %v1064_v46 }
 0x360   : > { %1104 = vst [vmem:[#allocation2 + $0x8] sm:$0xff] %v1070_v45 }
 0x361   : > { %1103 = vst [vmem:[#allocation2] sm:$0xff] %v1065_v47  ;;  %v3580_v48 = vpop.f32.mrb[10].mxu0 }
 0x362   : > { %v1080_v49 = vadd.f32 %v3580_v48, %v3366_v43  ;;  %v1074_v50 = vpop.f32.mrb[11].mxu0 }
 0x363   : > { %v1075_v51 = vadd.f32 %v3366_v43, %v1074_v50 }
 0x364   : > { %1106 = vst [vmem:[#allocation2 + $0x18] sm:$0xff] %v1080_v49 }
 0x365   : > { %1105 = vst [vmem:[#allocation2 + $0x10] sm:$0xff] %v1075_v51  ;;  %v3583_v52 = vpop.f32.mrb[12].mxu0 }
 0x366   : > { %v1090_v53 = vadd.f32 %v3583_v52, %v3366_v43  ;;  %v1084_v54 = vpop.f32.mrb[13].mxu0 }
 0x367   : > { %v1085_v55 = vadd.f32 %v3366_v43, %v1084_v54 }
 0x368   : > { %1108 = vst [vmem:[#allocation2 + $0x28] sm:$0xff] %v1090_v53 }
 0x369   : > { %1107 = vst [vmem:[#allocation2 + $0x20] sm:$0xff] %v1085_v55  ;;  %v3586_v56 = vpop.f32.mrb[14].mxu0 }
 0x36a   : > { %v1100_v57 = vadd.f32 %v3586_v56, %v3366_v43  ;;  %v1094_v58 = vpop.f32.mrb[15].mxu0 }
 0x36b   : > { %v1095_v59 = vadd.f32 %v3366_v43, %v1094_v58 }
 0x36c   : > { %1110 = vst [vmem:[#allocation2 + $0x38] sm:$0xff] %v1100_v57 }
 0x36d   : > { %1109 = vst [vmem:[#allocation2 + $0x30] sm:$0xff] %v1095_v59 }
 0x36e PF: > { %v1112_v60 = vld [vmem:[%s5287_s14 + $0x8] sm:$0xff]  ;;  %v1114_v62 = vld [vmem:[%s5287_s14 + $0x18] sm:$0xff]  ;;  %v1111_v1 = vld [vmem:[%s5287_s14] sm:$0xff]  ;;  %v4939_v3 = vmov 0.0   ;;  %p3370_p6 = scmp.ge.s32.totalorder %s5052_s25, 1 }
 0x36f   : > { %v1116_v61 = vld [vmem:[%s5287_s14 + $0x28] sm:$0xff]  ;;  %v1118_v0 = vld [vmem:[%s5287_s14 + $0x38] sm:$0xff]  ;;  %v1115_v2 = vld [vmem:[%s5287_s14 + $0x20] sm:$0xff]  ;;  %1333 = vmatprep.mubr.f32.mxu0 %v4939_v3  ;;  %1446 = vmatprep.mubr.f32.mxu1 %v4939_v3 }
 0x370   : > { %v3686_v63 = vpack.c.bf16 %v1116_v61, %v1112_v60  ;;  %v3718_v4 = vpack.c.bf16 %v1118_v0, %v1114_v62  ;;  %v3688_v5 = vpack.c.bf16 %v1115_v2, %v1111_v1  ;;  %v1113_v6 = vld [vmem:[%s5287_s14 + $0x10] sm:$0xff]  ;;  %v1120_v8 = vld [vmem:[%s5287_s14 + $0x48] sm:$0xff]  ;;  %v1122_v11 = vld [vmem:[%s5287_s14 + $0x58] sm:$0xff] }
 0x371   : > { %v1117_v7 = vld [vmem:[%s5287_s14 + $0x30] sm:$0xff]  ;;  %v1124_v10 = vld [vmem:[%s5287_s14 + $0x68] sm:$0xff]  ;;  %v1126_v12 = vld [vmem:[%s5287_s14 + $0x78] sm:$0xff] }
 0x372   : > { %3687 = vmatprep.subr.bf16.mxu0 %v3686_v63  ;;  %v3720_v9 = vpack.c.bf16 %v1117_v7, %v1113_v6  ;;  %3719 = vmatprep.subr.bf16.mxu1 %v3718_v4  ;;  %v3690_v13 = vpack.c.bf16 %v1124_v10, %v1120_v8  ;;  %v3722_v14 = vpack.c.bf16 %v1126_v12, %v1122_v11  ;;  %v1119_v15 = vld [vmem:[%s5287_s14 + $0x40] sm:$0xff]  ;;  %v1121_v17 = vld [vmem:[%s5287_s14 + $0x50] sm:$0xff]  ;;  %v1128_v20 = vld [vmem:[%s5287_s14 + $0x88] sm:$0xff] }
 0x373   : > { %3689 = vmatpush1.bf16.msra.mxu0 %v3688_v5  ;;  %v1123_v16 = vld [vmem:[%s5287_s14 + $0x60] sm:$0xff]  ;;  %v1125_v19 = vld [vmem:[%s5287_s14 + $0x70] sm:$0xff]  ;;  %v1132_v21 = vld [vmem:[%s5287_s14 + $0xa8] sm:$0xff] }
 0x374   : > { %3721 = vmatpush1.bf16.msra.mxu1 %v3720_v9  ;;  %v3692_v18 = vpack.c.bf16 %v1123_v16, %v1119_v15  ;;  %3691 = vmatprep.subr.bf16.mxu0 %v3690_v13  ;;  %v3724_v22 = vpack.c.bf16 %v1125_v19, %v1121_v17  ;;  %v3694_v23 = vpack.c.bf16 %v1132_v21, %v1128_v20  ;;  %v1130_v24 = vld [vmem:[%s5287_s14 + $0x98] sm:$0xff]  ;;  %v1127_v26 = vld [vmem:[%s5287_s14 + $0x80] sm:$0xff]  ;;  %v1129_v29 = vld [vmem:[%s5287_s14 + $0x90] sm:$0xff] }
 0x375   : > { %3723 = vmatprep.subr.bf16.mxu1 %v3722_v14  ;;  %v1134_v25 = vld [vmem:[%s5287_s14 + $0xb8] sm:$0xff]  ;;  %v1131_v28 = vld [vmem:[%s5287_s14 + $0xa0] sm:$0xff]  ;;  %v1133_v30 = vld [vmem:[%s5287_s14 + $0xb0] sm:$0xff] }
 0x376   : > { %v3726_v27 = vpack.c.bf16 %v1134_v25, %v1130_v24  ;;  %v3696_v31 = vpack.c.bf16 %v1131_v28, %v1127_v26  ;;  %v1136_v32 = vld [vmem:[%s5287_s14 + $0xc8] sm:$0xff]  ;;  %v1138_v34 = vld [vmem:[%s5287_s14 + $0xd8] sm:$0xff]  ;;  %v3728_v35 = vpack.c.bf16 %v1133_v30, %v1129_v29  ;;  %v1135_v38 = vld [vmem:[%s5287_s14 + $0xc0] sm:$0xff] }
 0x377   : > { %3693 = vmatpush1.bf16.msra.mxu0 %v3692_v18  ;;  %v1140_v33 = vld [vmem:[%s5287_s14 + $0xe8] sm:$0xff]  ;;  %v1142_v37 = vld [vmem:[%s5287_s14 + $0xf8] sm:$0xff]  ;;  %v1139_v39 = vld [vmem:[%s5287_s14 + $0xe0] sm:$0xff] }
 0x378   : > { %3725 = vmatpush1.bf16.msra.mxu1 %v3724_v22  ;;  %3695 = vmatprep.subr.bf16.mxu0 %v3694_v23  ;;  %v3698_v36 = vpack.c.bf16 %v1140_v33, %v1136_v32  ;;  %v3730_v40 = vpack.c.bf16 %v1142_v37, %v1138_v34  ;;  %v1137_v41 = vld [vmem:[%s5287_s14 + $0xd0] sm:$0xff]  ;;  %v1144_v43 = vld [vmem:[%s5287_s14 + $0x108] sm:$0xff]  ;;  %v1146_v45 = vld [vmem:[%s5287_s14 + $0x118] sm:$0xff]  ;;  %v3700_v47 = vpack.c.bf16 %v1139_v39, %v1135_v38 }
 0x379   : > { %3727 = vmatprep.subr.bf16.mxu1 %v3726_v27  ;;  %v1141_v42 = vld [vmem:[%s5287_s14 + $0xf0] sm:$0xff]  ;;  %v1148_v44 = vld [vmem:[%s5287_s14 + $0x128] sm:$0xff]  ;;  %v1150_v46 = vld [vmem:[%s5287_s14 + $0x138] sm:$0xff] }
 0x37a   : > { %v3732_v48 = vpack.c.bf16 %v1141_v42, %v1137_v41  ;;  %v3702_v49 = vpack.c.bf16 %v1148_v44, %v1144_v43  ;;  %v1143_v50 = vld [vmem:[%s5287_s14 + $0x100] sm:$0xff]  ;;  %v1145_v52 = vld [vmem:[%s5287_s14 + $0x110] sm:$0xff]  ;;  %v3734_v53 = vpack.c.bf16 %v1150_v46, %v1146_v45  ;;  %v1152_v55 = vld [vmem:[%s5287_s14 + $0x148] sm:$0xff] }
 0x37b   : > { %3697 = vmatpush1.bf16.msra.mxu0 %v3696_v31  ;;  %v1147_v51 = vld [vmem:[%s5287_s14 + $0x120] sm:$0xff]  ;;  %v1149_v54 = vld [vmem:[%s5287_s14 + $0x130] sm:$0xff]  ;;  %v1156_v56 = vld [vmem:[%s5287_s14 + $0x168] sm:$0xff] }
 0x37c   : > { %3729 = vmatpush1.bf16.msra.mxu1 %v3728_v35  ;;  %3699 = vmatprep.subr.bf16.mxu0 %v3698_v36  ;;  %v1154_v57 = vld [vmem:[%s5287_s14 + $0x158] sm:$0xff]  ;;  %v3704_v59 = vpack.c.bf16 %v1147_v51, %v1143_v50  ;;  %v3736_v60 = vpack.c.bf16 %v1149_v54, %v1145_v52  ;;  %v3706_v61 = vpack.c.bf16 %v1156_v56, %v1152_v55  ;;  %v1151_v62 = vld [vmem:[%s5287_s14 + $0x140] sm:$0xff]  ;;  %v1153_v0 = vld [vmem:[%s5287_s14 + $0x150] sm:$0xff]  ;;  %v1249_v52 = vlaneseq }
 0x37d   : > { %3731 = vmatprep.subr.bf16.mxu1 %v3730_v40  ;;  %v1158_v58 = vld [vmem:[%s5287_s14 + $0x178] sm:$0xff]  ;;  %v1155_v63 = vld [vmem:[%s5287_s14 + $0x160] sm:$0xff]  ;;  %v1157_v2 = vld [vmem:[%s5287_s14 + $0x170] sm:$0xff] }
 0x37e   : > { %v3738_v1 = vpack.c.bf16 %v1158_v58, %v1154_v57  ;;  %v1160_v4 = vld [vmem:[%s5287_s14 + $0x188] sm:$0xff]  ;;  %v1162_v6 = vld [vmem:[%s5287_s14 + $0x198] sm:$0xff]  ;;  %v3708_v8 = vpack.c.bf16 %v1155_v63, %v1151_v62  ;;  %v3740_v9 = vpack.c.bf16 %v1157_v2, %v1153_v0  ;;  %v1159_v11 = vld [vmem:[%s5287_s14 + $0x180] sm:$0xff]  ;;  %v5482_v2 = vshrl.u32 %v1249_v52, 7 }
 0x37f   : > { %3701 = vmatpush1.bf16.msra.mxu0 %v3700_v47  ;;  %v1164_v5 = vld [vmem:[%s5287_s14 + $0x1a8] sm:$0xff]  ;;  %v1166_v7 = vld [vmem:[%s5287_s14 + $0x1b8] sm:$0xff]  ;;  %v1163_v12 = vld [vmem:[%s5287_s14 + $0x1a0] sm:$0xff] }
 0x380   : > { %3733 = vmatpush1.bf16.msra.mxu1 %v3732_v48  ;;  %3703 = vmatprep.subr.bf16.mxu0 %v3702_v49  ;;  %v3710_v10 = vpack.c.bf16 %v1164_v5, %v1160_v4  ;;  %v1161_v13 = vld [vmem:[%s5287_s14 + $0x190] sm:$0xff]  ;;  %v3742_v14 = vpack.c.bf16 %v1166_v7, %v1162_v6  ;;  %v1168_v16 = vld [vmem:[%s5287_s14 + $0x1c8] sm:$0xff]  ;;  %v1170_v18 = vld [vmem:[%s5287_s14 + $0x1d8] sm:$0xff]  ;;  %v3712_v20 = vpack.c.bf16 %v1163_v12, %v1159_v11 }
 0x381   : > { %3735 = vmatprep.subr.bf16.mxu1 %v3734_v53  ;;  %v1165_v15 = vld [vmem:[%s5287_s14 + $0x1b0] sm:$0xff]  ;;  %v1172_v17 = vld [vmem:[%s5287_s14 + $0x1e8] sm:$0xff]  ;;  %v1174_v19 = vld [vmem:[%s5287_s14 + $0x1f8] sm:$0xff] }
 0x382   : > { %v3744_v21 = vpack.c.bf16 %v1165_v15, %v1161_v13  ;;  %v3714_v22 = vpack.c.bf16 %v1172_v17, %v1168_v16  ;;  %v1167_v23 = vld [vmem:[%s5287_s14 + $0x1c0] sm:$0xff]  ;;  %v1169_v25 = vld [vmem:[%s5287_s14 + $0x1d0] sm:$0xff]  ;;  %v3746_v26 = vpack.c.bf16 %v1174_v19, %v1170_v18  ;;  %v1176_v28 = vld [vmem:[%s5293_s21 + $0x8] sm:$0xff]  ;;  %v1251_v17 = vsub.s32 0, %v5482_v2 }
 0x383   : > { %3705 = vmatpush1.bf16.msra.mxu0 %v3704_v59  ;;  %v1171_v24 = vld [vmem:[%s5287_s14 + $0x1e0] sm:$0xff]  ;;  %v1173_v27 = vld [vmem:[%s5287_s14 + $0x1f0] sm:$0xff]  ;;  %v1180_v29 = vld [vmem:[%s5293_s21 + $0x28] sm:$0xff] }
 0x384   : > { %3737 = vmatpush1.bf16.msra.mxu1 %v3736_v60  ;;  %3707 = vmatprep.subr.bf16.mxu0 %v3706_v61  ;;  %v1178_v30 = vld [vmem:[%s5293_s21 + $0x18] sm:$0xff]  ;;  %v3716_v32 = vpack.c.bf16 %v1171_v24, %v1167_v23  ;;  %v3748_v33 = vpack.c.bf16 %v1173_v27, %v1169_v25  ;;  %v5437_v34 = vpack.c.bf16 %v1180_v29, %v1176_v28  ;;  %v1175_v35 = vld [vmem:[%s5293_s21] sm:$0xff]  ;;  %v1177_v38 = vld [vmem:[%s5293_s21 + $0x10] sm:$0xff] }
 0x385   : > { %3739 = vmatprep.subr.bf16.mxu1 %v3738_v1  ;;  %v1182_v31 = vld [vmem:[%s5293_s21 + $0x38] sm:$0xff]  ;;  %v1179_v36 = vld [vmem:[%s5293_s21 + $0x20] sm:$0xff]  ;;  %v1181_v39 = vld [vmem:[%s5293_s21 + $0x30] sm:$0xff] }
 0x386   : > { %v5441_v37 = vpack.c.bf16 %v1182_v31, %v1178_v30  ;;  %v1184_v40 = vld [vmem:[%s5293_s21 + $0x48] sm:$0xff]  ;;  %v1239_v42 = vld [vmem:[#allocation2] sm:$0xff]  ;;  %v5447_v43 = vpack.c.bf16 %v1179_v36, %v1175_v35  ;;  %v1186_v44 = vld [vmem:[%s5293_s21 + $0x58] sm:$0xff]  ;;  %v5452_v46 = vpack.c.bf16 %v1181_v39, %v1177_v38 }
 0x387   : > { %3709 = vmatpush1.bf16.msra.mxu0 %v3708_v8  ;;  %v1188_v41 = vld [vmem:[%s5293_s21 + $0x68] sm:$0xff]  ;;  %v1190_v45 = vld [vmem:[%s5293_s21 + $0x78] sm:$0xff]  ;;  %v1183_v47 = vld [vmem:[%s5293_s21 + $0x40] sm:$0xff] }
 0x388   : > { %3741 = vmatpush1.bf16.msra.mxu1 %v3740_v9  ;;  %3711 = vmatprep.subr.bf16.mxu0 %v3710_v10  ;;  %v1187_v48 = vld [vmem:[%s5293_s21 + $0x60] sm:$0xff]  ;;  %v5457_v49 = vpack.c.bf16 %v1188_v41, %v1184_v40  ;;  %v1185_v50 = vld [vmem:[%s5293_s21 + $0x50] sm:$0xff]  ;;  %v5461_v53 = vpack.c.bf16 %v1190_v45, %v1186_v44  ;;  %v1192_v54 = vld [vmem:[%s5293_s21 + $0x88] sm:$0xff] }
 0x389   : > { %3743 = vmatprep.subr.bf16.mxu1 %v3742_v14  ;;  %v1189_v51 = vld [vmem:[%s5293_s21 + $0x70] sm:$0xff]  ;;  %v1196_v55 = vld [vmem:[%s5293_s21 + $0xa8] sm:$0xff]  ;;  %v5466_v57 = vpack.c.bf16 %v1187_v48, %v1183_v47  ;;  %v1194_v58 = vld [vmem:[%s5293_s21 + $0x98] sm:$0xff] }
 0x38a   : > { %v1240_v56 = vld [vmem:[#allocation2 + $0x8] sm:$0xff]  ;;  %v1198_v59 = vld [vmem:[%s5293_s21 + $0xb8] sm:$0xff]  ;;  %v5472_v60 = vpack.c.bf16 %v1189_v51, %v1185_v50  ;;  %v1191_v61 = vld [vmem:[%s5293_s21 + $0x80] sm:$0xff]  ;;  %v5478_v63 = vpack.c.bf16 %v1196_v55, %v1192_v54 }
 0x38b   : > { %3713 = vmatpush1.bf16.msra.mxu0 %v3712_v20  ;;  %v1195_v62 = vld [vmem:[%s5293_s21 + $0xa0] sm:$0xff]  ;;  %v1193_v0 = vld [vmem:[%s5293_s21 + $0x90] sm:$0xff]  ;;  %v5485_v4 = vpack.c.bf16 %v1198_v59, %v1194_v58  ;;  %v1200_v5 = vld [vmem:[%s5293_s21 + $0xc8] sm:$0xff] }
 0x38c   : > { %3745 = vmatpush1.bf16.msra.mxu1 %v3744_v21  ;;  %3715 = vmatprep.subr.bf16.mxu0 %v3714_v22  ;;  %v1197_v1 = vld [vmem:[%s5293_s21 + $0xb0] sm:$0xff]  ;;  %v1204_v6 = vld [vmem:[%s5293_s21 + $0xe8] sm:$0xff]  ;;  %v5490_v8 = vpack.c.bf16 %v1195_v62, %v1191_v61  ;;  %v1202_v9 = vld [vmem:[%s5293_s21 + $0xd8] sm:$0xff] }
 0x38d   : > { %3747 = vmatprep.subr.bf16.mxu1 %v3746_v26  ;;  %v1241_v7 = vld [vmem:[#allocation2 + $0x10] sm:$0xff]  ;;  %v1206_v10 = vld [vmem:[%s5293_s21 + $0xf8] sm:$0xff]  ;;  %v5496_v11 = vpack.c.bf16 %v1197_v1, %v1193_v0  ;;  %v1199_v12 = vld [vmem:[%s5293_s21 + $0xc0] sm:$0xff]  ;;  %v5502_v14 = vpack.c.bf16 %v1204_v6, %v1200_v5 }
 0x38e   : > { %v1203_v13 = vld [vmem:[%s5293_s21 + $0xe0] sm:$0xff]  ;;  %v1201_v15 = vld [vmem:[%s5293_s21 + $0xd0] sm:$0xff]  ;;  %v5508_v18 = vpack.c.bf16 %v1206_v10, %v1202_v9  ;;  %v1208_v19 = vld [vmem:[%s5293_s21 + $0x108] sm:$0xff] }
 0x38f   : > { %3717 = vmatpush1.bf16.msra.mxu0 %v3716_v32  ;;  %v1205_v16 = vld [vmem:[%s5293_s21 + $0xf0] sm:$0xff]  ;;  %v1212_v20 = vld [vmem:[%s5293_s21 + $0x128] sm:$0xff]  ;;  %v1242_v21 = vld [vmem:[#allocation2 + $0x18] sm:$0xff]  ;;  %v5513_v22 = vpack.c.bf16 %v1203_v13, %v1199_v12 }
 0x390   : > { %3749 = vmatpush1.bf16.msra.mxu1 %v3748_v33  ;;  %3751 = vmatprep.subr.bf16.mxu0 %v5437_v34  ;;  %v1210_v23 = vld [vmem:[%s5293_s21 + $0x118] sm:$0xff]  ;;  %v5519_v25 = vpack.c.bf16 %v1205_v16, %v1201_v15  ;;  %v1207_v26 = vld [vmem:[%s5293_s21 + $0x100] sm:$0xff]  ;;  %v5528_v29 = vpack.c.bf16 %v1212_v20, %v1208_v19  ;;  %v1209_v30 = vld [vmem:[%s5293_s21 + $0x110] sm:$0xff] }
 0x391   : > { %3783 = vmatprep.subr.bf16.mxu1 %v5441_v37  ;;  %v1214_v24 = vld [vmem:[%s5293_s21 + $0x138] sm:$0xff]  ;;  %v1211_v27 = vld [vmem:[%s5293_s21 + $0x120] sm:$0xff]  ;;  %v1213_v31 = vld [vmem:[%s5293_s21 + $0x130] sm:$0xff] }
 0x392   : > { %1334 = vmatmul.mubr.f32.vlgmr.msra.gmra.mrb[0].mxu0 %v1239_v42  ;;  %v5524_v28 = vld [vmem:[%s5305_s17] sm:$0xf]  ;;  %v5536_v33 = vpack.c.bf16 %v1214_v24, %v1210_v23  ;;  %v1216_v35 = vld [vmem:[%s5293_s21 + $0x148] sm:$0xff]  ;;  %v5541_v39 = vpack.c.bf16 %v1211_v27, %v1207_v26  ;;  %v1218_v40 = vld [vmem:[%s5293_s21 + $0x158] sm:$0xff] }
 0x393   : > { %1447 = vmatmul.mubr.f32.vlgmr.msra.gmra.mrb[0].mxu1 %v1239_v42  ;;  %3753 = vmatpush1.bf16.msra.mxu0 %v5447_v43  ;;  %v5533_v32 = vrot.slane %v5524_v28, %v1251_v17  ;;  %v1220_v36 = vld [vmem:[%s5293_s21 + $0x168] sm:$0xff]  ;;  %v1243_v38 = vld [vmem:[#allocation2 + $0x20] sm:$0xff]  ;;  %v1222_v41 = vld [vmem:[%s5293_s21 + $0x178] sm:$0xff]  ;;  %v5554_v42 = vpack.c.bf16 %v1213_v31, %v1209_v30 }
 0x394   : > { %3785 = vmatpush1.bf16.msra.mxu1 %v5452_v46  ;;  %1339 = vmatprep.mubr.f32.mxu0 %v4939_v3  ;;  %v1215_v44 = vld [vmem:[%s5293_s21 + $0x140] sm:$0xff]  ;;  %v5560_v47 = vpack.c.bf16 %v1220_v36, %v1216_v35  ;;  %v1217_v48 = vld [vmem:[%s5293_s21 + $0x150] sm:$0xff]  ;;  %v5565_v51 = vpack.c.bf16 %v1222_v41, %v1218_v40  ;;  %v1224_v52 = vld [vmem:[%s5293_s21 + $0x188] sm:$0xff]  ;;  %v1259_v36 = vsub.s32 2, %v5482_v2  ;;  %v1263_v40 = vsub.s32 3, %v5482_v2 }
 0x395   : > { %1452 = vmatprep.mubr.f32.mxu1 %v4939_v3  ;;  %3755 = vmatprep.subr.bf16.mxu0 %v5457_v49  ;;  %4292 = vst [vmem:[#allocation3 + $0x20] sm:$0xff] %v5533_v32  ;;  %4298 = vst [vmem:[#allocation3 + $0x40] sm:$0xff] %v5533_v32  ;;  %v1219_v45 = vld [vmem:[%s5293_s21 + $0x160] sm:$0xff]  ;;  %v1221_v50 = vld [vmem:[%s5293_s21 + $0x170] sm:$0xff] }
 0x396   : > { %1340 = vmatmul.mubr.f32.gmra.mrb[2].mxu0 %v1240_v56  ;;  %3787 = vmatprep.subr.bf16.mxu1 %v5461_v53  ;;  %4304 = vst [vmem:[#allocation3 + $0x60] sm:$0xff] %v5533_v32  ;;  %4310 = vst [vmem:[#allocation3 + $0x80] sm:$0xff] %v5533_v32  ;;  %v1228_v54 = vld [vmem:[%s5293_s21 + $0x1a8] sm:$0xff]  ;;  %v1226_v58 = vld [vmem:[%s5293_s21 + $0x198] sm:$0xff]  ;;  %v5576_v61 = vpack.c.bf16 %v1221_v50, %v1217_v48  ;;  %v1260_v41 = vrot.slane %v5524_v28, %v1259_v36 }
 0x397   : > { %1453 = vmatmul.mubr.f32.gmra.mrb[2].mxu1 %v1240_v56  ;;  %3757 = vmatpush1.bf16.msra.mxu0 %v5466_v57  ;;  %4316 = vst [vmem:[#allocation3 + $0xa0] sm:$0xff] %v5533_v32  ;;  %4322 = vst [vmem:[#allocation3 + $0xc0] sm:$0xff] %v5533_v32  ;;  %v1244_v55 = vld [vmem:[#allocation2 + $0x28] sm:$0xff]  ;;  %v5570_v56 = vpack.c.bf16 %v1219_v45, %v1215_v44  ;;  %v1230_v59 = vld [vmem:[%s5293_s21 + $0x1b8] sm:$0xff]  ;;  %v5582_v1 = vpack.c.bf16 %v1228_v54, %v1224_v52 }
 0x398   : > { %3789 = vmatpush1.bf16.msra.mxu1 %v5472_v60  ;;  %1345 = vmatprep.mubr.f32.mxu0 %v4939_v3  ;;  %4328 = vst [vmem:[#allocation3 + $0xe0] sm:$0xff] %v5533_v32  ;;  %v1223_v62 = vld [vmem:[%s5293_s21 + $0x180] sm:$0xff]  ;;  %v1225_v5 = vld [vmem:[%s5293_s21 + $0x190] sm:$0xff]  ;;  %v1232_v9 = vld [vmem:[%s5293_s21 + $0x1c8] sm:$0xff]  ;;  %v1264_v45 = vrot.slane %v5524_v28, %v1263_v40 }
 0x399   : > { %1458 = vmatprep.mubr.f32.mxu1 %v4939_v3  ;;  %3759 = vmatprep.subr.bf16.mxu0 %v5478_v63  ;;  %v1227_v0 = vld [vmem:[%s5293_s21 + $0x1a0] sm:$0xff]  ;;  %v1229_v6 = vld [vmem:[%s5293_s21 + $0x1b0] sm:$0xff]  ;;  %v1236_v10 = vld [vmem:[%s5293_s21 + $0x1e8] sm:$0xff]  ;;  %4340 = vst [vmem:[#allocation3 + $0x30] sm:$0xff] %v1260_v41 }
 0x39a   : > { %1346 = vmatmul.mubr.f32.gmra.mrb[4].mxu0 %v1241_v7  ;;  %3791 = vmatprep.subr.bf16.mxu1 %v5485_v4  ;;  %v1245_v12 = vld [vmem:[#allocation2 + $0x30] sm:$0xff]  ;;  %v5592_v13 = vpack.c.bf16 %v1227_v0, %v1223_v62  ;;  %v1234_v15 = vld [vmem:[%s5293_s21 + $0x1d8] sm:$0xff]  ;;  %v5598_v17 = vpack.c.bf16 %v1229_v6, %v1225_v5  ;;  %v1231_v19 = vld [vmem:[%s5293_s21 + $0x1c0] sm:$0xff]  ;;  %4346 = vst [vmem:[#allocation3 + $0x50] sm:$0xff] %v1260_v41 }
 0x39b   : > { %1459 = vmatmul.mubr.f32.gmra.mrb[4].mxu1 %v1241_v7  ;;  %3761 = vmatpush1.bf16.msra.mxu0 %v5490_v8  ;;  %v5587_v7 = vpack.c.bf16 %v1230_v59, %v1226_v58  ;;  %v1238_v16 = vld [vmem:[%s5293_s21 + $0x1f8] sm:$0xff]  ;;  %v1235_v20 = vld [vmem:[%s5293_s21 + $0x1e0] sm:$0xff]  ;;  %v1233_v23 = vld [vmem:[%s5293_s21 + $0x1d0] sm:$0xff]  ;;  %4352 = vst [vmem:[#allocation3 + $0x70] sm:$0xff] %v1260_v41 }
 0x39c   : > { %3793 = vmatpush1.bf16.msra.mxu1 %v5496_v11  ;;  %1351 = vmatprep.mubr.f32.mxu0 %v4939_v3  ;;  %v1237_v24 = vld [vmem:[%s5293_s21 + $0x1f0] sm:$0xff]  ;;  %v5609_v26 = vpack.c.bf16 %v1238_v16, %v1234_v15  ;;  %v1246_v27 = vld [vmem:[#allocation2 + $0x38] sm:$0xff]  ;;  %v5612_v30 = vpack.c.bf16 %v1235_v20, %v1231_v19  ;;  %v1528_v35 = vld [vmem:[%s5310_s23] sm:$0xff]  ;;  %4358 = vst [vmem:[#allocation3 + $0x90] sm:$0xff] %v1260_v41 }
 0x39d   : > { %1464 = vmatprep.mubr.f32.mxu1 %v4939_v3  ;;  %3763 = vmatprep.subr.bf16.mxu0 %v5502_v14  ;;  %v5616_v31 = vpack.c.bf16 %v1237_v24, %v1233_v23  ;;  %4364 = vst [vmem:[#allocation3 + $0xb0] sm:$0xff] %v1260_v41  ;;  %4370 = vst [vmem:[#allocation3 + $0xd0] sm:$0xff] %v1260_v41  ;;  %v1529_v15 = vld [vmem:[%s5315_s16] sm:$0xff] }
 0x39e   : > { %1352 = vmatmul.mubr.f32.gmra.mrb[6].mxu0 %v1242_v21  ;;  %3795 = vmatprep.subr.bf16.mxu1 %v5508_v18  ;;  %4376 = vst [vmem:[#allocation3 + $0xf0] sm:$0xff] %v1260_v41  ;;  %4343 = vst [vmem:[#allocation3 + $0x38] sm:$0xff] %v1264_v45 }
 0x39f   : > { %1465 = vmatmul.mubr.f32.gmra.mrb[6].mxu1 %v1242_v21  ;;  %3765 = vmatpush1.bf16.msra.mxu0 %v5513_v22  ;;  %v5604_v21 = vpack.c.bf16 %v1236_v10, %v1232_v9  ;;  %4349 = vst [vmem:[#allocation3 + $0x58] sm:$0xff] %v1264_v45  ;;  %4355 = vst [vmem:[#allocation3 + $0x78] sm:$0xff] %v1264_v45 }
 0x3a0   : > { %3797 = vmatpush1.bf16.msra.mxu1 %v5519_v25  ;;  %1357 = vmatprep.mubr.f32.mxu0 %v4939_v3  ;;  %4361 = vst [vmem:[#allocation3 + $0x98] sm:$0xff] %v1264_v45  ;;  %4367 = vst [vmem:[#allocation3 + $0xb8] sm:$0xff] %v1264_v45 }
 0x3a1   : > { %1470 = vmatprep.mubr.f32.mxu1 %v4939_v3  ;;  %3767 = vmatprep.subr.bf16.mxu0 %v5528_v29  ;;  %4373 = vst [vmem:[#allocation3 + $0xd8] sm:$0xff] %v1264_v45  ;;  %4379 = vst [vmem:[#allocation3 + $0xf8] sm:$0xff] %v1264_v45 }
 0x3a2   : > { %1358 = vmatmul.mubr.f32.gmra.mrb[8].mxu0 %v1243_v38  ;;  %3799 = vmatprep.subr.bf16.mxu1 %v5536_v33 }
 0x3a3   : > { %1471 = vmatmul.mubr.f32.gmra.mrb[8].mxu1 %v1243_v38  ;;  %3769 = vmatpush1.bf16.msra.mxu0 %v5541_v39  ;;  %v1255_v38 = vsub.s32 1, %v5482_v2 }
 0x3a4   : > { %3801 = vmatpush1.bf16.msra.mxu1 %v5554_v42  ;;  %1363 = vmatprep.mubr.f32.mxu0 %v4939_v3 }
 0x3a5   : > { %1476 = vmatprep.mubr.f32.mxu1 %v4939_v3  ;;  %3771 = vmatprep.subr.bf16.mxu0 %v5560_v47  ;;  %v1256_v44 = vrot.slane %v5524_v28, %v1255_v38 }
 0x3a6   : > { %1364 = vmatmul.mubr.f32.gmra.mrb[10].mxu0 %v1244_v55  ;;  %3803 = vmatprep.subr.bf16.mxu1 %v5565_v51 }
 0x3a7   : > { %1477 = vmatmul.mubr.f32.gmra.mrb[10].mxu1 %v1244_v55  ;;  %3773 = vmatpush1.bf16.msra.mxu0 %v5570_v56  ;;  %4295 = vst [vmem:[#allocation3 + $0x28] sm:$0xff] %v1256_v44  ;;  %4301 = vst [vmem:[#allocation3 + $0x48] sm:$0xff] %v1256_v44 }
 0x3a8   : > { %3805 = vmatpush1.bf16.msra.mxu1 %v5576_v61  ;;  %1369 = vmatprep.mubr.f32.mxu0 %v4939_v3  ;;  %4307 = vst [vmem:[#allocation3 + $0x68] sm:$0xff] %v1256_v44  ;;  %4313 = vst [vmem:[#allocation3 + $0x88] sm:$0xff] %v1256_v44 }
 0x3a9   : > { %1482 = vmatprep.mubr.f32.mxu1 %v4939_v3  ;;  %3775 = vmatprep.subr.bf16.mxu0 %v5582_v1  ;;  %4319 = vst [vmem:[#allocation3 + $0xa8] sm:$0xff] %v1256_v44  ;;  %4325 = vst [vmem:[#allocation3 + $0xc8] sm:$0xff] %v1256_v44 }
 0x3aa   : > { %1370 = vmatmul.mubr.f32.gmra.mrb[12].mxu0 %v1245_v12  ;;  %3807 = vmatprep.subr.bf16.mxu1 %v5587_v7  ;;  %4331 = vst [vmem:[#allocation3 + $0xe8] sm:$0xff] %v1256_v44 }
 0x3ab   : > { %1483 = vmatmul.mubr.f32.gmra.mrb[12].mxu1 %v1245_v12  ;;  %3777 = vmatpush1.bf16.msra.mxu0 %v5592_v13 }
 0x3ac   : > { %3809 = vmatpush1.bf16.msra.mxu1 %v5598_v17  ;;  %1375 = vmatprep.mubr.f32.mxu0 %v4939_v3 }
 0x3ad   : > { %1488 = vmatprep.mubr.f32.mxu1 %v4939_v3  ;;  %3779 = vmatprep.subr.bf16.mxu0 %v5604_v21 }
 0x3ae   : > { %1376 = vmatmul.mubr.f32.gmra.mrb[14].mxu0 %v1246_v27  ;;  %3811 = vmatprep.subr.bf16.mxu1 %v5609_v26 }
 0x3af   : > { %1489 = vmatmul.mubr.f32.gmra.mrb[14].mxu1 %v1246_v27  ;;  %3781 = vmatpush1.bf16.msra.mxu0 %v5612_v30 }
 0x3b0   : > { %3813 = vmatpush1.bf16.msra.mxu1 %v5616_v31  ;;  %1601 = vmatprep.mubr.f32.mxu0 %v4939_v3 }
 0x3b1   : > { %1672 = vmatprep.mubr.f32.mxu1 %v4939_v3 }
 0x3b2   : > { %1602 = vmatmul.mubr.f32.vlgmr.msra.gmra.mrb[0].mxu0 %v1528_v35 }
 0x3b3   : > { %1673 = vmatmul.mubr.f32.vlgmr.msra.gmra.mrb[0].mxu1 %v1528_v35 }
 0x485   : > { %v1603_v2 = vpop.f32.mrb[0].mxu0 }
 0x486   : > { %v4288_v28 = vadd.f32 %v1603_v2, %v5533_v32  ;;  %v1674_v48 = vpop.f32.mrb[0].mxu1  ;;  %v1605_v50 = vpop.f32.mrb[1].mxu0 }
 0x487   : > { %v4291_v52 = vadd.f32 %v1605_v50, %v1256_v44  ;;  %v1676_v54 = vpop.f32.mrb[1].mxu1  ;;  %v4336_v0 = vadd.f32 %v1674_v48, %v1260_v41 }
 0x488   : > { %v3367_v55 = vmul.f32 -1.442695, %v4288_v28  ;;  %v4339_v59 = vadd.f32 %v1676_v54, %v1264_v45 }
 0x489   : > { %v3368_v58 = vmul.f32 -1.442695, %v4291_v52 }
 0x48a   : > { %4516 = vpow2.f32 %v3367_v55  ;;  %v3369_v62 = vmul.f32 -1.442695, %v4339_v59 }
 0x48b   : > { %4518 = vpow2.f32 %v3368_v58 }
 0x48c   : > { %4520 = vpow2.f32 %v3369_v62 }
 0x48d   : > { %4522 = vtanh.f32 %v4336_v0 }
 0x494   : > { %v4517_v5 = vpop.eup %4516 }
 0x495   : > { %v4519_v6 = vpop.eup %4518  ;;  %v1686_v9 = vadd.f32 1.0, %v4517_v5 }
 0x496   : > { %v1692_v10 = vadd.f32 1.0, %v4519_v6  ;;  %v4521_v32 = vpop.eup %4520 }
 0x497   : > { %4524 = vrcp.f32 %v1686_v9  ;;  %v4523_v12 = vpop.eup %4522  ;;  %v1699_v23 = vadd.f32 1.0, %v4521_v32 }
 0x498   : > { %4526 = vrcp.f32 %v1692_v10 }
 0x499   : > { %4528 = vrcp.f32 %v1699_v23 }
 0x4a1   : > { %v4525_v16 = vpop.eup %4524 }
 0x4a2   : > { %v4527_v19 = vpop.eup %4526  ;;  %v1703_v20 = vmul.f32 %v4525_v16, %v4523_v12 }
 0x4a3   : > { %v1702_v24 = vmul.f32 %v4527_v19, %v1529_v15  ;;  %v4529_v35 = vpop.eup %4528 }
 0x4a5   : > { %v5634_v27 = vadd.f32 %v1703_v20, %v1702_v24 }
 0x4a7   : > { %4530 = vtanh.f32 %v5634_v27 }
 0x4ac   : > { %1709 = sbr.rel (%p3370_p6) target bundleno = 1205 (0x4b5), region = 104 }
 0x4b1   : > { %v4531_v36 = vpop.eup %4530 }
 0x4b2   : > { %v1706_v38 = vmul.f32 %v4531_v36, %v4529_v35 }
 0x4b4   : > { %1710 = vst [vmem:[#allocation2] sm:$0xff] %v1706_v38 }
 0x4b5 PF: > { %3815 = vmatprep.subr.bf16.mxu0 %v5437_v34  ;;  %3847 = vmatprep.subr.bf16.mxu1 %v5441_v37  ;;  %v4293_v40 = vld [vmem:[#allocation3 + $0x20] sm:$0xff]  ;;  %v4296_v41 = vld [vmem:[#allocation3 + $0x28] sm:$0xff]  ;;  %v4344_v55 = vld [vmem:[#allocation3 + $0x38] sm:$0xff] }
 0x4b6   : > { %3817 = vmatpush1.bf16.msra.mxu0 %v5447_v43  ;;  %3849 = vmatpush1.bf16.msra.mxu1 %v5452_v46  ;;  %v4341_v59 = vld [vmem:[#allocation3 + $0x30] sm:$0xff] }
 0x4b7   : > { %3819 = vmatprep.subr.bf16.mxu0 %v5457_v49  ;;  %3851 = vmatprep.subr.bf16.mxu1 %v5461_v53 }
 0x4b8   : > { %1782 = vmatprep.mubr.f32.mxu0 %v4939_v3  ;;  %1853 = vmatprep.mubr.f32.mxu1 %v4939_v3 }
 0x4ba   : > { %3821 = vmatpush1.bf16.msra.mxu0 %v5466_v57  ;;  %3853 = vmatpush1.bf16.msra.mxu1 %v5472_v60 }
 0x4bb   : > { %3823 = vmatprep.subr.bf16.mxu0 %v5478_v63  ;;  %3855 = vmatprep.subr.bf16.mxu1 %v5485_v4 }
 0x4be   : > { %3825 = vmatpush1.bf16.msra.mxu0 %v5490_v8  ;;  %3857 = vmatpush1.bf16.msra.mxu1 %v5496_v11 }
 0x4bf   : > { %3827 = vmatprep.subr.bf16.mxu0 %v5502_v14  ;;  %3859 = vmatprep.subr.bf16.mxu1 %v5508_v18 }
 0x4c2   : > { %3829 = vmatpush1.bf16.msra.mxu0 %v5513_v22  ;;  %3861 = vmatpush1.bf16.msra.mxu1 %v5519_v25 }
 0x4c3   : > { %3831 = vmatprep.subr.bf16.mxu0 %v5528_v29  ;;  %3863 = vmatprep.subr.bf16.mxu1 %v5536_v33 }
 0x4c6   : > { %3833 = vmatpush1.bf16.msra.mxu0 %v5541_v39  ;;  %3865 = vmatpush1.bf16.msra.mxu1 %v5554_v42 }
 0x4c7   : > { %3835 = vmatprep.subr.bf16.mxu0 %v5560_v47  ;;  %3867 = vmatprep.subr.bf16.mxu1 %v5565_v51 }
 0x4ca   : > { %3837 = vmatpush1.bf16.msra.mxu0 %v5570_v56  ;;  %3869 = vmatpush1.bf16.msra.mxu1 %v5576_v61 }
 0x4cb   : > { %3839 = vmatprep.subr.bf16.mxu0 %v5582_v1  ;;  %3871 = vmatprep.subr.bf16.mxu1 %v5587_v7 }
 0x4ce   : > { %3841 = vmatpush1.bf16.msra.mxu0 %v5592_v13  ;;  %3873 = vmatpush1.bf16.msra.mxu1 %v5598_v17 }
 0x4cf   : > { %3843 = vmatprep.subr.bf16.mxu0 %v5604_v21  ;;  %3875 = vmatprep.subr.bf16.mxu1 %v5609_v26 }
 0x4d2   : > { %3845 = vmatpush1.bf16.msra.mxu0 %v5612_v30  ;;  %3877 = vmatpush1.bf16.msra.mxu1 %v5616_v31 }
 0x4d5   : > { %1783 = vmatmul.mubr.f32.vlgmr.msra.gmra.mrb[2].mxu0 %v1706_v38  ;;  %1854 = vmatmul.mubr.f32.vlgmr.msra.gmra.mrb[2].mxu1 %v1706_v38 }
 0x5a8   : > { %v1784_v44 = vpop.f32.mrb[2].mxu0  ;;  %v1855_v45 = vpop.f32.mrb[2].mxu1 }
 0x5a9   : > { %v4294_v2 = vadd.f32 %v4293_v40, %v1784_v44  ;;  %v1786_v28 = vpop.f32.mrb[3].mxu0  ;;  %v1857_v48 = vpop.f32.mrb[3].mxu1  ;;  %v4342_v0 = vadd.f32 %v4341_v59, %v1855_v45 }
 0x5aa   : > { %v4297_v50 = vadd.f32 %v4296_v41, %v1786_v28  ;;  %v4345_v58 = vadd.f32 %v4344_v55, %v1857_v48 }
 0x5ab   : > { %v3371_v52 = vmul.f32 -1.442695, %v4294_v2 }
 0x5ac   : > { %v3372_v54 = vmul.f32 -1.442695, %v4297_v50  ;;  %v3373_v62 = vmul.f32 -1.442695, %v4345_v58 }
 0x5ad   : > { %4532 = vpow2.f32 %v3371_v52 }
 0x5ae   : > { %4534 = vpow2.f32 %v3372_v54 }
 0x5af   : > { %4536 = vpow2.f32 %v3373_v62 }
 0x5b0   : > { %4538 = vtanh.f32 %v4342_v0 }
 0x5b7   : > { %v4533_v5 = vpop.eup %4532 }
 0x5b8   : > { %v4535_v6 = vpop.eup %4534  ;;  %v1867_v9 = vadd.f32 1.0, %v4533_v5 }
 0x5b9   : > { %v1873_v10 = vadd.f32 1.0, %v4535_v6  ;;  %v4537_v32 = vpop.eup %4536 }
 0x5ba   : > { %4540 = vrcp.f32 %v1867_v9  ;;  %v4539_v12 = vpop.eup %4538  ;;  %v1880_v16 = vadd.f32 1.0, %v4537_v32 }
 0x5bb   : > { %4542 = vrcp.f32 %v1873_v10 }
 0x5bc   : > { %4544 = vrcp.f32 %v1880_v16 }
 0x5c4   : > { %v4541_v15 = vpop.eup %4540 }
 0x5c5   : > { %v4543_v19 = vpop.eup %4542  ;;  %v1884_v20 = vmul.f32 %v4541_v15, %v4539_v12 }
 0x5c6   : > { %v1883_v23 = vmul.f32 %v4543_v19, %v5634_v27  ;;  %v4545_v35 = vpop.eup %4544 }
 0x5c8   : > { %v5675_v24 = vadd.f32 %v1884_v20, %v1883_v23 }
 0x5ca   : > { %4546 = vtanh.f32 %v5675_v24 }
 0x5cf   : > { %1890 = sbr.rel (%p3370_p6) target bundleno = 1496 (0x5d8), region = 108 }
 0x5d4   : > { %v4547_v36 = vpop.eup %4546 }
 0x5d5   : > { %v1887_v38 = vmul.f32 %v4547_v36, %v4545_v35 }
 0x5d7   : > { %1892 = vst [vmem:[#allocation2 + $0x8] sm:$0xff] %v1887_v38 }
 0x5d8 PF: > { %3879 = vmatprep.subr.bf16.mxu0 %v5437_v34  ;;  %3911 = vmatprep.subr.bf16.mxu1 %v5441_v37  ;;  %v4299_v27 = vld [vmem:[#allocation3 + $0x40] sm:$0xff]  ;;  %v4302_v40 = vld [vmem:[#allocation3 + $0x48] sm:$0xff]  ;;  %v4350_v54 = vld [vmem:[#allocation3 + $0x58] sm:$0xff] }
 0x5d9   : > { %3881 = vmatpush1.bf16.msra.mxu0 %v5447_v43  ;;  %3913 = vmatpush1.bf16.msra.mxu1 %v5452_v46  ;;  %v4347_v58 = vld [vmem:[#allocation3 + $0x50] sm:$0xff] }
 0x5da   : > { %3883 = vmatprep.subr.bf16.mxu0 %v5457_v49  ;;  %3915 = vmatprep.subr.bf16.mxu1 %v5461_v53 }
 0x5db   : > { %1964 = vmatprep.mubr.f32.mxu0 %v4939_v3  ;;  %2035 = vmatprep.mubr.f32.mxu1 %v4939_v3 }
 0x5dd   : > { %3885 = vmatpush1.bf16.msra.mxu0 %v5466_v57  ;;  %3917 = vmatpush1.bf16.msra.mxu1 %v5472_v60 }
 0x5de   : > { %3887 = vmatprep.subr.bf16.mxu0 %v5478_v63  ;;  %3919 = vmatprep.subr.bf16.mxu1 %v5485_v4 }
 0x5e1   : > { %3889 = vmatpush1.bf16.msra.mxu0 %v5490_v8  ;;  %3921 = vmatpush1.bf16.msra.mxu1 %v5496_v11 }
 0x5e2   : > { %3891 = vmatprep.subr.bf16.mxu0 %v5502_v14  ;;  %3923 = vmatprep.subr.bf16.mxu1 %v5508_v18 }
 0x5e5   : > { %3893 = vmatpush1.bf16.msra.mxu0 %v5513_v22  ;;  %3925 = vmatpush1.bf16.msra.mxu1 %v5519_v25 }
 0x5e6   : > { %3895 = vmatprep.subr.bf16.mxu0 %v5528_v29  ;;  %3927 = vmatprep.subr.bf16.mxu1 %v5536_v33 }
 0x5e9   : > { %3897 = vmatpush1.bf16.msra.mxu0 %v5541_v39  ;;  %3929 = vmatpush1.bf16.msra.mxu1 %v5554_v42 }
 0x5ea   : > { %3899 = vmatprep.subr.bf16.mxu0 %v5560_v47  ;;  %3931 = vmatprep.subr.bf16.mxu1 %v5565_v51 }
 0x5ed   : > { %3901 = vmatpush1.bf16.msra.mxu0 %v5570_v56  ;;  %3933 = vmatpush1.bf16.msra.mxu1 %v5576_v61 }
 0x5ee   : > { %3903 = vmatprep.subr.bf16.mxu0 %v5582_v1  ;;  %3935 = vmatprep.subr.bf16.mxu1 %v5587_v7 }
 0x5f1   : > { %3905 = vmatpush1.bf16.msra.mxu0 %v5592_v13  ;;  %3937 = vmatpush1.bf16.msra.mxu1 %v5598_v17 }
 0x5f2   : > { %3907 = vmatprep.subr.bf16.mxu0 %v5604_v21  ;;  %3939 = vmatprep.subr.bf16.mxu1 %v5609_v26 }
 0x5f5   : > { %3909 = vmatpush1.bf16.msra.mxu0 %v5612_v30  ;;  %3941 = vmatpush1.bf16.msra.mxu1 %v5616_v31 }
 0x5f8   : > { %1965 = vmatmul.mubr.f32.vlgmr.msra.gmra.mrb[4].mxu0 %v1887_v38  ;;  %2036 = vmatmul.mubr.f32.vlgmr.msra.gmra.mrb[4].mxu1 %v1887_v38 }
 0x6cb   : > { %v1966_v41 = vpop.f32.mrb[4].mxu0  ;;  %v2037_v44 = vpop.f32.mrb[4].mxu1 }
 0x6cc   : > { %v4300_v45 = vadd.f32 %v4299_v27, %v1966_v41  ;;  %v1968_v2 = vpop.f32.mrb[5].mxu0  ;;  %v2039_v28 = vpop.f32.mrb[5].mxu1  ;;  %v4348_v62 = vadd.f32 %v4347_v58, %v2037_v44 }
 0x6cd   : > { %v4303_v48 = vadd.f32 %v4302_v40, %v1968_v2  ;;  %v4351_v55 = vadd.f32 %v4350_v54, %v2039_v28 }
 0x6ce   : > { %v3375_v50 = vmul.f32 -1.442695, %v4300_v45 }
 0x6cf   : > { %v3376_v52 = vmul.f32 -1.442695, %v4303_v48  ;;  %v3377_v59 = vmul.f32 -1.442695, %v4351_v55 }
 0x6d0   : > { %4548 = vpow2.f32 %v3375_v50 }
 0x6d1   : > { %4550 = vpow2.f32 %v3376_v52 }
 0x6d2   : > { %4552 = vpow2.f32 %v3377_v59 }
 0x6d3   : > { %4554 = vtanh.f32 %v4348_v62 }
 0x6da   : > { %v4549_v0 = vpop.eup %4548 }
 0x6db   : > { %v4551_v5 = vpop.eup %4550  ;;  %v2049_v6 = vadd.f32 1.0, %v4549_v0 }
 0x6dc   : > { %v2055_v9 = vadd.f32 1.0, %v4551_v5  ;;  %v4553_v10 = vpop.eup %4552 }
 0x6dd   : > { %4556 = vrcp.f32 %v2049_v6  ;;  %v4555_v32 = vpop.eup %4554  ;;  %v2062_v15 = vadd.f32 1.0, %v4553_v10 }
 0x6de   : > { %4558 = vrcp.f32 %v2055_v9 }
 0x6df   : > { %4560 = vrcp.f32 %v2062_v15 }
 0x6e7   : > { %v4557_v12 = vpop.eup %4556 }
 0x6e8   : > { %v4559_v16 = vpop.eup %4558  ;;  %v2066_v19 = vmul.f32 %v4557_v12, %v4555_v32 }
 0x6e9   : > { %v2065_v20 = vmul.f32 %v4559_v16, %v5675_v24  ;;  %v4561_v35 = vpop.eup %4560 }
 0x6eb   : > { %v5715_v23 = vadd.f32 %v2066_v19, %v2065_v20 }
 0x6ed   : > { %4562 = vtanh.f32 %v5715_v23 }
 0x6f2   : > { %2072 = sbr.rel (%p3370_p6) target bundleno = 1787 (0x6fb), region = 112 }
 0x6f7   : > { %v4563_v36 = vpop.eup %4562 }
 0x6f8   : > { %v2069_v38 = vmul.f32 %v4563_v36, %v4561_v35 }
 0x6fa   : > { %2074 = vst [vmem:[#allocation2 + $0x10] sm:$0xff] %v2069_v38 }
 0x6fb PF: > { %3943 = vmatprep.subr.bf16.mxu0 %v5437_v34  ;;  %3975 = vmatprep.subr.bf16.mxu1 %v5441_v37  ;;  %v4305_v24 = vld [vmem:[#allocation3 + $0x60] sm:$0xff]  ;;  %v4308_v27 = vld [vmem:[#allocation3 + $0x68] sm:$0xff]  ;;  %v4356_v52 = vld [vmem:[#allocation3 + $0x78] sm:$0xff] }
 0x6fc   : > { %3945 = vmatpush1.bf16.msra.mxu0 %v5447_v43  ;;  %3977 = vmatpush1.bf16.msra.mxu1 %v5452_v46  ;;  %v4353_v55 = vld [vmem:[#allocation3 + $0x70] sm:$0xff] }
 0x6fd   : > { %3947 = vmatprep.subr.bf16.mxu0 %v5457_v49  ;;  %3979 = vmatprep.subr.bf16.mxu1 %v5461_v53 }
 0x6fe   : > { %2146 = vmatprep.mubr.f32.mxu0 %v4939_v3  ;;  %2217 = vmatprep.mubr.f32.mxu1 %v4939_v3 }
 0x700   : > { %3949 = vmatpush1.bf16.msra.mxu0 %v5466_v57  ;;  %3981 = vmatpush1.bf16.msra.mxu1 %v5472_v60 }
 0x701   : > { %3951 = vmatprep.subr.bf16.mxu0 %v5478_v63  ;;  %3983 = vmatprep.subr.bf16.mxu1 %v5485_v4 }
 0x704   : > { %3953 = vmatpush1.bf16.msra.mxu0 %v5490_v8  ;;  %3985 = vmatpush1.bf16.msra.mxu1 %v5496_v11 }
 0x705   : > { %3955 = vmatprep.subr.bf16.mxu0 %v5502_v14  ;;  %3987 = vmatprep.subr.bf16.mxu1 %v5508_v18 }
 0x708   : > { %3957 = vmatpush1.bf16.msra.mxu0 %v5513_v22  ;;  %3989 = vmatpush1.bf16.msra.mxu1 %v5519_v25 }
 0x709   : > { %3959 = vmatprep.subr.bf16.mxu0 %v5528_v29  ;;  %3991 = vmatprep.subr.bf16.mxu1 %v5536_v33 }
 0x70c   : > { %3961 = vmatpush1.bf16.msra.mxu0 %v5541_v39  ;;  %3993 = vmatpush1.bf16.msra.mxu1 %v5554_v42 }
 0x70d   : > { %3963 = vmatprep.subr.bf16.mxu0 %v5560_v47  ;;  %3995 = vmatprep.subr.bf16.mxu1 %v5565_v51 }
 0x710   : > { %3965 = vmatpush1.bf16.msra.mxu0 %v5570_v56  ;;  %3997 = vmatpush1.bf16.msra.mxu1 %v5576_v61 }
 0x711   : > { %3967 = vmatprep.subr.bf16.mxu0 %v5582_v1  ;;  %3999 = vmatprep.subr.bf16.mxu1 %v5587_v7 }
 0x714   : > { %3969 = vmatpush1.bf16.msra.mxu0 %v5592_v13  ;;  %4001 = vmatpush1.bf16.msra.mxu1 %v5598_v17 }
 0x715   : > { %3971 = vmatprep.subr.bf16.mxu0 %v5604_v21  ;;  %4003 = vmatprep.subr.bf16.mxu1 %v5609_v26 }
 0x718   : > { %3973 = vmatpush1.bf16.msra.mxu0 %v5612_v30  ;;  %4005 = vmatpush1.bf16.msra.mxu1 %v5616_v31 }
 0x71b   : > { %2147 = vmatmul.mubr.f32.vlgmr.msra.gmra.mrb[6].mxu0 %v2069_v38  ;;  %2218 = vmatmul.mubr.f32.vlgmr.msra.gmra.mrb[6].mxu1 %v2069_v38 }
 0x7ee   : > { %v2148_v40 = vpop.f32.mrb[6].mxu0  ;;  %v2219_v41 = vpop.f32.mrb[6].mxu1 }
 0x7ef   : > { %v4306_v44 = vadd.f32 %v4305_v24, %v2148_v40  ;;  %v2150_v45 = vpop.f32.mrb[7].mxu0  ;;  %v2221_v2 = vpop.f32.mrb[7].mxu1  ;;  %v4354_v59 = vadd.f32 %v4353_v55, %v2219_v41 }
 0x7f0   : > { %v4309_v28 = vadd.f32 %v4308_v27, %v2150_v45  ;;  %v4357_v54 = vadd.f32 %v4356_v52, %v2221_v2 }
 0x7f1   : > { %v3379_v48 = vmul.f32 -1.442695, %v4306_v44 }
 0x7f2   : > { %v3380_v50 = vmul.f32 -1.442695, %v4309_v28  ;;  %v3381_v58 = vmul.f32 -1.442695, %v4357_v54 }
 0x7f3   : > { %4564 = vpow2.f32 %v3379_v48 }
 0x7f4   : > { %4566 = vpow2.f32 %v3380_v50 }
 0x7f5   : > { %4568 = vpow2.f32 %v3381_v58 }
 0x7f6   : > { %4570 = vtanh.f32 %v4354_v59 }
 0x7fd   : > { %v4565_v62 = vpop.eup %4564 }
 0x7fe   : > { %v4567_v0 = vpop.eup %4566  ;;  %v2231_v5 = vadd.f32 1.0, %v4565_v62 }
 0x7ff   : > { %v2237_v6 = vadd.f32 1.0, %v4567_v0  ;;  %v4569_v9 = vpop.eup %4568 }
 0x800   : > { %4572 = vrcp.f32 %v2231_v5  ;;  %v4571_v10 = vpop.eup %4570  ;;  %v2244_v12 = vadd.f32 1.0, %v4569_v9 }
 0x801   : > { %4574 = vrcp.f32 %v2237_v6 }
 0x802   : > { %4576 = vrcp.f32 %v2244_v12 }
 0x80a   : > { %v4573_v32 = vpop.eup %4572 }
 0x80b   : > { %v4575_v15 = vpop.eup %4574  ;;  %v2248_v16 = vmul.f32 %v4573_v32, %v4571_v10 }
 0x80c   : > { %v2247_v19 = vmul.f32 %v4575_v15, %v5715_v23  ;;  %v4577_v35 = vpop.eup %4576 }
 0x80e   : > { %v5755_v20 = vadd.f32 %v2248_v16, %v2247_v19 }
 0x810   : > { %4578 = vtanh.f32 %v5755_v20 }
 0x815   : > { %2254 = sbr.rel (%p3370_p6) target bundleno = 2078 (0x81e), region = 116 }
 0x81a   : > { %v4579_v36 = vpop.eup %4578 }
 0x81b   : > { %v2251_v38 = vmul.f32 %v4579_v36, %v4577_v35 }
 0x81d   : > { %2256 = vst [vmem:[#allocation2 + $0x18] sm:$0xff] %v2251_v38 }
 0x81e PF: > { %4007 = vmatprep.subr.bf16.mxu0 %v5437_v34  ;;  %4039 = vmatprep.subr.bf16.mxu1 %v5441_v37  ;;  %v4311_v23 = vld [vmem:[#allocation3 + $0x80] sm:$0xff]  ;;  %v4314_v24 = vld [vmem:[#allocation3 + $0x88] sm:$0xff]  ;;  %v4362_v50 = vld [vmem:[#allocation3 + $0x98] sm:$0xff] }
 0x81f   : > { %4009 = vmatpush1.bf16.msra.mxu0 %v5447_v43  ;;  %4041 = vmatpush1.bf16.msra.mxu1 %v5452_v46  ;;  %v4359_v54 = vld [vmem:[#allocation3 + $0x90] sm:$0xff] }
 0x820   : > { %4011 = vmatprep.subr.bf16.mxu0 %v5457_v49  ;;  %4043 = vmatprep.subr.bf16.mxu1 %v5461_v53 }
 0x821   : > { %2328 = vmatprep.mubr.f32.mxu0 %v4939_v3  ;;  %2399 = vmatprep.mubr.f32.mxu1 %v4939_v3 }
 0x823   : > { %4013 = vmatpush1.bf16.msra.mxu0 %v5466_v57  ;;  %4045 = vmatpush1.bf16.msra.mxu1 %v5472_v60 }
 0x824   : > { %4015 = vmatprep.subr.bf16.mxu0 %v5478_v63  ;;  %4047 = vmatprep.subr.bf16.mxu1 %v5485_v4 }
 0x827   : > { %4017 = vmatpush1.bf16.msra.mxu0 %v5490_v8  ;;  %4049 = vmatpush1.bf16.msra.mxu1 %v5496_v11 }
 0x828   : > { %4019 = vmatprep.subr.bf16.mxu0 %v5502_v14  ;;  %4051 = vmatprep.subr.bf16.mxu1 %v5508_v18 }
 0x82b   : > { %4021 = vmatpush1.bf16.msra.mxu0 %v5513_v22  ;;  %4053 = vmatpush1.bf16.msra.mxu1 %v5519_v25 }
 0x82c   : > { %4023 = vmatprep.subr.bf16.mxu0 %v5528_v29  ;;  %4055 = vmatprep.subr.bf16.mxu1 %v5536_v33 }
 0x82f   : > { %4025 = vmatpush1.bf16.msra.mxu0 %v5541_v39  ;;  %4057 = vmatpush1.bf16.msra.mxu1 %v5554_v42 }
 0x830   : > { %4027 = vmatprep.subr.bf16.mxu0 %v5560_v47  ;;  %4059 = vmatprep.subr.bf16.mxu1 %v5565_v51 }
 0x833   : > { %4029 = vmatpush1.bf16.msra.mxu0 %v5570_v56  ;;  %4061 = vmatpush1.bf16.msra.mxu1 %v5576_v61 }
 0x834   : > { %4031 = vmatprep.subr.bf16.mxu0 %v5582_v1  ;;  %4063 = vmatprep.subr.bf16.mxu1 %v5587_v7 }
 0x837   : > { %4033 = vmatpush1.bf16.msra.mxu0 %v5592_v13  ;;  %4065 = vmatpush1.bf16.msra.mxu1 %v5598_v17 }
 0x838   : > { %4035 = vmatprep.subr.bf16.mxu0 %v5604_v21  ;;  %4067 = vmatprep.subr.bf16.mxu1 %v5609_v26 }
 0x83b   : > { %4037 = vmatpush1.bf16.msra.mxu0 %v5612_v30  ;;  %4069 = vmatpush1.bf16.msra.mxu1 %v5616_v31 }
 0x83e   : > { %2329 = vmatmul.mubr.f32.vlgmr.msra.gmra.mrb[8].mxu0 %v2251_v38  ;;  %2400 = vmatmul.mubr.f32.vlgmr.msra.gmra.mrb[8].mxu1 %v2251_v38 }
 0x911   : > { %v2330_v27 = vpop.f32.mrb[8].mxu0  ;;  %v2401_v40 = vpop.f32.mrb[8].mxu1 }
 0x912   : > { %v4312_v41 = vadd.f32 %v4311_v23, %v2330_v27  ;;  %v2332_v44 = vpop.f32.mrb[9].mxu0  ;;  %v2403_v45 = vpop.f32.mrb[9].mxu1  ;;  %v4360_v58 = vadd.f32 %v4359_v54, %v2401_v40 }
 0x913   : > { %v4315_v2 = vadd.f32 %v4314_v24, %v2332_v44  ;;  %v4363_v52 = vadd.f32 %v4362_v50, %v2403_v45 }
 0x914   : > { %v3383_v28 = vmul.f32 -1.442695, %v4312_v41 }
 0x915   : > { %v3384_v48 = vmul.f32 -1.442695, %v4315_v2  ;;  %v3385_v55 = vmul.f32 -1.442695, %v4363_v52 }
 0x916   : > { %4580 = vpow2.f32 %v3383_v28 }
 0x917   : > { %4582 = vpow2.f32 %v3384_v48 }
 0x918   : > { %4584 = vpow2.f32 %v3385_v55 }
 0x919   : > { %4586 = vtanh.f32 %v4360_v58 }
 0x920   : > { %v4581_v59 = vpop.eup %4580 }
 0x921   : > { %v4583_v62 = vpop.eup %4582  ;;  %v2413_v0 = vadd.f32 1.0, %v4581_v59 }
 0x922   : > { %v2419_v5 = vadd.f32 1.0, %v4583_v62  ;;  %v4585_v6 = vpop.eup %4584 }
 0x923   : > { %4588 = vrcp.f32 %v2413_v0  ;;  %v4587_v9 = vpop.eup %4586  ;;  %v2426_v32 = vadd.f32 1.0, %v4585_v6 }
 0x924   : > { %4590 = vrcp.f32 %v2419_v5 }
 0x925   : > { %4592 = vrcp.f32 %v2426_v32 }
 0x92d   : > { %v4589_v10 = vpop.eup %4588 }
 0x92e   : > { %v4591_v12 = vpop.eup %4590  ;;  %v2430_v15 = vmul.f32 %v4589_v10, %v4587_v9 }
 0x92f   : > { %v2429_v16 = vmul.f32 %v4591_v12, %v5755_v20  ;;  %v4593_v35 = vpop.eup %4592 }
 0x931   : > { %v5795_v19 = vadd.f32 %v2430_v15, %v2429_v16 }
 0x933   : > { %4594 = vtanh.f32 %v5795_v19 }
 0x938   : > { %2436 = sbr.rel (%p3370_p6) target bundleno = 2369 (0x941), region = 120 }
 0x93d   : > { %v4595_v36 = vpop.eup %4594 }
 0x93e   : > { %v2433_v38 = vmul.f32 %v4595_v36, %v4593_v35 }
 0x940   : > { %2438 = vst [vmem:[#allocation2 + $0x20] sm:$0xff] %v2433_v38 }
 0x941 PF: > { %4071 = vmatprep.subr.bf16.mxu0 %v5437_v34  ;;  %4103 = vmatprep.subr.bf16.mxu1 %v5441_v37  ;;  %v4317_v20 = vld [vmem:[#allocation3 + $0xa0] sm:$0xff]  ;;  %v4320_v23 = vld [vmem:[#allocation3 + $0xa8] sm:$0xff]  ;;  %v4368_v48 = vld [vmem:[#allocation3 + $0xb8] sm:$0xff] }
 0x942   : > { %4073 = vmatpush1.bf16.msra.mxu0 %v5447_v43  ;;  %4105 = vmatpush1.bf16.msra.mxu1 %v5452_v46  ;;  %v4365_v52 = vld [vmem:[#allocation3 + $0xb0] sm:$0xff] }
 0x943   : > { %4075 = vmatprep.subr.bf16.mxu0 %v5457_v49  ;;  %4107 = vmatprep.subr.bf16.mxu1 %v5461_v53 }
 0x944   : > { %2510 = vmatprep.mubr.f32.mxu0 %v4939_v3  ;;  %2581 = vmatprep.mubr.f32.mxu1 %v4939_v3 }
 0x946   : > { %4077 = vmatpush1.bf16.msra.mxu0 %v5466_v57  ;;  %4109 = vmatpush1.bf16.msra.mxu1 %v5472_v60 }
 0x947   : > { %4079 = vmatprep.subr.bf16.mxu0 %v5478_v63  ;;  %4111 = vmatprep.subr.bf16.mxu1 %v5485_v4 }
 0x94a   : > { %4081 = vmatpush1.bf16.msra.mxu0 %v5490_v8  ;;  %4113 = vmatpush1.bf16.msra.mxu1 %v5496_v11 }
 0x94b   : > { %4083 = vmatprep.subr.bf16.mxu0 %v5502_v14  ;;  %4115 = vmatprep.subr.bf16.mxu1 %v5508_v18 }
 0x94e   : > { %4085 = vmatpush1.bf16.msra.mxu0 %v5513_v22  ;;  %4117 = vmatpush1.bf16.msra.mxu1 %v5519_v25 }
 0x94f   : > { %4087 = vmatprep.subr.bf16.mxu0 %v5528_v29  ;;  %4119 = vmatprep.subr.bf16.mxu1 %v5536_v33 }
 0x952   : > { %4089 = vmatpush1.bf16.msra.mxu0 %v5541_v39  ;;  %4121 = vmatpush1.bf16.msra.mxu1 %v5554_v42 }
 0x953   : > { %4091 = vmatprep.subr.bf16.mxu0 %v5560_v47  ;;  %4123 = vmatprep.subr.bf16.mxu1 %v5565_v51 }
 0x956   : > { %4093 = vmatpush1.bf16.msra.mxu0 %v5570_v56  ;;  %4125 = vmatpush1.bf16.msra.mxu1 %v5576_v61 }
 0x957   : > { %4095 = vmatprep.subr.bf16.mxu0 %v5582_v1  ;;  %4127 = vmatprep.subr.bf16.mxu1 %v5587_v7 }
 0x95a   : > { %4097 = vmatpush1.bf16.msra.mxu0 %v5592_v13  ;;  %4129 = vmatpush1.bf16.msra.mxu1 %v5598_v17 }
 0x95b   : > { %4099 = vmatprep.subr.bf16.mxu0 %v5604_v21  ;;  %4131 = vmatprep.subr.bf16.mxu1 %v5609_v26 }
 0x95e   : > { %4101 = vmatpush1.bf16.msra.mxu0 %v5612_v30  ;;  %4133 = vmatpush1.bf16.msra.mxu1 %v5616_v31 }
 0x961   : > { %2511 = vmatmul.mubr.f32.vlgmr.msra.gmra.mrb[10].mxu0 %v2433_v38  ;;  %2582 = vmatmul.mubr.f32.vlgmr.msra.gmra.mrb[10].mxu1 %v2433_v38 }
 0xa34   : > { %v2512_v24 = vpop.f32.mrb[10].mxu0  ;;  %v2583_v27 = vpop.f32.mrb[10].mxu1 }
 0xa35   : > { %v4318_v40 = vadd.f32 %v4317_v20, %v2512_v24  ;;  %v2514_v41 = vpop.f32.mrb[11].mxu0  ;;  %v2585_v44 = vpop.f32.mrb[11].mxu1  ;;  %v4366_v55 = vadd.f32 %v4365_v52, %v2583_v27 }
 0xa36   : > { %v4321_v45 = vadd.f32 %v4320_v23, %v2514_v41  ;;  %v4369_v50 = vadd.f32 %v4368_v48, %v2585_v44 }
 0xa37   : > { %v3387_v2 = vmul.f32 -1.442695, %v4318_v40 }
 0xa38   : > { %v3388_v28 = vmul.f32 -1.442695, %v4321_v45  ;;  %v3389_v54 = vmul.f32 -1.442695, %v4369_v50 }
 0xa39   : > { %4596 = vpow2.f32 %v3387_v2 }
 0xa3a   : > { %4598 = vpow2.f32 %v3388_v28 }
 0xa3b   : > { %4600 = vpow2.f32 %v3389_v54 }
 0xa3c   : > { %4602 = vtanh.f32 %v4366_v55 }
 0xa43   : > { %v4597_v58 = vpop.eup %4596 }
 0xa44   : > { %v4599_v59 = vpop.eup %4598  ;;  %v2595_v62 = vadd.f32 1.0, %v4597_v58 }
 0xa45   : > { %v2601_v0 = vadd.f32 1.0, %v4599_v59  ;;  %v4601_v5 = vpop.eup %4600 }
 0xa46   : > { %4604 = vrcp.f32 %v2595_v62  ;;  %v4603_v6 = vpop.eup %4602  ;;  %v2608_v10 = vadd.f32 1.0, %v4601_v5 }
 0xa47   : > { %4606 = vrcp.f32 %v2601_v0 }
 0xa48   : > { %4608 = vrcp.f32 %v2608_v10 }
 0xa50   : > { %v4605_v9 = vpop.eup %4604 }
 0xa51   : > { %v4607_v32 = vpop.eup %4606  ;;  %v2612_v12 = vmul.f32 %v4605_v9, %v4603_v6 }
 0xa52   : > { %v2611_v15 = vmul.f32 %v4607_v32, %v5795_v19  ;;  %v4609_v35 = vpop.eup %4608 }
 0xa54   : > { %v5835_v16 = vadd.f32 %v2612_v12, %v2611_v15 }
 0xa56   : > { %4610 = vtanh.f32 %v5835_v16 }
 0xa5b   : > { %2618 = sbr.rel (%p3370_p6) target bundleno = 2660 (0xa64), region = 124 }
 0xa60   : > { %v4611_v36 = vpop.eup %4610 }
 0xa61   : > { %v2615_v38 = vmul.f32 %v4611_v36, %v4609_v35 }
 0xa63   : > { %2620 = vst [vmem:[#allocation2 + $0x28] sm:$0xff] %v2615_v38 }
 0xa64 PF: > { %4135 = vmatprep.subr.bf16.mxu0 %v5437_v34  ;;  %4167 = vmatprep.subr.bf16.mxu1 %v5441_v37  ;;  %v4323_v19 = vld [vmem:[#allocation3 + $0xc0] sm:$0xff]  ;;  %v4326_v20 = vld [vmem:[#allocation3 + $0xc8] sm:$0xff]  ;;  %v4374_v28 = vld [vmem:[#allocation3 + $0xd8] sm:$0xff] }
 0xa65   : > { %4137 = vmatpush1.bf16.msra.mxu0 %v5447_v43  ;;  %4169 = vmatpush1.bf16.msra.mxu1 %v5452_v46  ;;  %v4371_v50 = vld [vmem:[#allocation3 + $0xd0] sm:$0xff] }
 0xa66   : > { %4139 = vmatprep.subr.bf16.mxu0 %v5457_v49  ;;  %4171 = vmatprep.subr.bf16.mxu1 %v5461_v53 }
 0xa67   : > { %2692 = vmatprep.mubr.f32.mxu0 %v4939_v3  ;;  %2763 = vmatprep.mubr.f32.mxu1 %v4939_v3 }
 0xa69   : > { %4141 = vmatpush1.bf16.msra.mxu0 %v5466_v57  ;;  %4173 = vmatpush1.bf16.msra.mxu1 %v5472_v60 }
 0xa6a   : > { %4143 = vmatprep.subr.bf16.mxu0 %v5478_v63  ;;  %4175 = vmatprep.subr.bf16.mxu1 %v5485_v4 }
 0xa6d   : > { %4145 = vmatpush1.bf16.msra.mxu0 %v5490_v8  ;;  %4177 = vmatpush1.bf16.msra.mxu1 %v5496_v11 }
 0xa6e   : > { %4147 = vmatprep.subr.bf16.mxu0 %v5502_v14  ;;  %4179 = vmatprep.subr.bf16.mxu1 %v5508_v18 }
 0xa71   : > { %4149 = vmatpush1.bf16.msra.mxu0 %v5513_v22  ;;  %4181 = vmatpush1.bf16.msra.mxu1 %v5519_v25 }
 0xa72   : > { %4151 = vmatprep.subr.bf16.mxu0 %v5528_v29  ;;  %4183 = vmatprep.subr.bf16.mxu1 %v5536_v33 }
 0xa75   : > { %4153 = vmatpush1.bf16.msra.mxu0 %v5541_v39  ;;  %4185 = vmatpush1.bf16.msra.mxu1 %v5554_v42 }
 0xa76   : > { %4155 = vmatprep.subr.bf16.mxu0 %v5560_v47  ;;  %4187 = vmatprep.subr.bf16.mxu1 %v5565_v51 }
 0xa79   : > { %4157 = vmatpush1.bf16.msra.mxu0 %v5570_v56  ;;  %4189 = vmatpush1.bf16.msra.mxu1 %v5576_v61 }
 0xa7a   : > { %4159 = vmatprep.subr.bf16.mxu0 %v5582_v1  ;;  %4191 = vmatprep.subr.bf16.mxu1 %v5587_v7 }
 0xa7d   : > { %4161 = vmatpush1.bf16.msra.mxu0 %v5592_v13  ;;  %4193 = vmatpush1.bf16.msra.mxu1 %v5598_v17 }
 0xa7e   : > { %4163 = vmatprep.subr.bf16.mxu0 %v5604_v21  ;;  %4195 = vmatprep.subr.bf16.mxu1 %v5609_v26 }
 0xa81   : > { %4165 = vmatpush1.bf16.msra.mxu0 %v5612_v30  ;;  %4197 = vmatpush1.bf16.msra.mxu1 %v5616_v31 }
 0xa84   : > { %2693 = vmatmul.mubr.f32.vlgmr.msra.gmra.mrb[12].mxu0 %v2615_v38  ;;  %2764 = vmatmul.mubr.f32.vlgmr.msra.gmra.mrb[12].mxu1 %v2615_v38 }
 0xb57   : > { %v2694_v23 = vpop.f32.mrb[12].mxu0  ;;  %v2765_v24 = vpop.f32.mrb[12].mxu1 }
 0xb58   : > { %v4324_v27 = vadd.f32 %v4323_v19, %v2694_v23  ;;  %v2696_v40 = vpop.f32.mrb[13].mxu0  ;;  %v2767_v41 = vpop.f32.mrb[13].mxu1  ;;  %v4372_v54 = vadd.f32 %v4371_v50, %v2765_v24 }
 0xb59   : > { %v4327_v44 = vadd.f32 %v4326_v20, %v2696_v40  ;;  %v4375_v48 = vadd.f32 %v4374_v28, %v2767_v41 }
 0xb5a   : > { %v3391_v45 = vmul.f32 -1.442695, %v4324_v27 }
 0xb5b   : > { %v3392_v2 = vmul.f32 -1.442695, %v4327_v44  ;;  %v3393_v52 = vmul.f32 -1.442695, %v4375_v48 }
 0xb5c   : > { %4612 = vpow2.f32 %v3391_v45 }
 0xb5d   : > { %4614 = vpow2.f32 %v3392_v2 }
 0xb5e   : > { %4616 = vpow2.f32 %v3393_v52 }
 0xb5f   : > { %4618 = vtanh.f32 %v4372_v54 }
 0xb66   : > { %v4613_v55 = vpop.eup %4612 }
 0xb67   : > { %v4615_v58 = vpop.eup %4614  ;;  %v2777_v59 = vadd.f32 1.0, %v4613_v55 }
 0xb68   : > { %v2783_v62 = vadd.f32 1.0, %v4615_v58  ;;  %v4617_v0 = vpop.eup %4616 }
 0xb69   : > { %4620 = vrcp.f32 %v2777_v59  ;;  %v4619_v5 = vpop.eup %4618  ;;  %v2790_v9 = vadd.f32 1.0, %v4617_v0 }
 0xb6a   : > { %4622 = vrcp.f32 %v2783_v62 }
 0xb6b   : > { %4624 = vrcp.f32 %v2790_v9 }
 0xb73   : > { %v4621_v6 = vpop.eup %4620 }
 0xb74   : > { %v4623_v10 = vpop.eup %4622  ;;  %v2794_v32 = vmul.f32 %v4621_v6, %v4619_v5 }
 0xb75   : > { %v2793_v12 = vmul.f32 %v4623_v10, %v5835_v16  ;;  %v4625_v35 = vpop.eup %4624 }
 0xb77   : > { %v5875_v15 = vadd.f32 %v2794_v32, %v2793_v12 }
 0xb79   : > { %4626 = vtanh.f32 %v5875_v15 }
 0xb7e   : > { %2800 = sbr.rel (%p3370_p6) target bundleno = 2951 (0xb87), region = 128 }
 0xb83   : > { %v4627_v36 = vpop.eup %4626 }
 0xb84   : > { %v2797_v38 = vmul.f32 %v4627_v36, %v4625_v35 }
 0xb86   : > { %2802 = vst [vmem:[#allocation2 + $0x30] sm:$0xff] %v2797_v38 }
 0xb87 PF: > { %4199 = vmatprep.subr.bf16.mxu0 %v5437_v34  ;;  %4231 = vmatprep.subr.bf16.mxu1 %v5441_v37  ;;  %v4332_v34 = vld [vmem:[#allocation3 + $0xe8] sm:$0xff] }
 0xb88   : > { %4201 = vmatpush1.bf16.msra.mxu0 %v5447_v43  ;;  %4233 = vmatpush1.bf16.msra.mxu1 %v5452_v46 }
 0xb89   : > { %4203 = vmatprep.subr.bf16.mxu0 %v5457_v49  ;;  %4235 = vmatprep.subr.bf16.mxu1 %v5461_v53 }
 0xb8a   : > { %2874 = vmatprep.mubr.f32.mxu0 %v4939_v3  ;;  %2945 = vmatprep.mubr.f32.mxu1 %v4939_v3  ;;  %v4329_v3 = vld [vmem:[#allocation3 + $0xe0] sm:$0xff] }
 0xb8c   : > { %4205 = vmatpush1.bf16.msra.mxu0 %v5466_v57  ;;  %4237 = vmatpush1.bf16.msra.mxu1 %v5472_v60 }
 0xb8d   : > { %4207 = vmatprep.subr.bf16.mxu0 %v5478_v63  ;;  %4239 = vmatprep.subr.bf16.mxu1 %v5485_v4  ;;  %v4380_v4 = vld [vmem:[#allocation3 + $0xf8] sm:$0xff] }
 0xb90   : > { %4209 = vmatpush1.bf16.msra.mxu0 %v5490_v8  ;;  %4241 = vmatpush1.bf16.msra.mxu1 %v5496_v11  ;;  %v4377_v11 = vld [vmem:[#allocation3 + $0xf0] sm:$0xff] }
 0xb91   : > { %4211 = vmatprep.subr.bf16.mxu0 %v5502_v14  ;;  %4243 = vmatprep.subr.bf16.mxu1 %v5508_v18 }
 0xb94   : > { %4213 = vmatpush1.bf16.msra.mxu0 %v5513_v22  ;;  %4245 = vmatpush1.bf16.msra.mxu1 %v5519_v25 }
 0xb95   : > { %4215 = vmatprep.subr.bf16.mxu0 %v5528_v29  ;;  %4247 = vmatprep.subr.bf16.mxu1 %v5536_v33 }
 0xb98   : > { %4217 = vmatpush1.bf16.msra.mxu0 %v5541_v39  ;;  %4249 = vmatpush1.bf16.msra.mxu1 %v5554_v42 }
 0xb99   : > { %4219 = vmatprep.subr.bf16.mxu0 %v5560_v47  ;;  %4251 = vmatprep.subr.bf16.mxu1 %v5565_v51 }
 0xb9c   : > { %4221 = vmatpush1.bf16.msra.mxu0 %v5570_v56  ;;  %4253 = vmatpush1.bf16.msra.mxu1 %v5576_v61 }
 0xb9d   : > { %4223 = vmatprep.subr.bf16.mxu0 %v5582_v1  ;;  %4255 = vmatprep.subr.bf16.mxu1 %v5587_v7 }
 0xba0   : > { %4225 = vmatpush1.bf16.msra.mxu0 %v5592_v13  ;;  %4257 = vmatpush1.bf16.msra.mxu1 %v5598_v17 }
 0xba1   : > { %4227 = vmatprep.subr.bf16.mxu0 %v5604_v21  ;;  %4259 = vmatprep.subr.bf16.mxu1 %v5609_v26 }
 0xba4   : > { %4229 = vmatpush1.bf16.msra.mxu0 %v5612_v30  ;;  %4261 = vmatpush1.bf16.msra.mxu1 %v5616_v31 }
 0xba7   : > { %2875 = vmatmul.mubr.f32.vlgmr.msra.gmra.mrb[14].mxu0 %v2797_v38  ;;  %2946 = vmatmul.mubr.f32.vlgmr.msra.gmra.mrb[14].mxu1 %v2797_v38 }
 0xc7a   : > { %v2876_v37 = vpop.f32.mrb[14].mxu0  ;;  %v2947_v43 = vpop.f32.mrb[14].mxu1 }
 0xc7b   : > { %v4330_v46 = vadd.f32 %v4329_v3, %v2876_v37  ;;  %v2878_v49 = vpop.f32.mrb[15].mxu0  ;;  %v2949_v53 = vpop.f32.mrb[15].mxu1  ;;  %v4378_v18 = vadd.f32 %v4377_v11, %v2947_v43 }
 0xc7c   : > { %v4333_v57 = vadd.f32 %v4332_v34, %v2878_v49  ;;  %v4381_v8 = vadd.f32 %v4380_v4, %v2949_v53 }
 0xc7d   : > { %v3395_v60 = vmul.f32 -1.442695, %v4330_v46 }
 0xc7e   : > { %v3396_v63 = vmul.f32 -1.442695, %v4333_v57  ;;  %v3397_v14 = vmul.f32 -1.442695, %v4381_v8 }
 0xc7f   : > { %4628 = vpow2.f32 %v3395_v60 }
 0xc80   : > { %4630 = vpow2.f32 %v3396_v63 }
 0xc81   : > { %4632 = vpow2.f32 %v3397_v14 }
 0xc82   : > { %4634 = vtanh.f32 %v4378_v18 }
 0xc89   : > { %v4629_v22 = vpop.eup %4628 }
 0xc8a   : > { %v4631_v25 = vpop.eup %4630  ;;  %v2959_v29 = vadd.f32 1.0, %v4629_v22 }
 0xc8b   : > { %v2965_v33 = vadd.f32 1.0, %v4631_v25  ;;  %v4633_v39 = vpop.eup %4632 }
 0xc8c   : > { %4636 = vrcp.f32 %v2959_v29  ;;  %v4635_v42 = vpop.eup %4634  ;;  %v2972_v51 = vadd.f32 1.0, %v4633_v39 }
 0xc8d   : > { %4638 = vrcp.f32 %v2965_v33 }
 0xc8e   : > { %4640 = vrcp.f32 %v2972_v51 }
 0xc96   : > { %v4637_v47 = vpop.eup %4636 }
 0xc97   : > { %v4639_v56 = vpop.eup %4638  ;;  %v2976_v61 = vmul.f32 %v4637_v47, %v4635_v42 }
 0xc98   : > { %v2975_v1 = vmul.f32 %v4639_v56, %v5875_v15  ;;  %v4641_v13 = vpop.eup %4640 }
 0xc9a   : > { %v2977_v7 = vadd.f32 %v2976_v61, %v2975_v1 }
 0xc9c   : > { %4642 = vtanh.f32 %v2977_v7 }
 0xca1   : > { %2982 = sbr.rel (%p3370_p6) target bundleno = 3242 (0xcaa), region = 132 }
 0xca6   : > { %v4643_v17 = vpop.eup %4642 }
 0xca7   : > { %v2979_v21 = vmul.f32 %v4643_v17, %v4641_v13 }
 0xca9   : > { %2984 = vst [vmem:[#allocation2 + $0x38] sm:$0xff] %v2979_v21 }
 0xcaa PF: > { %2985 = vst [vmem:[%s5317_s29] sm:$0xff] %v2979_v21  ;;  %2986 = vst [vmem:[%s5319_s4] sm:$0xff] %v2977_v7  ;;  %p3399_p12 = scmp.ne.s32.totalorder %s5052_s25, 1 }
 0xcab   : > { %v2991_v26 = vld [vmem:[#allocation11] sm:$0xff] (!%p3399_p12)  ;;  %v2992_v30 = vld [vmem:[#allocation11 + $0x8] sm:$0xff] (!%p3399_p12)  ;;  %v2993_v31 = vld [vmem:[#allocation11 + $0x10] sm:$0xff] (!%p3399_p12)  ;;  %v4940_v16 = vmov (!%p3399_p12), 0.0|0.0   ;;  %vm4941_vm2 = vmmov (!%p3399_p12), 0   ;;  %v4942_v23 = vmov (!%p3399_p12), 0.0  }
 0xcac   : > { %2990 = sbr.rel (%p3399_p12) target bundleno = 3492 (0xda4), region = 136  ;;  %4262 = vmatprep.subr.bf16.mxu0 (!%p3399_p12), %v4940_v16  ;;  %v4263_v19 = vpack.c.bf16 (!%p3399_p12), %v2992_v30, %v2991_v26  ;;  %v2994_v20 = vld [vmem:[#allocation11 + $0x18] sm:$0xff] (!%p3399_p12)  ;;  %3619 = vmatprep.mubr.msk.f32.mxu0 (!%p3399_p12), %vm4941_vm2, %v4942_v23  ;;  %v2995_v27 = vld [vmem:[#allocation11 + $0x20] sm:$0xff] (!%p3399_p12)  ;;  %v2996_v40 = vld [vmem:[#allocation11 + $0x28] sm:$0xff] (!%p3399_p12)  ;;  %s6113_s17 = sld [smem:[#allocation38_spill]] (!%p3399_p12) }
 0xcad   : > { %v4266_v24 = vpack.c.bf16 (!%p3399_p12), %v2994_v20, %v2993_v31  ;;  %v4269_v41 = vpack.c.bf16 (!%p3399_p12), %v2996_v40, %v2995_v27  ;;  %v2997_v44 = vld [vmem:[#allocation11 + $0x30] sm:$0xff] (!%p3399_p12)  ;;  %v2998_v45 = vld [vmem:[#allocation11 + $0x38] sm:$0xff] (!%p3399_p12)  ;;  %v2999_v28 = vld [vmem:[#allocation11 + $0x40] sm:$0xff] (!%p3399_p12) }
 0xcae   : > { %4264 = vmatpush3.bf16.msra.mxu0 (!%p3399_p12), %v4263_v19  ;;  %v4272_v2 = vpack.c.bf16 (!%p3399_p12), %v2998_v45, %v2997_v44  ;;  %v3000_v48 = vld [vmem:[#allocation11 + $0x48] sm:$0xff] (!%p3399_p12)  ;;  %v3001_v52 = vld [vmem:[#allocation11 + $0x50] sm:$0xff] (!%p3399_p12)  ;;  %v3002_v54 = vld [vmem:[#allocation11 + $0x58] sm:$0xff] (!%p3399_p12) }
 0xcaf   : > { %4265 = vmatprep.subr.bf16.mxu0 (!%p3399_p12), %v4940_v16  ;;  %v4275_v50 = vpack.c.bf16 (!%p3399_p12), %v3000_v48, %v2999_v28  ;;  %v4278_v55 = vpack.c.bf16 (!%p3399_p12), %v3002_v54, %v3001_v52  ;;  %v3003_v58 = vld [vmem:[#allocation11 + $0x60] sm:$0xff] (!%p3399_p12)  ;;  %v3004_v59 = vld [vmem:[#allocation11 + $0x68] sm:$0xff] (!%p3399_p12)  ;;  %v3005_v0 = vld [vmem:[#allocation11 + $0x70] sm:$0xff] (!%p3399_p12) }
 0xcb0   : > { %v4281_v62 = vpack.c.bf16 (!%p3399_p12), %v3004_v59, %v3003_v58  ;;  %v3006_v5 = vld [vmem:[#allocation11 + $0x78] sm:$0xff] (!%p3399_p12) }
 0xcb1   : > { %v4284_v6 = vpack.c.bf16 (!%p3399_p12), %v3006_v5, %v3005_v0 }
 0xcb2   : > { %4267 = vmatpush3.bf16.msra.mxu0 (!%p3399_p12), %v4266_v24  ;;  %v3400_v9 = vld [vmem:[%s6113_s17] ss:$0 sm:$0xff] (!%p3399_p12) }
 0xcb3   : > { %4268 = vmatprep.subr.bf16.mxu0 %v4940_v16 }
 0xcb6   : > { %4270 = vmatpush3.bf16.msra.mxu0 %v4269_v41 }
 0xcb7   : > { %4271 = vmatprep.subr.bf16.mxu0 %v4940_v16 }
 0xcba   : > { %4273 = vmatpush3.bf16.msra.mxu0 %v4272_v2 }
 0xcbb   : > { %4274 = vmatprep.subr.bf16.mxu0 %v4940_v16 }
 0xcbe   : > { %4276 = vmatpush3.bf16.msra.mxu0 %v4275_v50 }
 0xcbf   : > { %4277 = vmatprep.subr.bf16.mxu0 %v4940_v16 }
 0xcc2   : > { %4279 = vmatpush3.bf16.msra.mxu0 %v4278_v55 }
 0xcc3   : > { %4280 = vmatprep.subr.bf16.mxu0 %v4940_v16 }
 0xcc6   : > { %4282 = vmatpush3.bf16.msra.mxu0 %v4281_v62 }
 0xcc7   : > { %4283 = vmatprep.subr.bf16.mxu0 %v4940_v16 }
 0xcca   : > { %4285 = vmatpush3.bf16.msra.mxu0 %v4284_v6 }
 0xccd   : > { %3620 = vmatmul.mubr.f32.vlgmr.msra.gmra.mrb[0].mxu0 %v2979_v21 }
 0xda0   : > { %v3080_v10 = vpop.f32.mrb[0].mxu0 }
 0xda1   : > { %v3081_v32 = vadd.f32 %v3400_v9, %v3080_v10  ;;  %v3621_v12 = vpop.f32.mrb[1].mxu0 }
 0xda3   : > { %3084 = vst [vmem:[#allocation15] sm:$0xff] %v3081_v32 }
 0xda4 PF: > { %s6114_s23 = sld [smem:[#allocation27_spill]]  ;;  %s3403_s16 = sshll.u32 %s5052_s25, 7 }
 0xda5   : > { %s6115_s20 = sld [smem:[#allocation40_spill]]  ;;  %s3117_s6 = sshll.u32 %s5319_s4, 4  ;;  %s3118_s6 = int_to_ptr.vmem [resolvable:$true] %s3117_s6 }
 0xda6   : > { %s3091_s3 = scalar_lea.sflag [#allocation14], %s577_s5  ;;  %s4788_s1 = scalar_lea.vmem %s3118_s6, 128 }
 0xda7   : > { %p4789_p2 = scmp.ne.s32.totalorder %s3118_s6, %s4788_s1  ;;  %s4943_s13 = smov [#allocation13]  }
 0xda8   : > { %s4792_s7 = sshll.u32 %s4943_s13, 4  ;;  %s4793_s7 = int_to_ptr.vmem [resolvable:$false] %s4792_s7 }
 0xda9   : > { %s4794_s2 = scalar_lea.vmem %s4793_s7, 256  ;;  %p4795_p1 = scmp.lt.s32.totalorder %s3118_s6, %s4793_s7 }
 0xdaa   : > { %p6116_p4 = scmp.ne.s32.totalorder %s6114_s23, 0  ;;  %p4796_p11 = scmp.lt.s32.totalorder %s4794_s2, %s4788_s1 }
 0xdab   : > { %s5929_s27 = scalar_lea.hbm %s6115_s20, %s3403_s16 }
 0xdac   : > { %p4790_p9 = pnand %p4789_p2, %p6116_p4  ;;  %p4797_p13 = por %p4796_p11, %p4795_p1 }
 0xdae   : > { %p4791_p7 = pneg %p4790_p9 }
 0xdb0   : > { %p4798_p5 = pnand %p4797_p13, %p4791_p7 }
 0xdb2   : > { %4801 = shalt.err (!%p4798_p5)
}
 0xdb3   : > { %s4802_s5 = scalar_lea.hbm %s5929_s27, 128  ;;  %s4806_s26 = scalar_lea.hbm %s6115_s20, 256 }
 0xdb4   : > { %p4803_p3 = scmp.ne.s32.totalorder %s5929_s27, %s4802_s5  ;;  %p4807_p10 = scmp.lt.u32.totalorder %s5929_s27, %s6115_s20 }
 0xdb5   : > { %p4808_p6 = scmp.lt.u32.totalorder %s4806_s26, %s4802_s5  ;;  %p4810_p2 = scmp.lt.u32.totalorder %s4802_s5, %s5929_s27 }
 0xdb6   : > { %p4804_p8 = pnand %p4803_p3, %p6116_p4 }
 0xdb7   : > { %p4809_p12 = por %p4808_p6, %p4807_p10 }
 0xdb8   : > { %p4805_p0 = pneg %p4804_p8 }
 0xdb9   : > { %p4811_p9 = por %p4810_p2, %p4809_p12 }
 0xdbb   : > { %p4812_p7 = pnand %p4811_p9, %p4805_p0 }
 0xdbd   : > { %4815 = shalt.err (!%p4812_p7)
}
 0xdbe   : > { %4431 = dma.vmem_to_hbm [thread:$0]  (%p6116_p4), %s3118_s6, 128, %s5929_s27, %s3091_s3  }
 0xdbf   : > { %s6117_s17 = sld [smem:[#allocation39_spill]]  ;;  %s3104_s0 = sshll.u32 %s5317_s29, 4  ;;  %s3105_s0 = int_to_ptr.vmem [resolvable:$true] %s3104_s0 }
 0xdc0   : > { %s3086_s1 = scalar_lea.sflag [#allocation6], %s5282_s30  ;;  %s4816_s13 = scalar_lea.vmem %s3105_s0, 128 }
 0xdc1   : > { %p4817_p1 = scmp.ne.s32.totalorder %s3105_s0, %s4816_s13  ;;  %s4944_s7 = smov [#allocation12]  }
 0xdc2   : > { %s4820_s2 = sshll.u32 %s4944_s7, 4  ;;  %s4821_s2 = int_to_ptr.vmem [resolvable:$false] %s4820_s2 }
 0xdc3   : > { %p4818_p11 = pnand %p4817_p1, %p6116_p4  ;;  %s4822_s5 = scalar_lea.vmem %s4821_s2, 256 }
 0xdc4   : > { %p4823_p5 = scmp.lt.s32.totalorder %s3105_s0, %s4821_s2  ;;  %p4824_p3 = scmp.lt.s32.totalorder %s4822_s5, %s4816_s13 }
 0xdc5   : > { %s5956_s15 = scalar_lea.hbm %s6117_s17, %s3403_s16  ;;  %p4819_p13 = pneg %p4818_p11 }
 0xdc6   : > { %p4825_p8 = por %p4824_p3, %p4823_p5 }
 0xdc8   : > { %p4826_p0 = pnand %p4825_p8, %p4819_p13 }
 0xdca   : > { %4829 = shalt.err (!%p4826_p0)
}
 0xdcb   : > { %s4830_s30 = scalar_lea.hbm %s5956_s15, 128  ;;  %s4834_s27 = scalar_lea.hbm %s6117_s17, 256 }
 0xdcc   : > { %p4831_p10 = scmp.ne.s32.totalorder %s5956_s15, %s4830_s30  ;;  %p4835_p2 = scmp.lt.u32.totalorder %s5956_s15, %s6117_s17 }
 0xdcd   : > { %p4836_p9 = scmp.lt.u32.totalorder %s4834_s27, %s4830_s30  ;;  %p4838_p1 = scmp.lt.u32.totalorder %s4830_s30, %s5956_s15 }
 0xdce   : > { %p4832_p6 = pnand %p4831_p10, %p6116_p4 }
 0xdcf   : > { %p4837_p7 = por %p4836_p9, %p4835_p2 }
 0xdd0   : > { %p4833_p12 = pneg %p4832_p6 }
 0xdd1   : > { %p4839_p11 = por %p4838_p1, %p4837_p7 }
 0xdd3   : > { %p4840_p13 = pnand %p4839_p11, %p4833_p12 }
 0xdd5   : > { %4843 = shalt.err (!%p4840_p13)
}
 0xdd6   : > { %4430 = dma.vmem_to_hbm [thread:$0]  (%p6116_p4), %s3105_s0, 128, %s5956_s15, %s3086_s1  }
 0xdd7   : > { %s4945_s4 = smov [#allocation15]   ;;  %p6118_p3 = scmp.eq.s32.totalorder %s5052_s25, 1 }
 0xdd8   : > { %s3128_s11 = sshll.u32 %s4945_s4, 4  ;;  %s3129_s11 = int_to_ptr.vmem [resolvable:$true] %s3128_s11 }
 0xdd9   : > { %s4844_s26 = scalar_lea.vmem %s3129_s11, 128  ;;  %p4851_p10 = scmp.lt.s32.totalorder %s3129_s11, %s3129_s11 }
 0xdda   : > { %p4845_p5 = scmp.ne.s32.totalorder %s3129_s11, %s4844_s26  ;;  %p4852_p6 = scmp.lt.s32.totalorder %s4844_s26, %s4844_s26 }
 0xddc   : > { %p4846_p8 = pnand %p4845_p5, %p6118_p3  ;;  %p4853_p2 = por %p4852_p6, %p4851_p10 }
 0xdde   : > { %p4847_p0 = pneg %p4846_p8 }
 0xde0   : > { %p4854_p9 = pnand %p4853_p2, %p4847_p0 }
 0xde2   : > { %4857 = shalt.err (!%p4854_p9)
}
 0xde3   : > { %s6119_s14 = sld [smem:[#allocation41_spill]]  ;;  %p6120_p12 = pmov %p6118_p3 }
 0xde9   : > { %s4858_s23 = scalar_lea.hbm %s6119_s14, 128 }
 0xdea   : > { %p4859_p4 = scmp.ne.s32.totalorder %s6119_s14, %s4858_s23  ;;  %p4864_p11 = scmp.lt.u32.totalorder %s4858_s23, %s6119_s14 }
 0xdec   : > { %p4860_p7 = pnand %p4859_p4, %p6120_p12 }
 0xdee   : > { %p4861_p1 = pneg %p4860_p7 }
 0xdf0   : > { %p4866_p13 = pnand %p4864_p11, %p4861_p1 }
 0xdf2   : > { %4869 = shalt.err (!%p4866_p13)
}
 0xdf3   : > { %p6121_p5 = pmov %p6118_p3 }
 0xdf5   : > { %4433 = dma.vmem_to_hbm [thread:$0]  (%p6121_p5), %s3129_s11, 128, %s6119_s14, [#allocation14]  }
 0xdf6   : > { %4903 = dma.done.wait (%p6118_p3), [#allocation14], 128   ;;  %p6122_p8 = pmov %p6118_p3 }
 0xdf8   : > { %4905 = vsyncadd (%p6122_p8), [#allocation14], 4294967168 }
 0xdf9 PF: > { %s6123_s2 = sld [smem:[#allocation23_spill]]  ;;  %s6124_s5 = sld [smem:[#allocation28_spill]] }
 0xdfa   : > { %p6126_p10 = scmp.ge.s32.totalorder %s4928_s24, 2 }
 0xdff   : > { %s3144_s30 = sand.u32 1, %s6123_s2   ;;  %p6125_p0 = scmp.ne.s32.totalorder %s6124_s5, 0 }
 0xe00   : > { %s3145_s29 = scalar_lea.sflag [#allocation6], %s3144_s30 }
 0xe01   : > { %p4456_p6 = pnand %p6126_p10, %p6125_p0 }
 0xe03   : > { %4907 = dma.done.wait (!%p4456_p6), %s3145_s29, 128  }
 0xe04   : > { %4909 = vsyncadd (!%p4456_p6), %s3145_s29, 4294967168  ;;  %s6127_s16 = sadd.s32 4294967294, %s4928_s24  }
 0xe05   : > { %s3153_s27 = sand.u32 1, %s6127_s16  }
 0xe06   : > { %s3154_s6 = scalar_lea.sflag [#allocation14], %s3153_s27 }
 0xe07   : > { %4911 = dma.done.wait (!%p4456_p6), %s3154_s6, 128  }
 0xe08   : > { %4913 = vsyncadd (!%p4456_p6), %s3154_s6, 4294967168  ;;  %s6128_s24 = sld [smem:[#allocation25_spill]]  ;;  %s6129_s25 = sld [smem:[#allocation24_spill]] }
 0xe09   : > { %s6130_s23 = sld [smem:[#allocation26_spill]]  ;;  %s6131_s21 = smov %s4920_s22 }
 0xe0e   : > { %p32_p2 = scmp.ge.s32.totalorder %s6128_s24, 4   ;;  %s6132_s22 = smov %s6129_s25 }
 0xe10   :  { %34 = sbr.rel (!%p32_p2) target bundleno = 21 (0x15), region = 232 }
 0xe17   :  { %3159 = vsyncpa [#allocation5], 1 }
 0xe18   :  { %3161 = vsyncpa [#allocation5 + $0x1], 1 }
 0xe19   :  { %3162 = vsyncpa [#allocation8], 1 }
 0xe1a   :  { %3163 = vsyncpa [#allocation6], 1 }
 0xe1b   :  { %3165 = vsyncpa [#allocation6 + $0x1], 1 }
 0xe1c   :  { %3166 = vsyncpa [#allocation14], 1 }
 0xe1d   :  { %3168 = vsyncpa [#allocation14 + $0x1], 1 }

</bundles_post_ra>
